<compile_context>
chip_gen: v7x
topology: tpu7x:2x2x1
jax: 0.10.0
libtpu: 0.0.40
codegen_flags: <defaults>
</compile_context>

<pallas_src>
import functools

import jax
import jax.numpy as jnp
from jax.experimental import pallas as pl
from jax.experimental.pallas import tpu as pltpu

LANE = 128      # vreg lane width
SUBLANE = 8     # f32 sublane count


def _round_up(x, m):
    return (x + m - 1) // m * m


# ----------------------------------------------------------------------------
# Fused forward kernel (built per static shape set).
# PyTorch GRU equations (gate order r, z, n):
#   r = sigmoid(x W_ir + b_ir + h W_hr + b_hr)
#   z = sigmoid(x W_iz + b_iz + h W_hz + b_hz)
#   n = tanh   (x W_in + b_in + r * (h W_hn + b_hn))
#   h' = (1 - z) * n + z * h   ==   n + z * (h - n)
# Gates are packed lane-aligned: gate g occupies columns [g*Hp, g*Hp+H) of the
# 3*Hp-wide fused weights, so gate extraction is a whole-vreg view.
# ----------------------------------------------------------------------------
def _make_cond_gru_kernel(T, Bp, Hp, L):
    """Builds the fused forward kernel for fixed (static, padded) shapes."""

    def kernel(*refs):
        # refs: x, [w_ih, w_hh, bx, bhn] * L, dense_w, dense_b   (inputs)
        #       lp, hn                                            (outputs)
        x_ref = refs[0]
        layer_refs = [refs[1 + 4 * l: 5 + 4 * l] for l in range(L)]
        dw_ref = refs[1 + 4 * L]
        db_ref = refs[2 + 4 * L]
        lp_ref = refs[3 + 4 * L]
        hn_ref = refs[4 + 4 * L]

        xin = x_ref[...]                                    # (T*Bp, Ip) f32
        for l, (wih_ref, whh_ref, bx_ref, bhn_ref) in enumerate(layer_refs):
            wih = wih_ref[...]                              # (in_p, 3*Hp) bf16
            whh = whh_ref[...]                              # (Hp,   3*Hp) bf16
            # Hoisted, time-parallel input projection: one big MXU matmul off
            # the serial path.  xp layout: [r | z | n], each gate Hp lanes;
            # r/z biases pre-summed, n carries b_in only.
            xp = jnp.dot(xin.astype(wih.dtype), wih,
                         preferred_element_type=jnp.float32) + bx_ref[...]
            # Hoisted out of the unrolled loop (JAX does not CSE broadcasts).
            bhn_b = jnp.broadcast_to(bhn_ref[...], (Bp, Hp))

            # Sequential recurrence, statically unrolled over T (small, static).
            # TODO(synk): switch to lax.fori_loop(..., unroll=True) once T
            #             grows past ~16 to bound vreg live ranges.
            h = jnp.zeros((Bp, Hp), jnp.float32)    # h0 = zeros (h0=None case)
            hs = []
            for t in range(T):
                xpt = xp[t * Bp:(t + 1) * Bp, :]            # (Bp, 3*Hp) band
                # TODO(synk): if the bundle dump shows a repeated RHS push per
                #             step, hold whh in the MXU across steps with
                #             pltpu.matmul_push_rhs / matmul_acc_lhs.
                hp = jnp.dot(h.astype(whh.dtype), whh,
                             preferred_element_type=jnp.float32)  # (Bp, 3*Hp)
                r = jax.nn.sigmoid(xpt[:, 0:Hp] + hp[:, 0:Hp])
                z = jax.nn.sigmoid(xpt[:, Hp:2 * Hp] + hp[:, Hp:2 * Hp])
                n = jnp.tanh(xpt[:, 2 * Hp:] + r * (hp[:, 2 * Hp:] + bhn_b))
                h = n + z * (h - n)
                hs.append(h)
            hn_ref[l] = h
            # Register/VMEM-resident slab; no per-step masked scratch stores.
            xin = jnp.concatenate(hs, axis=0)               # (T*Bp, Hp) f32

        # ---- fused dense + log_softmax over the whole lane-dense slab -------
        logits = jnp.dot(xin.astype(dw_ref.dtype), dw_ref[...],
                         preferred_element_type=jnp.float32) + db_ref[...]
        m = jnp.max(logits, axis=-1, keepdims=True)
        s = logits - m
        lse = jnp.log(jnp.sum(jnp.exp(s), axis=-1, keepdims=True))
        lp_ref[...] = s - lse

    return kernel


def cond_gru_pallas(x_flat, gru_packed, dense_w, dense_b, T, Bp):
    """x_flat: (T*Bp, Ip) f32. gru_packed: list of (w_ih, w_hh, bx, bhn)."""
    Hp = gru_packed[0][1].shape[0]
    Cp = dense_w.shape[1]
    L = len(gru_packed)
    kernel = _make_cond_gru_kernel(T, Bp, Hp, L)

    args = [x_flat]
    for p in gru_packed:
        args.extend(p)
    args.extend([dense_w, dense_b])

    # Gridless: params + activations are << VMEM, so one invocation with
    # everything resident avoids per-grid-step pipeline/launch overhead and
    # HBM round-trips between layers.
    # TODO(synk): at realistic serving batch, add a batch grid axis with
    #             dimension_semantics=("parallel",) to use v7x's 2nd TC.
    return pl.pallas_call(
        kernel,
        out_shape=(jax.ShapeDtypeStruct((T * Bp, Cp), jnp.float32),
                   jax.ShapeDtypeStruct((L, Bp, Hp), jnp.float32)),
        compiler_params=pltpu.CompilerParams(
            vmem_limit_bytes=32 * 1024 * 1024),
    )(*args)


# ----------------------------------------------------------------------------
# Parameter construction (deterministic, synthetic, PyTorch layout) + packing.
# ----------------------------------------------------------------------------
def init_params(key, num_class, hid_size, hid_layers, embedding_size,
                cond_range, emb_cond_size):
    """Raw params in PyTorch layout (weight (out, in), GRU gates [r|z|n])."""
    ks = jax.random.split(key, 7)
    cr1, cr2, cr3 = cond_range
    ec1, ec2, ec3 = emb_cond_size
    input_size = embedding_size + ec1 + ec2 + ec3
    H = hid_size
    bound = 1.0 / float(H) ** 0.5

    def unif(k, shape):
        return jax.random.uniform(k, shape, jnp.float32, -bound, bound)

    params = {
        "num_class": num_class,
        "hid_size": hid_size,
        "cond_emb1": jax.random.normal(ks[0], (cr1, ec1), jnp.float32),
        "cond_emb2": jax.random.normal(ks[1], (cr2, ec2), jnp.float32),
        "cond_emb3": jax.random.normal(ks[2], (cr3, ec3), jnp.float32),
        "embedding": jax.random.normal(ks[3], (num_class, embedding_size),
                                       jnp.float32),
        "dense_w": unif(ks[4], (num_class, H)),   # Linear: (out, in)
        "dense_b": unif(ks[5], (num_class,)),
        "gru": [],
    }
    kk = jax.random.split(ks[6], hid_layers * 4)
    for layer in range(hid_layers):
        in_sz = input_size if layer == 0 else H
        w_ih = unif(kk[4 * layer + 0], (3 * H, in_sz))   # gates [r | z | n]
        w_hh = unif(kk[4 * layer + 1], (3 * H, H))
        b_ih = unif(kk[4 * layer + 2], (3 * H,))
        b_hh = unif(kk[4 * layer + 3], (3 * H,))
        params["gru"].append((w_ih, w_hh, b_ih, b_hh))
    return params


def pack_params(raw, weight_dtype=jnp.bfloat16):
    """Repack raw PyTorch-layout params into the kernel layout:
      * gates lane-aligned: gate g at columns [g*Hp, g*Hp + H), zero-padded
      * r/z biases pre-summed; b_in in bx; b_hn kept separate (inside r*(.))
      * dense head padded to (Hp, Cp); padded classes get a -1e30 bias so the
        in-kernel log_softmax is unaffected (sliced off in the wrapper)
      * matmul operands cast to bf16; biases / elementwise math stay f32.
    """
    H = raw["hid_size"]
    C = raw["num_class"]
    Hp = _round_up(H, LANE)
    Cp = _round_up(C, LANE)

    gru_p = []
    for li, (w_ih, w_hh, b_ih, b_hh) in enumerate(raw["gru"]):
        in_sz = w_ih.shape[1]
        in_p = _round_up(in_sz, LANE) if li == 0 else Hp
        wih_p = jnp.zeros((in_p, 3 * Hp), jnp.float32)
        whh_p = jnp.zeros((Hp, 3 * Hp), jnp.float32)
        bx_p = jnp.zeros((1, 3 * Hp), jnp.float32)
        for g in range(3):
            wih_p = wih_p.at[:in_sz, g * Hp:g * Hp + H].set(
                w_ih[g * H:(g + 1) * H, :].T)
            whh_p = whh_p.at[:H, g * Hp:g * Hp + H].set(
                w_hh[g * H:(g + 1) * H, :].T)
        bx_p = bx_p.at[0, 0:H].set(b_ih[0:H] + b_hh[0:H])
        bx_p = bx_p.at[0, Hp:Hp + H].set(b_ih[H:2 * H] + b_hh[H:2 * H])
        bx_p = bx_p.at[0, 2 * Hp:2 * Hp + H].set(b_ih[2 * H:3 * H])
        bhn_p = jnp.zeros((1, Hp), jnp.float32).at[0, 0:H].set(
            b_hh[2 * H:3 * H])
        gru_p.append((wih_p.astype(weight_dtype), whh_p.astype(weight_dtype),
                      bx_p, bhn_p))

    dw_p = jnp.zeros((Hp, Cp), jnp.float32).at[:H, :C].set(raw["dense_w"].T)
    db_p = jnp.full((1, Cp), -1e30, jnp.float32).at[0, :C].set(raw["dense_b"])

    return {
        "cond_emb1": raw["cond_emb1"],
        "cond_emb2": raw["cond_emb2"],
        "cond_emb3": raw["cond_emb3"],
        "embedding": raw["embedding"],
        "gru": gru_p,
        "dense_w": dw_p.astype(weight_dtype),
        "dense_b": db_p,
    }


# ----------------------------------------------------------------------------
# Full forward (glue in JAX, hot path in the fused Pallas kernel).
# ----------------------------------------------------------------------------
@functools.partial(jax.jit, static_argnames=("num_class", "hid_size"))
def cond_gru_forward(packed, input_data, condition, *, num_class, hid_size):
    """input_data: (T, B) int32, condition: (B, 3) int32.

    Returns (log_probs (T, B, num_class), hn (num_layers, B, hid_size)),
    matching CondGRU.forward(input_data, condition, h0=None) in eval mode.
    """
    T, B = input_data.shape
    Bp = _round_up(B, SUBLANE)   # sublane-dense batch; padded rows sliced off

    cond1 = jnp.take(packed["cond_emb1"], condition[:, 0], axis=0)   # (B, ec1)
    cond2 = jnp.take(packed["cond_emb2"], condition[:, 1], axis=0)   # (B, ec2)
    cond3 = jnp.take(packed["cond_emb3"], condition[:, 2], axis=0)   # (B, ec3)
    cond = jnp.concatenate([cond1, cond2, cond3], axis=-1)           # (B, ecs)
    cond = jnp.broadcast_to(cond[None], (T,) + cond.shape)           # (T, B, .)
    emb = jnp.take(packed["embedding"], input_data, axis=0)          # (T, B, E)
    x = jnp.concatenate([cond, emb], axis=-1).astype(jnp.float32)    # (T, B, I)

    I = x.shape[-1]
    Ip = _round_up(I, LANE)
    x_pad = jnp.zeros((T, Bp, Ip), jnp.float32).at[:, :B, :I].set(x)
    x_flat = x_pad.reshape(T * Bp, Ip)

    lp, hn = cond_gru_pallas(x_flat, packed["gru"], packed["dense_w"],
                             packed["dense_b"], T, Bp)
    Cp = packed["dense_w"].shape[1]
    log_probs = lp.reshape(T, Bp, Cp)[:, :B, :num_class]
    hn_out = hn[:, :B, :hid_size]
    return log_probs, hn_out


# ----------------------------------------------------------------------------
# Pure-JAX reference (raw PyTorch-layout params, mirrors torch.nn.GRU math).
# ----------------------------------------------------------------------------
def reference_forward(raw, input_data, condition):
    T, B = input_data.shape
    H = raw["hid_size"]

    cond1 = jnp.take(raw["cond_emb1"], condition[:, 0], axis=0)
    cond2 = jnp.take(raw["cond_emb2"], condition[:, 1], axis=0)
    cond3 = jnp.take(raw["cond_emb3"], condition[:, 2], axis=0)
    cond = jnp.concatenate([cond1, cond2, cond3], axis=-1)
    cond = jnp.broadcast_to(cond[None], (T,) + cond.shape)
    emb = jnp.take(raw["embedding"], input_data, axis=0)
    layer_in = jnp.concatenate([cond, emb], axis=-1).astype(jnp.float32)

    hn = []
    for (w_ih, w_hh, b_ih, b_hh) in raw["gru"]:
        def step(h, x_t, w_ih=w_ih, w_hh=w_hh, b_ih=b_ih, b_hh=b_hh):
            gi = x_t @ w_ih.T + b_ih
            gh = h @ w_hh.T + b_hh
            r = jax.nn.sigmoid(gi[:, 0:H] + gh[:, 0:H])
            z = jax.nn.sigmoid(gi[:, H:2 * H] + gh[:, H:2 * H])
            n = jnp.tanh(gi[:, 2 * H:] + r * gh[:, 2 * H:])
            h_new = (1.0 - z) * n + z * h
            return h_new, h_new

        h_last, ys = jax.lax.scan(step, jnp.zeros((B, H), jnp.float32),
                                  layer_in)
        hn.append(h_last)
        layer_in = ys

    logits = layer_in @ raw["dense_w"].T + raw["dense_b"]
    return jax.nn.log_softmax(logits, axis=-1), jnp.stack(hn, axis=0)


if __name__ == "__main__":
    # Small, forward-consistent shapes.
    num_class = 16
    hid_size = 32
    hid_layers = 2
    embedding_size = 8
    cond_range = (5, 6, 7)
    emb_cond_size = (4, 4, 8)
    seq_len, batch = 8, 2

    key = jax.random.PRNGKey(0)
    k_param, k_in, k_c1, k_c2, k_c3 = jax.random.split(key, 5)

    raw = init_params(k_param, num_class, hid_size, hid_layers,
                      embedding_size, cond_range, emb_cond_size)
    packed = pack_params(raw)

    input_data = jax.random.randint(k_in, (seq_len, batch), 0, num_class,
                                    dtype=jnp.int32)
    condition = jnp.stack(
        [jax.random.randint(k_c1, (batch,), 0, cond_range[0], dtype=jnp.int32),
         jax.random.randint(k_c2, (batch,), 0, cond_range[1], dtype=jnp.int32),
         jax.random.randint(k_c3, (batch,), 0, cond_range[2], dtype=jnp.int32)],
        axis=-1)                                                     # (B, 3)

    log_probs, hn = cond_gru_forward(packed, input_data, condition,
                                     num_class=num_class, hid_size=hid_size)
    jax.block_until_ready((log_probs, hn))

    assert log_probs.shape == (seq_len, batch, num_class)
    assert hn.shape == (hid_layers, batch, hid_size)
    # Rows of log_softmax output should exponentiate-sum to ~1.
    assert jnp.allclose(jnp.sum(jnp.exp(log_probs), axis=-1), 1.0, atol=1e-4)

    # Check against the pure-JAX reference (loose tol absorbs bf16 MXU passes,
    # which the reference's default-precision f32 dots also use).
    lp_ref, hn_ref = reference_forward(raw, input_data, condition)
    assert jnp.allclose(log_probs, lp_ref, atol=2e-2, rtol=2e-2)
    assert jnp.allclose(hn, hn_ref, atol=2e-2, rtol=2e-2)

    print("KERNEL_OK")
</pallas_src>

<mosaic_0001>
module attributes {stable_mosaic.version = 11 : i64} {
  func.func @kernel(%arg0: memref<64x128xf32, #tpu.memory_space<vmem>>, %arg1: memref<128x384xbf16, #tpu.memory_space<vmem>>, %arg2: memref<128x384xbf16, #tpu.memory_space<vmem>>, %arg3: memref<1x384xf32, #tpu.memory_space<vmem>>, %arg4: memref<1x128xf32, #tpu.memory_space<vmem>>, %arg5: memref<128x384xbf16, #tpu.memory_space<vmem>>, %arg6: memref<128x384xbf16, #tpu.memory_space<vmem>>, %arg7: memref<1x384xf32, #tpu.memory_space<vmem>>, %arg8: memref<1x128xf32, #tpu.memory_space<vmem>>, %arg9: memref<128x128xbf16, #tpu.memory_space<vmem>>, %arg10: memref<1x128xf32, #tpu.memory_space<vmem>>, %arg11: memref<64x128xf32, #tpu.memory_space<vmem>>, %arg12: memref<2x8x128xf32, #tpu.memory_space<vmem>>) attributes {dimension_semantics = [], scalar_prefetch = 0 : i64, scratch_operands = 0 : i64, tpu.core_type = #tpu.core_type<tc>} {
    %c0 = arith.constant 0 : index
    %c0_0 = arith.constant 0 : index
    %0 = vector.load %arg0[%c0, %c0_0] : memref<64x128xf32, #tpu.memory_space<vmem>>, vector<64x128xf32>
    %c0_1 = arith.constant 0 : index
    %c0_2 = arith.constant 0 : index
    %1 = vector.load %arg1[%c0_1, %c0_2] : memref<128x384xbf16, #tpu.memory_space<vmem>>, vector<128x384xbf16>
    %c0_3 = arith.constant 0 : index
    %c0_4 = arith.constant 0 : index
    %2 = vector.load %arg2[%c0_3, %c0_4] : memref<128x384xbf16, #tpu.memory_space<vmem>>, vector<128x384xbf16>
    %3 = arith.truncf %0 : vector<64x128xf32> to vector<64x128xbf16>
    %cst = arith.constant dense<0.000000e+00> : vector<64x384xf32>
    %4 = tpu.matmul %3, %1, %cst {dimension_numbers = #tpu.dot_dimension_numbers<[1], [0], [0], [1], [0, 0, 1, 1], [], []>} : vector<64x128xbf16>, vector<128x384xbf16>, vector<64x384xf32> -> vector<64x384xf32>
    %c0_5 = arith.constant 0 : index
    %c0_6 = arith.constant 0 : index
    %5 = vector.load %arg3[%c0_5, %c0_6] : memref<1x384xf32, #tpu.memory_space<vmem>>, vector<1x384xf32>
    %6 = vector.broadcast %5 : vector<1x384xf32> to vector<64x384xf32>
    %7 = arith.addf %4, %6 : vector<64x384xf32>
    %c0_7 = arith.constant 0 : index
    %c0_8 = arith.constant 0 : index
    %8 = vector.load %arg4[%c0_7, %c0_8] : memref<1x128xf32, #tpu.memory_space<vmem>>, vector<1x128xf32>
    %9 = vector.shape_cast %8 : vector<1x128xf32> to vector<1x128xf32>
    %10 = vector.broadcast %9 : vector<1x128xf32> to vector<8x128xf32>
    %cst_9 = arith.constant 0.000000e+00 : f32
    %11 = vector.broadcast %cst_9 : f32 to vector<8x128xf32>
    %12 = vector.extract_strided_slice %7 {offsets = [0, 0], sizes = [8, 384], strides = [1, 1]} : vector<64x384xf32> to vector<8x384xf32>
    %13 = arith.truncf %11 : vector<8x128xf32> to vector<8x128xbf16>
    %cst_10 = arith.constant dense<0.000000e+00> : vector<8x384xf32>
    %14 = tpu.matmul %13, %2, %cst_10 {dimension_numbers = #tpu.dot_dimension_numbers<[1], [0], [0], [1], [0, 0, 1, 1], [], []>} : vector<8x128xbf16>, vector<128x384xbf16>, vector<8x384xf32> -> vector<8x384xf32>
    %15 = vector.extract_strided_slice %12 {offsets = [0, 0], sizes = [8, 128], strides = [1, 1]} : vector<8x384xf32> to vector<8x128xf32>
    %16 = vector.extract_strided_slice %14 {offsets = [0, 0], sizes = [8, 128], strides = [1, 1]} : vector<8x384xf32> to vector<8x128xf32>
    %17 = arith.addf %15, %16 : vector<8x128xf32>
    %18 = arith.negf %17 : vector<8x128xf32>
    %19 = math.exp %18 : vector<8x128xf32>
    %cst_11 = arith.constant 1.000000e+00 : f32
    %20 = vector.broadcast %cst_11 : f32 to vector<8x128xf32>
    %21 = arith.addf %20, %19 : vector<8x128xf32>
    %22 = arith.divf %20, %21 : vector<8x128xf32>
    %23 = vector.extract_strided_slice %12 {offsets = [0, 128], sizes = [8, 128], strides = [1, 1]} : vector<8x384xf32> to vector<8x128xf32>
    %24 = vector.extract_strided_slice %14 {offsets = [0, 128], sizes = [8, 128], strides = [1, 1]} : vector<8x384xf32> to vector<8x128xf32>
    %25 = arith.addf %23, %24 : vector<8x128xf32>
    %26 = arith.negf %25 : vector<8x128xf32>
    %27 = math.exp %26 : vector<8x128xf32>
    %cst_12 = arith.constant 1.000000e+00 : f32
    %28 = vector.broadcast %cst_12 : f32 to vector<8x128xf32>
    %29 = arith.addf %28, %27 : vector<8x128xf32>
    %30 = arith.divf %28, %29 : vector<8x128xf32>
    %31 = vector.extract_strided_slice %12 {offsets = [0, 256], sizes = [8, 128], strides = [1, 1]} : vector<8x384xf32> to vector<8x128xf32>
    %32 = vector.extract_strided_slice %14 {offsets = [0, 256], sizes = [8, 128], strides = [1, 1]} : vector<8x384xf32> to vector<8x128xf32>
    %33 = arith.addf %32, %10 : vector<8x128xf32>
    %34 = arith.mulf %22, %33 : vector<8x128xf32>
    %35 = arith.addf %31, %34 : vector<8x128xf32>
    %36 = math.tanh %35 : vector<8x128xf32>
    %37 = arith.subf %11, %36 : vector<8x128xf32>
    %38 = arith.mulf %30, %37 : vector<8x128xf32>
    %39 = arith.addf %36, %38 : vector<8x128xf32>
    %40 = vector.extract_strided_slice %7 {offsets = [8, 0], sizes = [8, 384], strides = [1, 1]} : vector<64x384xf32> to vector<8x384xf32>
    %41 = arith.truncf %39 : vector<8x128xf32> to vector<8x128xbf16>
    %cst_13 = arith.constant dense<0.000000e+00> : vector<8x384xf32>
    %42 = tpu.matmul %41, %2, %cst_13 {dimension_numbers = #tpu.dot_dimension_numbers<[1], [0], [0], [1], [0, 0, 1, 1], [], []>} : vector<8x128xbf16>, vector<128x384xbf16>, vector<8x384xf32> -> vector<8x384xf32>
    %43 = vector.extract_strided_slice %40 {offsets = [0, 0], sizes = [8, 128], strides = [1, 1]} : vector<8x384xf32> to vector<8x128xf32>
    %44 = vector.extract_strided_slice %42 {offsets = [0, 0], sizes = [8, 128], strides = [1, 1]} : vector<8x384xf32> to vector<8x128xf32>
    %45 = arith.addf %43, %44 : vector<8x128xf32>
    %46 = arith.negf %45 : vector<8x128xf32>
    %47 = math.exp %46 : vector<8x128xf32>
    %cst_14 = arith.constant 1.000000e+00 : f32
    %48 = vector.broadcast %cst_14 : f32 to vector<8x128xf32>
    %49 = arith.addf %48, %47 : vector<8x128xf32>
    %50 = arith.divf %48, %49 : vector<8x128xf32>
    %51 = vector.extract_strided_slice %40 {offsets = [0, 128], sizes = [8, 128], strides = [1, 1]} : vector<8x384xf32> to vector<8x128xf32>
    %52 = vector.extract_strided_slice %42 {offsets = [0, 128], sizes = [8, 128], strides = [1, 1]} : vector<8x384xf32> to vector<8x128xf32>
    %53 = arith.addf %51, %52 : vector<8x128xf32>
    %54 = arith.negf %53 : vector<8x128xf32>
    %55 = math.exp %54 : vector<8x128xf32>
    %cst_15 = arith.constant 1.000000e+00 : f32
    %56 = vector.broadcast %cst_15 : f32 to vector<8x128xf32>
    %57 = arith.addf %56, %55 : vector<8x128xf32>
    %58 = arith.divf %56, %57 : vector<8x128xf32>
    %59 = vector.extract_strided_slice %40 {offsets = [0, 256], sizes = [8, 128], strides = [1, 1]} : vector<8x384xf32> to vector<8x128xf32>
    %60 = vector.extract_strided_slice %42 {offsets = [0, 256], sizes = [8, 128], strides = [1, 1]} : vector<8x384xf32> to vector<8x128xf32>
    %61 = arith.addf %60, %10 : vector<8x128xf32>
    %62 = arith.mulf %50, %61 : vector<8x128xf32>
    %63 = arith.addf %59, %62 : vector<8x128xf32>
    %64 = math.tanh %63 : vector<8x128xf32>
    %65 = arith.subf %39, %64 : vector<8x128xf32>
    %66 = arith.mulf %58, %65 : vector<8x128xf32>
    %67 = arith.addf %64, %66 : vector<8x128xf32>
    %68 = vector.extract_strided_slice %7 {offsets = [16, 0], sizes = [8, 384], strides = [1, 1]} : vector<64x384xf32> to vector<8x384xf32>
    %69 = arith.truncf %67 : vector<8x128xf32> to vector<8x128xbf16>
    %cst_16 = arith.constant dense<0.000000e+00> : vector<8x384xf32>
    %70 = tpu.matmul %69, %2, %cst_16 {dimension_numbers = #tpu.dot_dimension_numbers<[1], [0], [0], [1], [0, 0, 1, 1], [], []>} : vector<8x128xbf16>, vector<128x384xbf16>, vector<8x384xf32> -> vector<8x384xf32>
    %71 = vector.extract_strided_slice %68 {offsets = [0, 0], sizes = [8, 128], strides = [1, 1]} : vector<8x384xf32> to vector<8x128xf32>
    %72 = vector.extract_strided_slice %70 {offsets = [0, 0], sizes = [8, 128], strides = [1, 1]} : vector<8x384xf32> to vector<8x128xf32>
    %73 = arith.addf %71, %72 : vector<8x128xf32>
    %74 = arith.negf %73 : vector<8x128xf32>
    %75 = math.exp %74 : vector<8x128xf32>
    %cst_17 = arith.constant 1.000000e+00 : f32
    %76 = vector.broadcast %cst_17 : f32 to vector<8x128xf32>
    %77 = arith.addf %76, %75 : vector<8x128xf32>
    %78 = arith.divf %76, %77 : vector<8x128xf32>
    %79 = vector.extract_strided_slice %68 {offsets = [0, 128], sizes = [8, 128], strides = [1, 1]} : vector<8x384xf32> to vector<8x128xf32>
    %80 = vector.extract_strided_slice %70 {offsets = [0, 128], sizes = [8, 128], strides = [1, 1]} : vector<8x384xf32> to vector<8x128xf32>
    %81 = arith.addf %79, %80 : vector<8x128xf32>
    %82 = arith.negf %81 : vector<8x128xf32>
    %83 = math.exp %82 : vector<8x128xf32>
    %cst_18 = arith.constant 1.000000e+00 : f32
    %84 = vector.broadcast %cst_18 : f32 to vector<8x128xf32>
    %85 = arith.addf %84, %83 : vector<8x128xf32>
    %86 = arith.divf %84, %85 : vector<8x128xf32>
    %87 = vector.extract_strided_slice %68 {offsets = [0, 256], sizes = [8, 128], strides = [1, 1]} : vector<8x384xf32> to vector<8x128xf32>
    %88 = vector.extract_strided_slice %70 {offsets = [0, 256], sizes = [8, 128], strides = [1, 1]} : vector<8x384xf32> to vector<8x128xf32>
    %89 = arith.addf %88, %10 : vector<8x128xf32>
    %90 = arith.mulf %78, %89 : vector<8x128xf32>
    %91 = arith.addf %87, %90 : vector<8x128xf32>
    %92 = math.tanh %91 : vector<8x128xf32>
    %93 = arith.subf %67, %92 : vector<8x128xf32>
    %94 = arith.mulf %86, %93 : vector<8x128xf32>
    %95 = arith.addf %92, %94 : vector<8x128xf32>
    %96 = vector.extract_strided_slice %7 {offsets = [24, 0], sizes = [8, 384], strides = [1, 1]} : vector<64x384xf32> to vector<8x384xf32>
    %97 = arith.truncf %95 : vector<8x128xf32> to vector<8x128xbf16>
    %cst_19 = arith.constant dense<0.000000e+00> : vector<8x384xf32>
    %98 = tpu.matmul %97, %2, %cst_19 {dimension_numbers = #tpu.dot_dimension_numbers<[1], [0], [0], [1], [0, 0, 1, 1], [], []>} : vector<8x128xbf16>, vector<128x384xbf16>, vector<8x384xf32> -> vector<8x384xf32>
    %99 = vector.extract_strided_slice %96 {offsets = [0, 0], sizes = [8, 128], strides = [1, 1]} : vector<8x384xf32> to vector<8x128xf32>
    %100 = vector.extract_strided_slice %98 {offsets = [0, 0], sizes = [8, 128], strides = [1, 1]} : vector<8x384xf32> to vector<8x128xf32>
    %101 = arith.addf %99, %100 : vector<8x128xf32>
    %102 = arith.negf %101 : vector<8x128xf32>
    %103 = math.exp %102 : vector<8x128xf32>
    %cst_20 = arith.constant 1.000000e+00 : f32
    %104 = vector.broadcast %cst_20 : f32 to vector<8x128xf32>
    %105 = arith.addf %104, %103 : vector<8x128xf32>
    %106 = arith.divf %104, %105 : vector<8x128xf32>
    %107 = vector.extract_strided_slice %96 {offsets = [0, 128], sizes = [8, 128], strides = [1, 1]} : vector<8x384xf32> to vector<8x128xf32>
    %108 = vector.extract_strided_slice %98 {offsets = [0, 128], sizes = [8, 128], strides = [1, 1]} : vector<8x384xf32> to vector<8x128xf32>
    %109 = arith.addf %107, %108 : vector<8x128xf32>
    %110 = arith.negf %109 : vector<8x128xf32>
    %111 = math.exp %110 : vector<8x128xf32>
    %cst_21 = arith.constant 1.000000e+00 : f32
    %112 = vector.broadcast %cst_21 : f32 to vector<8x128xf32>
    %113 = arith.addf %112, %111 : vector<8x128xf32>
    %114 = arith.divf %112, %113 : vector<8x128xf32>
    %115 = vector.extract_strided_slice %96 {offsets = [0, 256], sizes = [8, 128], strides = [1, 1]} : vector<8x384xf32> to vector<8x128xf32>
    %116 = vector.extract_strided_slice %98 {offsets = [0, 256], sizes = [8, 128], strides = [1, 1]} : vector<8x384xf32> to vector<8x128xf32>
    %117 = arith.addf %116, %10 : vector<8x128xf32>
    %118 = arith.mulf %106, %117 : vector<8x128xf32>
    %119 = arith.addf %115, %118 : vector<8x128xf32>
    %120 = math.tanh %119 : vector<8x128xf32>
    %121 = arith.subf %95, %120 : vector<8x128xf32>
    %122 = arith.mulf %114, %121 : vector<8x128xf32>
    %123 = arith.addf %120, %122 : vector<8x128xf32>
    %124 = vector.extract_strided_slice %7 {offsets = [32, 0], sizes = [8, 384], strides = [1, 1]} : vector<64x384xf32> to vector<8x384xf32>
    %125 = arith.truncf %123 : vector<8x128xf32> to vector<8x128xbf16>
    %cst_22 = arith.constant dense<0.000000e+00> : vector<8x384xf32>
    %126 = tpu.matmul %125, %2, %cst_22 {dimension_numbers = #tpu.dot_dimension_numbers<[1], [0], [0], [1], [0, 0, 1, 1], [], []>} : vector<8x128xbf16>, vector<128x384xbf16>, vector<8x384xf32> -> vector<8x384xf32>
    %127 = vector.extract_strided_slice %124 {offsets = [0, 0], sizes = [8, 128], strides = [1, 1]} : vector<8x384xf32> to vector<8x128xf32>
    %128 = vector.extract_strided_slice %126 {offsets = [0, 0], sizes = [8, 128], strides = [1, 1]} : vector<8x384xf32> to vector<8x128xf32>
    %129 = arith.addf %127, %128 : vector<8x128xf32>
    %130 = arith.negf %129 : vector<8x128xf32>
    %131 = math.exp %130 : vector<8x128xf32>
    %cst_23 = arith.constant 1.000000e+00 : f32
    %132 = vector.broadcast %cst_23 : f32 to vector<8x128xf32>
    %133 = arith.addf %132, %131 : vector<8x128xf32>
    %134 = arith.divf %132, %133 : vector<8x128xf32>
    %135 = vector.extract_strided_slice %124 {offsets = [0, 128], sizes = [8, 128], strides = [1, 1]} : vector<8x384xf32> to vector<8x128xf32>
    %136 = vector.extract_strided_slice %126 {offsets = [0, 128], sizes = [8, 128], strides = [1, 1]} : vector<8x384xf32> to vector<8x128xf32>
    %137 = arith.addf %135, %136 : vector<8x128xf32>
    %138 = arith.negf %137 : vector<8x128xf32>
    %139 = math.exp %138 : vector<8x128xf32>
    %cst_24 = arith.constant 1.000000e+00 : f32
    %140 = vector.broadcast %cst_24 : f32 to vector<8x128xf32>
    %141 = arith.addf %140, %139 : vector<8x128xf32>
    %142 = arith.divf %140, %141 : vector<8x128xf32>
    %143 = vector.extract_strided_slice %124 {offsets = [0, 256], sizes = [8, 128], strides = [1, 1]} : vector<8x384xf32> to vector<8x128xf32>
    %144 = vector.extract_strided_slice %126 {offsets = [0, 256], sizes = [8, 128], strides = [1, 1]} : vector<8x384xf32> to vector<8x128xf32>
    %145 = arith.addf %144, %10 : vector<8x128xf32>
    %146 = arith.mulf %134, %145 : vector<8x128xf32>
    %147 = arith.addf %143, %146 : vector<8x128xf32>
    %148 = math.tanh %147 : vector<8x128xf32>
    %149 = arith.subf %123, %148 : vector<8x128xf32>
    %150 = arith.mulf %142, %149 : vector<8x128xf32>
    %151 = arith.addf %148, %150 : vector<8x128xf32>
    %152 = vector.extract_strided_slice %7 {offsets = [40, 0], sizes = [8, 384], strides = [1, 1]} : vector<64x384xf32> to vector<8x384xf32>
    %153 = arith.truncf %151 : vector<8x128xf32> to vector<8x128xbf16>
    %cst_25 = arith.constant dense<0.000000e+00> : vector<8x384xf32>
    %154 = tpu.matmul %153, %2, %cst_25 {dimension_numbers = #tpu.dot_dimension_numbers<[1], [0], [0], [1], [0, 0, 1, 1], [], []>} : vector<8x128xbf16>, vector<128x384xbf16>, vector<8x384xf32> -> vector<8x384xf32>
    %155 = vector.extract_strided_slice %152 {offsets = [0, 0], sizes = [8, 128], strides = [1, 1]} : vector<8x384xf32> to vector<8x128xf32>
    %156 = vector.extract_strided_slice %154 {offsets = [0, 0], sizes = [8, 128], strides = [1, 1]} : vector<8x384xf32> to vector<8x128xf32>
    %157 = arith.addf %155, %156 : vector<8x128xf32>
    %158 = arith.negf %157 : vector<8x128xf32>
    %159 = math.exp %158 : vector<8x128xf32>
    %cst_26 = arith.constant 1.000000e+00 : f32
    %160 = vector.broadcast %cst_26 : f32 to vector<8x128xf32>
    %161 = arith.addf %160, %159 : vector<8x128xf32>
    %162 = arith.divf %160, %161 : vector<8x128xf32>
    %163 = vector.extract_strided_slice %152 {offsets = [0, 128], sizes = [8, 128], strides = [1, 1]} : vector<8x384xf32> to vector<8x128xf32>
    %164 = vector.extract_strided_slice %154 {offsets = [0, 128], sizes = [8, 128], strides = [1, 1]} : vector<8x384xf32> to vector<8x128xf32>
    %165 = arith.addf %163, %164 : vector<8x128xf32>
    %166 = arith.negf %165 : vector<8x128xf32>
    %167 = math.exp %166 : vector<8x128xf32>
    %cst_27 = arith.constant 1.000000e+00 : f32
    %168 = vector.broadcast %cst_27 : f32 to vector<8x128xf32>
    %169 = arith.addf %168, %167 : vector<8x128xf32>
    %170 = arith.divf %168, %169 : vector<8x128xf32>
    %171 = vector.extract_strided_slice %152 {offsets = [0, 256], sizes = [8, 128], strides = [1, 1]} : vector<8x384xf32> to vector<8x128xf32>
    %172 = vector.extract_strided_slice %154 {offsets = [0, 256], sizes = [8, 128], strides = [1, 1]} : vector<8x384xf32> to vector<8x128xf32>
    %173 = arith.addf %172, %10 : vector<8x128xf32>
    %174 = arith.mulf %162, %173 : vector<8x128xf32>
    %175 = arith.addf %171, %174 : vector<8x128xf32>
    %176 = math.tanh %175 : vector<8x128xf32>
    %177 = arith.subf %151, %176 : vector<8x128xf32>
    %178 = arith.mulf %170, %177 : vector<8x128xf32>
    %179 = arith.addf %176, %178 : vector<8x128xf32>
    %180 = vector.extract_strided_slice %7 {offsets = [48, 0], sizes = [8, 384], strides = [1, 1]} : vector<64x384xf32> to vector<8x384xf32>
    %181 = arith.truncf %179 : vector<8x128xf32> to vector<8x128xbf16>
    %cst_28 = arith.constant dense<0.000000e+00> : vector<8x384xf32>
    %182 = tpu.matmul %181, %2, %cst_28 {dimension_numbers = #tpu.dot_dimension_numbers<[1], [0], [0], [1], [0, 0, 1, 1], [], []>} : vector<8x128xbf16>, vector<128x384xbf16>, vector<8x384xf32> -> vector<8x384xf32>
    %183 = vector.extract_strided_slice %180 {offsets = [0, 0], sizes = [8, 128], strides = [1, 1]} : vector<8x384xf32> to vector<8x128xf32>
    %184 = vector.extract_strided_slice %182 {offsets = [0, 0], sizes = [8, 128], strides = [1, 1]} : vector<8x384xf32> to vector<8x128xf32>
    %185 = arith.addf %183, %184 : vector<8x128xf32>
    %186 = arith.negf %185 : vector<8x128xf32>
    %187 = math.exp %186 : vector<8x128xf32>
    %cst_29 = arith.constant 1.000000e+00 : f32
    %188 = vector.broadcast %cst_29 : f32 to vector<8x128xf32>
    %189 = arith.addf %188, %187 : vector<8x128xf32>
    %190 = arith.divf %188, %189 : vector<8x128xf32>
    %191 = vector.extract_strided_slice %180 {offsets = [0, 128], sizes = [8, 128], strides = [1, 1]} : vector<8x384xf32> to vector<8x128xf32>
    %192 = vector.extract_strided_slice %182 {offsets = [0, 128], sizes = [8, 128], strides = [1, 1]} : vector<8x384xf32> to vector<8x128xf32>
    %193 = arith.addf %191, %192 : vector<8x128xf32>
    %194 = arith.negf %193 : vector<8x128xf32>
    %195 = math.exp %194 : vector<8x128xf32>
    %cst_30 = arith.constant 1.000000e+00 : f32
    %196 = vector.broadcast %cst_30 : f32 to vector<8x128xf32>
    %197 = arith.addf %196, %195 : vector<8x128xf32>
    %198 = arith.divf %196, %197 : vector<8x128xf32>
    %199 = vector.extract_strided_slice %180 {offsets = [0, 256], sizes = [8, 128], strides = [1, 1]} : vector<8x384xf32> to vector<8x128xf32>
    %200 = vector.extract_strided_slice %182 {offsets = [0, 256], sizes = [8, 128], strides = [1, 1]} : vector<8x384xf32> to vector<8x128xf32>
    %201 = arith.addf %200, %10 : vector<8x128xf32>
    %202 = arith.mulf %190, %201 : vector<8x128xf32>
    %203 = arith.addf %199, %202 : vector<8x128xf32>
    %204 = math.tanh %203 : vector<8x128xf32>
    %205 = arith.subf %179, %204 : vector<8x128xf32>
    %206 = arith.mulf %198, %205 : vector<8x128xf32>
    %207 = arith.addf %204, %206 : vector<8x128xf32>
    %208 = vector.extract_strided_slice %7 {offsets = [56, 0], sizes = [8, 384], strides = [1, 1]} : vector<64x384xf32> to vector<8x384xf32>
    %209 = arith.truncf %207 : vector<8x128xf32> to vector<8x128xbf16>
    %cst_31 = arith.constant dense<0.000000e+00> : vector<8x384xf32>
    %210 = tpu.matmul %209, %2, %cst_31 {dimension_numbers = #tpu.dot_dimension_numbers<[1], [0], [0], [1], [0, 0, 1, 1], [], []>} : vector<8x128xbf16>, vector<128x384xbf16>, vector<8x384xf32> -> vector<8x384xf32>
    %211 = vector.extract_strided_slice %208 {offsets = [0, 0], sizes = [8, 128], strides = [1, 1]} : vector<8x384xf32> to vector<8x128xf32>
    %212 = vector.extract_strided_slice %210 {offsets = [0, 0], sizes = [8, 128], strides = [1, 1]} : vector<8x384xf32> to vector<8x128xf32>
    %213 = arith.addf %211, %212 : vector<8x128xf32>
    %214 = arith.negf %213 : vector<8x128xf32>
    %215 = math.exp %214 : vector<8x128xf32>
    %cst_32 = arith.constant 1.000000e+00 : f32
    %216 = vector.broadcast %cst_32 : f32 to vector<8x128xf32>
    %217 = arith.addf %216, %215 : vector<8x128xf32>
    %218 = arith.divf %216, %217 : vector<8x128xf32>
    %219 = vector.extract_strided_slice %208 {offsets = [0, 128], sizes = [8, 128], strides = [1, 1]} : vector<8x384xf32> to vector<8x128xf32>
    %220 = vector.extract_strided_slice %210 {offsets = [0, 128], sizes = [8, 128], strides = [1, 1]} : vector<8x384xf32> to vector<8x128xf32>
    %221 = arith.addf %219, %220 : vector<8x128xf32>
    %222 = arith.negf %221 : vector<8x128xf32>
    %223 = math.exp %222 : vector<8x128xf32>
    %cst_33 = arith.constant 1.000000e+00 : f32
    %224 = vector.broadcast %cst_33 : f32 to vector<8x128xf32>
    %225 = arith.addf %224, %223 : vector<8x128xf32>
    %226 = arith.divf %224, %225 : vector<8x128xf32>
    %227 = vector.extract_strided_slice %208 {offsets = [0, 256], sizes = [8, 128], strides = [1, 1]} : vector<8x384xf32> to vector<8x128xf32>
    %228 = vector.extract_strided_slice %210 {offsets = [0, 256], sizes = [8, 128], strides = [1, 1]} : vector<8x384xf32> to vector<8x128xf32>
    %229 = arith.addf %228, %10 : vector<8x128xf32>
    %230 = arith.mulf %218, %229 : vector<8x128xf32>
    %231 = arith.addf %227, %230 : vector<8x128xf32>
    %232 = math.tanh %231 : vector<8x128xf32>
    %233 = arith.subf %207, %232 : vector<8x128xf32>
    %234 = arith.mulf %226, %233 : vector<8x128xf32>
    %235 = arith.addf %232, %234 : vector<8x128xf32>
    %c0_34 = arith.constant 0 : index
    %c0_35 = arith.constant 0 : index
    %c0_36 = arith.constant 0 : index
    %236 = vector.load %arg12[%c0_34, %c0_35, %c0_36] : memref<2x8x128xf32, #tpu.memory_space<vmem>>, vector<1x8x128xf32>
    %237 = vector.shape_cast %236 : vector<1x8x128xf32> to vector<8x128xf32>
    %238 = vector.shape_cast %235 : vector<8x128xf32> to vector<1x8x128xf32>
    tpu.vector_store %arg12[%c0_34, %c0_35, %c0_36], %238 {strides = array<i32>} : memref<2x8x128xf32, #tpu.memory_space<vmem>>, vector<1x8x128xf32>,
    %239 = tpu.concatenate %39, %67, %95, %123, %151, %179, %207, %235 in 0 : vector<8x128xf32>, vector<8x128xf32>, vector<8x128xf32>, vector<8x128xf32>, vector<8x128xf32>, vector<8x128xf32>, vector<8x128xf32>, vector<8x128xf32> -> vector<64x128xf32>
    %c0_37 = arith.constant 0 : index
    %c0_38 = arith.constant 0 : index
    %240 = vector.load %arg5[%c0_37, %c0_38] : memref<128x384xbf16, #tpu.memory_space<vmem>>, vector<128x384xbf16>
    %c0_39 = arith.constant 0 : index
    %c0_40 = arith.constant 0 : index
    %241 = vector.load %arg6[%c0_39, %c0_40] : memref<128x384xbf16, #tpu.memory_space<vmem>>, vector<128x384xbf16>
    %242 = arith.truncf %239 : vector<64x128xf32> to vector<64x128xbf16>
    %cst_41 = arith.constant dense<0.000000e+00> : vector<64x384xf32>
    %243 = tpu.matmul %242, %240, %cst_41 {dimension_numbers = #tpu.dot_dimension_numbers<[1], [0], [0], [1], [0, 0, 1, 1], [], []>} : vector<64x128xbf16>, vector<128x384xbf16>, vector<64x384xf32> -> vector<64x384xf32>
    %c0_42 = arith.constant 0 : index
    %c0_43 = arith.constant 0 : index
    %244 = vector.load %arg7[%c0_42, %c0_43] : memref<1x384xf32, #tpu.memory_space<vmem>>, vector<1x384xf32>
    %245 = vector.broadcast %244 : vector<1x384xf32> to vector<64x384xf32>
    %246 = arith.addf %243, %245 : vector<64x384xf32>
    %c0_44 = arith.constant 0 : index
    %c0_45 = arith.constant 0 : index
    %247 = vector.load %arg8[%c0_44, %c0_45] : memref<1x128xf32, #tpu.memory_space<vmem>>, vector<1x128xf32>
    %248 = vector.shape_cast %247 : vector<1x128xf32> to vector<1x128xf32>
    %249 = vector.broadcast %248 : vector<1x128xf32> to vector<8x128xf32>
    %cst_46 = arith.constant 0.000000e+00 : f32
    %250 = vector.broadcast %cst_46 : f32 to vector<8x128xf32>
    %251 = vector.extract_strided_slice %246 {offsets = [0, 0], sizes = [8, 384], strides = [1, 1]} : vector<64x384xf32> to vector<8x384xf32>
    %252 = arith.truncf %250 : vector<8x128xf32> to vector<8x128xbf16>
    %cst_47 = arith.constant dense<0.000000e+00> : vector<8x384xf32>
    %253 = tpu.matmul %252, %241, %cst_47 {dimension_numbers = #tpu.dot_dimension_numbers<[1], [0], [0], [1], [0, 0, 1, 1], [], []>} : vector<8x128xbf16>, vector<128x384xbf16>, vector<8x384xf32> -> vector<8x384xf32>
    %254 = vector.extract_strided_slice %251 {offsets = [0, 0], sizes = [8, 128], strides = [1, 1]} : vector<8x384xf32> to vector<8x128xf32>
    %255 = vector.extract_strided_slice %253 {offsets = [0, 0], sizes = [8, 128], strides = [1, 1]} : vector<8x384xf32> to vector<8x128xf32>
    %256 = arith.addf %254, %255 : vector<8x128xf32>
    %257 = arith.negf %256 : vector<8x128xf32>
    %258 = math.exp %257 : vector<8x128xf32>
    %cst_48 = arith.constant 1.000000e+00 : f32
    %259 = vector.broadcast %cst_48 : f32 to vector<8x128xf32>
    %260 = arith.addf %259, %258 : vector<8x128xf32>
    %261 = arith.divf %259, %260 : vector<8x128xf32>
    %262 = vector.extract_strided_slice %251 {offsets = [0, 128], sizes = [8, 128], strides = [1, 1]} : vector<8x384xf32> to vector<8x128xf32>
    %263 = vector.extract_strided_slice %253 {offsets = [0, 128], sizes = [8, 128], strides = [1, 1]} : vector<8x384xf32> to vector<8x128xf32>
    %264 = arith.addf %262, %263 : vector<8x128xf32>
    %265 = arith.negf %264 : vector<8x128xf32>
    %266 = math.exp %265 : vector<8x128xf32>
    %cst_49 = arith.constant 1.000000e+00 : f32
    %267 = vector.broadcast %cst_49 : f32 to vector<8x128xf32>
    %268 = arith.addf %267, %266 : vector<8x128xf32>
    %269 = arith.divf %267, %268 : vector<8x128xf32>
    %270 = vector.extract_strided_slice %251 {offsets = [0, 256], sizes = [8, 128], strides = [1, 1]} : vector<8x384xf32> to vector<8x128xf32>
    %271 = vector.extract_strided_slice %253 {offsets = [0, 256], sizes = [8, 128], strides = [1, 1]} : vector<8x384xf32> to vector<8x128xf32>
    %272 = arith.addf %271, %249 : vector<8x128xf32>
    %273 = arith.mulf %261, %272 : vector<8x128xf32>
    %274 = arith.addf %270, %273 : vector<8x128xf32>
    %275 = math.tanh %274 : vector<8x128xf32>
    %276 = arith.subf %250, %275 : vector<8x128xf32>
    %277 = arith.mulf %269, %276 : vector<8x128xf32>
    %278 = arith.addf %275, %277 : vector<8x128xf32>
    %279 = vector.extract_strided_slice %246 {offsets = [8, 0], sizes = [8, 384], strides = [1, 1]} : vector<64x384xf32> to vector<8x384xf32>
    %280 = arith.truncf %278 : vector<8x128xf32> to vector<8x128xbf16>
    %cst_50 = arith.constant dense<0.000000e+00> : vector<8x384xf32>
    %281 = tpu.matmul %280, %241, %cst_50 {dimension_numbers = #tpu.dot_dimension_numbers<[1], [0], [0], [1], [0, 0, 1, 1], [], []>} : vector<8x128xbf16>, vector<128x384xbf16>, vector<8x384xf32> -> vector<8x384xf32>
    %282 = vector.extract_strided_slice %279 {offsets = [0, 0], sizes = [8, 128], strides = [1, 1]} : vector<8x384xf32> to vector<8x128xf32>
    %283 = vector.extract_strided_slice %281 {offsets = [0, 0], sizes = [8, 128], strides = [1, 1]} : vector<8x384xf32> to vector<8x128xf32>
    %284 = arith.addf %282, %283 : vector<8x128xf32>
    %285 = arith.negf %284 : vector<8x128xf32>
    %286 = math.exp %285 : vector<8x128xf32>
    %cst_51 = arith.constant 1.000000e+00 : f32
    %287 = vector.broadcast %cst_51 : f32 to vector<8x128xf32>
    %288 = arith.addf %287, %286 : vector<8x128xf32>
    %289 = arith.divf %287, %288 : vector<8x128xf32>
    %290 = vector.extract_strided_slice %279 {offsets = [0, 128], sizes = [8, 128], strides = [1, 1]} : vector<8x384xf32> to vector<8x128xf32>
    %291 = vector.extract_strided_slice %281 {offsets = [0, 128], sizes = [8, 128], strides = [1, 1]} : vector<8x384xf32> to vector<8x128xf32>
    %292 = arith.addf %290, %291 : vector<8x128xf32>
    %293 = arith.negf %292 : vector<8x128xf32>
    %294 = math.exp %293 : vector<8x128xf32>
    %cst_52 = arith.constant 1.000000e+00 : f32
    %295 = vector.broadcast %cst_52 : f32 to vector<8x128xf32>
    %296 = arith.addf %295, %294 : vector<8x128xf32>
    %297 = arith.divf %295, %296 : vector<8x128xf32>
    %298 = vector.extract_strided_slice %279 {offsets = [0, 256], sizes = [8, 128], strides = [1, 1]} : vector<8x384xf32> to vector<8x128xf32>
    %299 = vector.extract_strided_slice %281 {offsets = [0, 256], sizes = [8, 128], strides = [1, 1]} : vector<8x384xf32> to vector<8x128xf32>
    %300 = arith.addf %299, %249 : vector<8x128xf32>
    %301 = arith.mulf %289, %300 : vector<8x128xf32>
    %302 = arith.addf %298, %301 : vector<8x128xf32>
    %303 = math.tanh %302 : vector<8x128xf32>
    %304 = arith.subf %278, %303 : vector<8x128xf32>
    %305 = arith.mulf %297, %304 : vector<8x128xf32>
    %306 = arith.addf %303, %305 : vector<8x128xf32>
    %307 = vector.extract_strided_slice %246 {offsets = [16, 0], sizes = [8, 384], strides = [1, 1]} : vector<64x384xf32> to vector<8x384xf32>
    %308 = arith.truncf %306 : vector<8x128xf32> to vector<8x128xbf16>
    %cst_53 = arith.constant dense<0.000000e+00> : vector<8x384xf32>
    %309 = tpu.matmul %308, %241, %cst_53 {dimension_numbers = #tpu.dot_dimension_numbers<[1], [0], [0], [1], [0, 0, 1, 1], [], []>} : vector<8x128xbf16>, vector<128x384xbf16>, vector<8x384xf32> -> vector<8x384xf32>
    %310 = vector.extract_strided_slice %307 {offsets = [0, 0], sizes = [8, 128], strides = [1, 1]} : vector<8x384xf32> to vector<8x128xf32>
    %311 = vector.extract_strided_slice %309 {offsets = [0, 0], sizes = [8, 128], strides = [1, 1]} : vector<8x384xf32> to vector<8x128xf32>
    %312 = arith.addf %310, %311 : vector<8x128xf32>
    %313 = arith.negf %312 : vector<8x128xf32>
    %314 = math.exp %313 : vector<8x128xf32>
    %cst_54 = arith.constant 1.000000e+00 : f32
    %315 = vector.broadcast %cst_54 : f32 to vector<8x128xf32>
    %316 = arith.addf %315, %314 : vector<8x128xf32>
    %317 = arith.divf %315, %316 : vector<8x128xf32>
    %318 = vector.extract_strided_slice %307 {offsets = [0, 128], sizes = [8, 128], strides = [1, 1]} : vector<8x384xf32> to vector<8x128xf32>
    %319 = vector.extract_strided_slice %309 {offsets = [0, 128], sizes = [8, 128], strides = [1, 1]} : vector<8x384xf32> to vector<8x128xf32>
    %320 = arith.addf %318, %319 : vector<8x128xf32>
    %321 = arith.negf %320 : vector<8x128xf32>
    %322 = math.exp %321 : vector<8x128xf32>
    %cst_55 = arith.constant 1.000000e+00 : f32
    %323 = vector.broadcast %cst_55 : f32 to vector<8x128xf32>
    %324 = arith.addf %323, %322 : vector<8x128xf32>
    %325 = arith.divf %323, %324 : vector<8x128xf32>
    %326 = vector.extract_strided_slice %307 {offsets = [0, 256], sizes = [8, 128], strides = [1, 1]} : vector<8x384xf32> to vector<8x128xf32>
    %327 = vector.extract_strided_slice %309 {offsets = [0, 256], sizes = [8, 128], strides = [1, 1]} : vector<8x384xf32> to vector<8x128xf32>
    %328 = arith.addf %327, %249 : vector<8x128xf32>
    %329 = arith.mulf %317, %328 : vector<8x128xf32>
    %330 = arith.addf %326, %329 : vector<8x128xf32>
    %331 = math.tanh %330 : vector<8x128xf32>
    %332 = arith.subf %306, %331 : vector<8x128xf32>
    %333 = arith.mulf %325, %332 : vector<8x128xf32>
    %334 = arith.addf %331, %333 : vector<8x128xf32>
    %335 = vector.extract_strided_slice %246 {offsets = [24, 0], sizes = [8, 384], strides = [1, 1]} : vector<64x384xf32> to vector<8x384xf32>
    %336 = arith.truncf %334 : vector<8x128xf32> to vector<8x128xbf16>
    %cst_56 = arith.constant dense<0.000000e+00> : vector<8x384xf32>
    %337 = tpu.matmul %336, %241, %cst_56 {dimension_numbers = #tpu.dot_dimension_numbers<[1], [0], [0], [1], [0, 0, 1, 1], [], []>} : vector<8x128xbf16>, vector<128x384xbf16>, vector<8x384xf32> -> vector<8x384xf32>
    %338 = vector.extract_strided_slice %335 {offsets = [0, 0], sizes = [8, 128], strides = [1, 1]} : vector<8x384xf32> to vector<8x128xf32>
    %339 = vector.extract_strided_slice %337 {offsets = [0, 0], sizes = [8, 128], strides = [1, 1]} : vector<8x384xf32> to vector<8x128xf32>
    %340 = arith.addf %338, %339 : vector<8x128xf32>
    %341 = arith.negf %340 : vector<8x128xf32>
    %342 = math.exp %341 : vector<8x128xf32>
    %cst_57 = arith.constant 1.000000e+00 : f32
    %343 = vector.broadcast %cst_57 : f32 to vector<8x128xf32>
    %344 = arith.addf %343, %342 : vector<8x128xf32>
    %345 = arith.divf %343, %344 : vector<8x128xf32>
    %346 = vector.extract_strided_slice %335 {offsets = [0, 128], sizes = [8, 128], strides = [1, 1]} : vector<8x384xf32> to vector<8x128xf32>
    %347 = vector.extract_strided_slice %337 {offsets = [0, 128], sizes = [8, 128], strides = [1, 1]} : vector<8x384xf32> to vector<8x128xf32>
    %348 = arith.addf %346, %347 : vector<8x128xf32>
    %349 = arith.negf %348 : vector<8x128xf32>
    %350 = math.exp %349 : vector<8x128xf32>
    %cst_58 = arith.constant 1.000000e+00 : f32
    %351 = vector.broadcast %cst_58 : f32 to vector<8x128xf32>
    %352 = arith.addf %351, %350 : vector<8x128xf32>
    %353 = arith.divf %351, %352 : vector<8x128xf32>
    %354 = vector.extract_strided_slice %335 {offsets = [0, 256], sizes = [8, 128], strides = [1, 1]} : vector<8x384xf32> to vector<8x128xf32>
    %355 = vector.extract_strided_slice %337 {offsets = [0, 256], sizes = [8, 128], strides = [1, 1]} : vector<8x384xf32> to vector<8x128xf32>
    %356 = arith.addf %355, %249 : vector<8x128xf32>
    %357 = arith.mulf %345, %356 : vector<8x128xf32>
    %358 = arith.addf %354, %357 : vector<8x128xf32>
    %359 = math.tanh %358 : vector<8x128xf32>
    %360 = arith.subf %334, %359 : vector<8x128xf32>
    %361 = arith.mulf %353, %360 : vector<8x128xf32>
    %362 = arith.addf %359, %361 : vector<8x128xf32>
    %363 = vector.extract_strided_slice %246 {offsets = [32, 0], sizes = [8, 384], strides = [1, 1]} : vector<64x384xf32> to vector<8x384xf32>
    %364 = arith.truncf %362 : vector<8x128xf32> to vector<8x128xbf16>
    %cst_59 = arith.constant dense<0.000000e+00> : vector<8x384xf32>
    %365 = tpu.matmul %364, %241, %cst_59 {dimension_numbers = #tpu.dot_dimension_numbers<[1], [0], [0], [1], [0, 0, 1, 1], [], []>} : vector<8x128xbf16>, vector<128x384xbf16>, vector<8x384xf32> -> vector<8x384xf32>
    %366 = vector.extract_strided_slice %363 {offsets = [0, 0], sizes = [8, 128], strides = [1, 1]} : vector<8x384xf32> to vector<8x128xf32>
    %367 = vector.extract_strided_slice %365 {offsets = [0, 0], sizes = [8, 128], strides = [1, 1]} : vector<8x384xf32> to vector<8x128xf32>
    %368 = arith.addf %366, %367 : vector<8x128xf32>
    %369 = arith.negf %368 : vector<8x128xf32>
    %370 = math.exp %369 : vector<8x128xf32>
    %cst_60 = arith.constant 1.000000e+00 : f32
    %371 = vector.broadcast %cst_60 : f32 to vector<8x128xf32>
    %372 = arith.addf %371, %370 : vector<8x128xf32>
    %373 = arith.divf %371, %372 : vector<8x128xf32>
    %374 = vector.extract_strided_slice %363 {offsets = [0, 128], sizes = [8, 128], strides = [1, 1]} : vector<8x384xf32> to vector<8x128xf32>
    %375 = vector.extract_strided_slice %365 {offsets = [0, 128], sizes = [8, 128], strides = [1, 1]} : vector<8x384xf32> to vector<8x128xf32>
    %376 = arith.addf %374, %375 : vector<8x128xf32>
    %377 = arith.negf %376 : vector<8x128xf32>
    %378 = math.exp %377 : vector<8x128xf32>
    %cst_61 = arith.constant 1.000000e+00 : f32
    %379 = vector.broadcast %cst_61 : f32 to vector<8x128xf32>
    %380 = arith.addf %379, %378 : vector<8x128xf32>
    %381 = arith.divf %379, %380 : vector<8x128xf32>
    %382 = vector.extract_strided_slice %363 {offsets = [0, 256], sizes = [8, 128], strides = [1, 1]} : vector<8x384xf32> to vector<8x128xf32>
    %383 = vector.extract_strided_slice %365 {offsets = [0, 256], sizes = [8, 128], strides = [1, 1]} : vector<8x384xf32> to vector<8x128xf32>
    %384 = arith.addf %383, %249 : vector<8x128xf32>
    %385 = arith.mulf %373, %384 : vector<8x128xf32>
    %386 = arith.addf %382, %385 : vector<8x128xf32>
    %387 = math.tanh %386 : vector<8x128xf32>
    %388 = arith.subf %362, %387 : vector<8x128xf32>
    %389 = arith.mulf %381, %388 : vector<8x128xf32>
    %390 = arith.addf %387, %389 : vector<8x128xf32>
    %391 = vector.extract_strided_slice %246 {offsets = [40, 0], sizes = [8, 384], strides = [1, 1]} : vector<64x384xf32> to vector<8x384xf32>
    %392 = arith.truncf %390 : vector<8x128xf32> to vector<8x128xbf16>
    %cst_62 = arith.constant dense<0.000000e+00> : vector<8x384xf32>
    %393 = tpu.matmul %392, %241, %cst_62 {dimension_numbers = #tpu.dot_dimension_numbers<[1], [0], [0], [1], [0, 0, 1, 1], [], []>} : vector<8x128xbf16>, vector<128x384xbf16>, vector<8x384xf32> -> vector<8x384xf32>
    %394 = vector.extract_strided_slice %391 {offsets = [0, 0], sizes = [8, 128], strides = [1, 1]} : vector<8x384xf32> to vector<8x128xf32>
    %395 = vector.extract_strided_slice %393 {offsets = [0, 0], sizes = [8, 128], strides = [1, 1]} : vector<8x384xf32> to vector<8x128xf32>
    %396 = arith.addf %394, %395 : vector<8x128xf32>
    %397 = arith.negf %396 : vector<8x128xf32>
    %398 = math.exp %397 : vector<8x128xf32>
    %cst_63 = arith.constant 1.000000e+00 : f32
    %399 = vector.broadcast %cst_63 : f32 to vector<8x128xf32>
    %400 = arith.addf %399, %398 : vector<8x128xf32>
    %401 = arith.divf %399, %400 : vector<8x128xf32>
    %402 = vector.extract_strided_slice %391 {offsets = [0, 128], sizes = [8, 128], strides = [1, 1]} : vector<8x384xf32> to vector<8x128xf32>
    %403 = vector.extract_strided_slice %393 {offsets = [0, 128], sizes = [8, 128], strides = [1, 1]} : vector<8x384xf32> to vector<8x128xf32>
    %404 = arith.addf %402, %403 : vector<8x128xf32>
    %405 = arith.negf %404 : vector<8x128xf32>
    %406 = math.exp %405 : vector<8x128xf32>
    %cst_64 = arith.constant 1.000000e+00 : f32
    %407 = vector.broadcast %cst_64 : f32 to vector<8x128xf32>
    %408 = arith.addf %407, %406 : vector<8x128xf32>
    %409 = arith.divf %407, %408 : vector<8x128xf32>
    %410 = vector.extract_strided_slice %391 {offsets = [0, 256], sizes = [8, 128], strides = [1, 1]} : vector<8x384xf32> to vector<8x128xf32>
    %411 = vector.extract_strided_slice %393 {offsets = [0, 256], sizes = [8, 128], strides = [1, 1]} : vector<8x384xf32> to vector<8x128xf32>
    %412 = arith.addf %411, %249 : vector<8x128xf32>
    %413 = arith.mulf %401, %412 : vector<8x128xf32>
    %414 = arith.addf %410, %413 : vector<8x128xf32>
    %415 = math.tanh %414 : vector<8x128xf32>
    %416 = arith.subf %390, %415 : vector<8x128xf32>
    %417 = arith.mulf %409, %416 : vector<8x128xf32>
    %418 = arith.addf %415, %417 : vector<8x128xf32>
    %419 = vector.extract_strided_slice %246 {offsets = [48, 0], sizes = [8, 384], strides = [1, 1]} : vector<64x384xf32> to vector<8x384xf32>
    %420 = arith.truncf %418 : vector<8x128xf32> to vector<8x128xbf16>
    %cst_65 = arith.constant dense<0.000000e+00> : vector<8x384xf32>
    %421 = tpu.matmul %420, %241, %cst_65 {dimension_numbers = #tpu.dot_dimension_numbers<[1], [0], [0], [1], [0, 0, 1, 1], [], []>} : vector<8x128xbf16>, vector<128x384xbf16>, vector<8x384xf32> -> vector<8x384xf32>
    %422 = vector.extract_strided_slice %419 {offsets = [0, 0], sizes = [8, 128], strides = [1, 1]} : vector<8x384xf32> to vector<8x128xf32>
    %423 = vector.extract_strided_slice %421 {offsets = [0, 0], sizes = [8, 128], strides = [1, 1]} : vector<8x384xf32> to vector<8x128xf32>
    %424 = arith.addf %422, %423 : vector<8x128xf32>
    %425 = arith.negf %424 : vector<8x128xf32>
    %426 = math.exp %425 : vector<8x128xf32>
    %cst_66 = arith.constant 1.000000e+00 : f32
    %427 = vector.broadcast %cst_66 : f32 to vector<8x128xf32>
    %428 = arith.addf %427, %426 : vector<8x128xf32>
    %429 = arith.divf %427, %428 : vector<8x128xf32>
    %430 = vector.extract_strided_slice %419 {offsets = [0, 128], sizes = [8, 128], strides = [1, 1]} : vector<8x384xf32> to vector<8x128xf32>
    %431 = vector.extract_strided_slice %421 {offsets = [0, 128], sizes = [8, 128], strides = [1, 1]} : vector<8x384xf32> to vector<8x128xf32>
    %432 = arith.addf %430, %431 : vector<8x128xf32>
    %433 = arith.negf %432 : vector<8x128xf32>
    %434 = math.exp %433 : vector<8x128xf32>
    %cst_67 = arith.constant 1.000000e+00 : f32
    %435 = vector.broadcast %cst_67 : f32 to vector<8x128xf32>
    %436 = arith.addf %435, %434 : vector<8x128xf32>
    %437 = arith.divf %435, %436 : vector<8x128xf32>
    %438 = vector.extract_strided_slice %419 {offsets = [0, 256], sizes = [8, 128], strides = [1, 1]} : vector<8x384xf32> to vector<8x128xf32>
    %439 = vector.extract_strided_slice %421 {offsets = [0, 256], sizes = [8, 128], strides = [1, 1]} : vector<8x384xf32> to vector<8x128xf32>
    %440 = arith.addf %439, %249 : vector<8x128xf32>
    %441 = arith.mulf %429, %440 : vector<8x128xf32>
    %442 = arith.addf %438, %441 : vector<8x128xf32>
    %443 = math.tanh %442 : vector<8x128xf32>
    %444 = arith.subf %418, %443 : vector<8x128xf32>
    %445 = arith.mulf %437, %444 : vector<8x128xf32>
    %446 = arith.addf %443, %445 : vector<8x128xf32>
    %447 = vector.extract_strided_slice %246 {offsets = [56, 0], sizes = [8, 384], strides = [1, 1]} : vector<64x384xf32> to vector<8x384xf32>
    %448 = arith.truncf %446 : vector<8x128xf32> to vector<8x128xbf16>
    %cst_68 = arith.constant dense<0.000000e+00> : vector<8x384xf32>
    %449 = tpu.matmul %448, %241, %cst_68 {dimension_numbers = #tpu.dot_dimension_numbers<[1], [0], [0], [1], [0, 0, 1, 1], [], []>} : vector<8x128xbf16>, vector<128x384xbf16>, vector<8x384xf32> -> vector<8x384xf32>
    %450 = vector.extract_strided_slice %447 {offsets = [0, 0], sizes = [8, 128], strides = [1, 1]} : vector<8x384xf32> to vector<8x128xf32>
    %451 = vector.extract_strided_slice %449 {offsets = [0, 0], sizes = [8, 128], strides = [1, 1]} : vector<8x384xf32> to vector<8x128xf32>
    %452 = arith.addf %450, %451 : vector<8x128xf32>
    %453 = arith.negf %452 : vector<8x128xf32>
    %454 = math.exp %453 : vector<8x128xf32>
    %cst_69 = arith.constant 1.000000e+00 : f32
    %455 = vector.broadcast %cst_69 : f32 to vector<8x128xf32>
    %456 = arith.addf %455, %454 : vector<8x128xf32>
    %457 = arith.divf %455, %456 : vector<8x128xf32>
    %458 = vector.extract_strided_slice %447 {offsets = [0, 128], sizes = [8, 128], strides = [1, 1]} : vector<8x384xf32> to vector<8x128xf32>
    %459 = vector.extract_strided_slice %449 {offsets = [0, 128], sizes = [8, 128], strides = [1, 1]} : vector<8x384xf32> to vector<8x128xf32>
    %460 = arith.addf %458, %459 : vector<8x128xf32>
    %461 = arith.negf %460 : vector<8x128xf32>
    %462 = math.exp %461 : vector<8x128xf32>
    %cst_70 = arith.constant 1.000000e+00 : f32
    %463 = vector.broadcast %cst_70 : f32 to vector<8x128xf32>
    %464 = arith.addf %463, %462 : vector<8x128xf32>
    %465 = arith.divf %463, %464 : vector<8x128xf32>
    %466 = vector.extract_strided_slice %447 {offsets = [0, 256], sizes = [8, 128], strides = [1, 1]} : vector<8x384xf32> to vector<8x128xf32>
    %467 = vector.extract_strided_slice %449 {offsets = [0, 256], sizes = [8, 128], strides = [1, 1]} : vector<8x384xf32> to vector<8x128xf32>
    %468 = arith.addf %467, %249 : vector<8x128xf32>
    %469 = arith.mulf %457, %468 : vector<8x128xf32>
    %470 = arith.addf %466, %469 : vector<8x128xf32>
    %471 = math.tanh %470 : vector<8x128xf32>
    %472 = arith.subf %446, %471 : vector<8x128xf32>
    %473 = arith.mulf %465, %472 : vector<8x128xf32>
    %474 = arith.addf %471, %473 : vector<8x128xf32>
    %c1 = arith.constant 1 : index
    %c0_71 = arith.constant 0 : index
    %c0_72 = arith.constant 0 : index
    %475 = vector.load %arg12[%c1, %c0_71, %c0_72] : memref<2x8x128xf32, #tpu.memory_space<vmem>>, vector<1x8x128xf32>
    %476 = vector.shape_cast %475 : vector<1x8x128xf32> to vector<8x128xf32>
    %477 = vector.shape_cast %474 : vector<8x128xf32> to vector<1x8x128xf32>
    tpu.vector_store %arg12[%c1, %c0_71, %c0_72], %477 {strides = array<i32>} : memref<2x8x128xf32, #tpu.memory_space<vmem>>, vector<1x8x128xf32>,
    %478 = tpu.concatenate %278, %306, %334, %362, %390, %418, %446, %474 in 0 : vector<8x128xf32>, vector<8x128xf32>, vector<8x128xf32>, vector<8x128xf32>, vector<8x128xf32>, vector<8x128xf32>, vector<8x128xf32>, vector<8x128xf32> -> vector<64x128xf32>
    %479 = arith.truncf %478 : vector<64x128xf32> to vector<64x128xbf16>
    %c0_73 = arith.constant 0 : index
    %c0_74 = arith.constant 0 : index
    %480 = vector.load %arg9[%c0_73, %c0_74] : memref<128x128xbf16, #tpu.memory_space<vmem>>, vector<128x128xbf16>
    %cst_75 = arith.constant dense<0.000000e+00> : vector<64x128xf32>
    %481 = tpu.matmul %479, %480, %cst_75 {dimension_numbers = #tpu.dot_dimension_numbers<[1], [0], [0], [1], [0, 0, 1, 1], [], []>} : vector<64x128xbf16>, vector<128x128xbf16>, vector<64x128xf32> -> vector<64x128xf32>
    %c0_76 = arith.constant 0 : index
    %c0_77 = arith.constant 0 : index
    %482 = vector.load %arg10[%c0_76, %c0_77] : memref<1x128xf32, #tpu.memory_space<vmem>>, vector<1x128xf32>
    %483 = vector.broadcast %482 : vector<1x128xf32> to vector<64x128xf32>
    %484 = arith.addf %481, %483 : vector<64x128xf32>
    %cst_78 = arith.constant dense<0xFF800000> : vector<64xf32>
    %485 = vector.multi_reduction <maximumf>, %484, %cst_78 [1] : vector<64x128xf32> to vector<64xf32>
    %486 = vector.shape_cast %485 : vector<64xf32> to vector<64x1xf32>
    %487 = vector.broadcast %486 : vector<64x1xf32> to vector<64x128xf32>
    %488 = arith.subf %484, %487 : vector<64x128xf32>
    %489 = math.exp %488 : vector<64x128xf32>
    %cst_79 = arith.constant dense<0.000000e+00> : vector<64xf32>
    %490 = vector.multi_reduction <add>, %489, %cst_79 [1] : vector<64x128xf32> to vector<64xf32>
    %491 = vector.shape_cast %490 : vector<64xf32> to vector<64x1xf32>
    %492 = math.log %491 : vector<64x1xf32>
    %493 = vector.broadcast %492 : vector<64x1xf32> to vector<64x128xf32>
    %494 = arith.subf %488, %493 : vector<64x128xf32>
    %c0_80 = arith.constant 0 : index
    %c0_81 = arith.constant 0 : index
    %495 = vector.load %arg11[%c0_80, %c0_81] : memref<64x128xf32, #tpu.memory_space<vmem>>, vector<64x128xf32>
    tpu.vector_store %arg11[%c0_80, %c0_81], %494 {strides = array<i32>} : memref<64x128xf32, #tpu.memory_space<vmem>>, vector<64x128xf32>,
    return
  }
}

</mosaic_0001>

<bundles_post_ra>
// kernel: cond_gru_forward.1
= control target key start
LH: loop header
LB: loop body
LE: loop exit
PB: predicated region body
PF: predicated region fallthrough
CT: control target
= control target key end

     0   :  { %18 = vsyncpa [#allocation3], 0  ;;  %s5529_s0 = inlined_call_operand.vmem [shape: f32[64,128], index: 0, kind: input, shape index: {}]   ;;  %s5530_s1 = inlined_call_operand.vmem [shape: bf16[128,384], index: 1, kind: input, shape index: {}]   ;;  %s5531_s2 = inlined_call_operand.vmem [shape: bf16[128,384], index: 2, kind: input, shape index: {}]   ;;  %s5532_s3 = inlined_call_operand.vmem [shape: f32[1,384], index: 3, kind: input, shape index: {}]   ;;  %s5533_s4 = inlined_call_operand.vmem [shape: f32[1,128], index: 4, kind: input, shape index: {}]   ;;  %s5534_s5 = inlined_call_operand.vmem [shape: bf16[128,384], index: 5, kind: input, shape index: {}]   ;;  %s5535_s6 = inlined_call_operand.hbm [shape: bf16[128,384], index: 6, kind: input, shape index: {}]   ;;  %s5536_s7 = inlined_call_operand.vmem [shape: f32[1,384], index: 7, kind: input, shape index: {}]   ;;  %s5537_s8 = inlined_call_operand.vmem [shape: f32[1,128], index: 8, kind: input, shape index: {}]   ;;  %s5538_s9 = inlined_call_operand.hbm [shape: bf16[128,128], index: 9, kind: input, shape index: {}]   ;;  %s5539_s10 = inlined_call_operand.hbm [shape: f32[1,128], index: 10, kind: input, shape index: {}]   ;;  %s5540_s11 = inlined_call_operand.vmem [shape: f32[64,128], index: 11, kind: output, shape index: {0}]   ;;  %s5541_s12 = inlined_call_operand.vmem [shape: f32[2,8,128], index: 12, kind: output, shape index: {1}]  }
   0x1   :  { %19 = vsyncpa [#allocation5], 0  ;;  %s4107_s21 = smov [#allocation4]   ;;  %s4037_s25 = scalar_lea.hbm %s5538_s9, 1024 }
   0x2   :  { %s53_s22 = sshll.u32 %s4107_s21, 4  ;;  %p4038_p0 = scmp.ne.s32.totalorder %s5538_s9, %s4037_s25  ;;  %s54_s22 = int_to_ptr.vmem [resolvable:$true] %s53_s22 }
   0x3   :  { %p4041_p1 = scmp.lt.u32.totalorder %s4037_s25, %s5538_s9 }
   0x5   :  { %p4043_p2 = pnand %p4041_p1, %p4038_p0 }
   0x7   :  { %4046 = shalt.err (!%p4043_p2)
}
   0x8   :  { %s4047_s30 = scalar_lea.vmem %s54_s22, 1024  ;;  %p4052_p4 = scmp.lt.s32.totalorder %s54_s22, %s54_s22 }
   0x9   :  { %p4048_p3 = scmp.ne.s32.totalorder %s54_s22, %s4047_s30  ;;  %p4053_p5 = scmp.lt.s32.totalorder %s4047_s30, %s4047_s30 }
   0xb   :  { %p4054_p6 = por %p4053_p5, %p4052_p4 }
   0xd   :  { %p4055_p7 = pnand %p4054_p6, %p4048_p3 }
   0xf   :  { %4058 = shalt.err (!%p4055_p7)
}
  0x10   :  { %s4108_s13 = smov 64   ;;  %s4109_s14 = smov 4  }
  0x11   :  { %59 = dma.hbm_to_vmem [thread:$0]  %s5538_s9, 1024, %s54_s22, [#allocation5], %s4108_s13, %s4108_s13, %s4109_s14  }
  0x12   :  { %s4110_s17 = smov [#allocation2]   ;;  %s4059_s21 = scalar_lea.hbm %s5535_s6, 3072 }
  0x13   :  { %s37_s18 = sshll.u32 %s4110_s17, 4  ;;  %p4060_p8 = scmp.ne.s32.totalorder %s5535_s6, %s4059_s21  ;;  %s38_s18 = int_to_ptr.vmem [resolvable:$true] %s37_s18 }
  0x14   :  { %p4063_p9 = scmp.lt.u32.totalorder %s4059_s21, %s5535_s6 }
  0x16   :  { %p4065_p10 = pnand %p4063_p9, %p4060_p8 }
  0x18   :  { %4068 = shalt.err (!%p4065_p10)
}
  0x19   :  { %s4069_s27 = scalar_lea.vmem %s38_s18, 3072  ;;  %p4074_p12 = scmp.lt.s32.totalorder %s38_s18, %s38_s18 }
  0x1a   :  { %p4070_p11 = scmp.ne.s32.totalorder %s38_s18, %s4069_s27  ;;  %p4075_p13 = scmp.lt.s32.totalorder %s4069_s27, %s4069_s27 }
  0x1c   :  { %p4076_p0 = por %p4075_p13, %p4074_p12 }
  0x1e   :  { %p4077_p1 = pnand %p4076_p0, %p4070_p11 }
  0x20   :  { %4080 = shalt.err (!%p4077_p1)
}
  0x21   :  { %s4111_s9 = smov 192   ;;  %s4112_s22 = smov 12  }
  0x22   :  { %43 = dma.hbm_to_vmem [thread:$0]  %s5535_s6, 3072, %s38_s18, [#allocation3], %s4111_s9, %s4111_s9, %s4112_s22  }
  0x23   :  { %s4113_s30 = smov [#allocation6]   ;;  %s4081_s16 = scalar_lea.hbm %s5539_s10, 16 }
  0x24   :  { %s66_s13 = sshll.u32 %s4113_s30, 4  ;;  %p4082_p2 = scmp.ne.s32.totalorder %s5539_s10, %s4081_s16  ;;  %s67_s13 = int_to_ptr.vmem [resolvable:$true] %s66_s13 }
  0x25   :  { %p4085_p3 = scmp.lt.u32.totalorder %s4081_s16, %s5539_s10 }
  0x27   :  { %p4087_p4 = pnand %p4085_p3, %p4082_p2 }
  0x29   :  { %4090 = shalt.err (!%p4087_p4)
}
  0x2a   :  { %s4091_s23 = scalar_lea.vmem %s67_s13, 16  ;;  %s4095_s6 = scalar_lea.vmem %s67_s13, 32 }
  0x2b   :  { %p4092_p5 = scmp.ne.s32.totalorder %s67_s13, %s4091_s23  ;;  %p4096_p6 = scmp.lt.s32.totalorder %s67_s13, %s67_s13 }
  0x2c   :  { %p4097_p7 = scmp.lt.s32.totalorder %s4095_s6, %s4091_s23 }
  0x2e   :  { %p4098_p8 = por %p4097_p7, %p4096_p6 }
  0x30   :  { %p4099_p9 = pnand %p4098_p8, %p4092_p5 }
  0x32   :  { %4102 = shalt.err (!%p4099_p9)
}
  0x33   :  { %69 = dma.hbm_to_vmem [thread:$0]  %s5539_s10, 16, %s67_s13, [#allocation5]  }
  0x34   :  { %4103 = dma.done.wait [#allocation3], 3072  }
  0x35   :  { %4104 = vsyncadd [#allocation3], 4294964224 }
  0x36   :  { %4105 = dma.done.wait [#allocation5], 1040  }
  0x37   :  { %4106 = vsyncadd [#allocation5], 4294966256  ;;  %v5545_v0 = vmov 0   ;;  %v3669_v1 = vld [vmem:[%s5530_s1 + $0x4] ss:$12 sps:$4 sm:$0xff]   ;;  %v81_v33 = vld [vmem:[%s5529_s0 + $0x8] sm:$0xff]  ;;  %v158_v62 = vlaneseq }
  0x38   :  { %333 = vmatprep.mubr.bf16.mxu1 %v5545_v0  ;;  %606 = vmatprep.mubr.bf16.mxu0 %v5545_v0  ;;  %v3671_v2 = vld [vmem:[%s5530_s1] ss:$12 sps:$4 sm:$0xff]   ;;  %v4229_v3 = vld [vmem:[%s5531_s2 + $0x4] ss:$12 sps:$4 sm:$0xff]   ;;  %v3675_v5 = vld [vmem:[%s5530_s1 + $0x1c] ss:$12 sps:$4 sm:$0xff]  }
  0x39   :  { %301 = vmatprep.subr.bf16.mxu1 %v3669_v1  ;;  %v4234_v4 = vld [vmem:[%s5531_s2] ss:$12 sps:$4 sm:$0xff]   ;;  %v3677_v6 = vld [vmem:[%s5530_s1 + $0x18] ss:$12 sps:$4 sm:$0xff]   ;;  %574 = vmatprep.subr.bf16.mxu0 %v4229_v3  ;;  %v4246_v7 = vld [vmem:[%s5531_s2 + $0x1c] ss:$12 sps:$4 sm:$0xff]  }
  0x3a   :  { %302 = vmatpush1.bf16.msra.mxu1 %v3671_v2  ;;  %575 = vmatpush1.bf16.msra.mxu0 %v4234_v4  ;;  %v4252_v8 = vld [vmem:[%s5531_s2 + $0x18] ss:$12 sps:$4 sm:$0xff]   ;;  %v3681_v9 = vld [vmem:[%s5530_s1 + $0x34] ss:$12 sps:$4 sm:$0xff]   ;;  %v3683_v10 = vld [vmem:[%s5530_s1 + $0x30] ss:$12 sps:$4 sm:$0xff]  }
  0x3b   :  { %303 = vmatprep.subr.bf16.mxu1 %v3675_v5  ;;  %576 = vmatprep.subr.bf16.mxu0 %v4246_v7  ;;  %v4264_v11 = vld [vmem:[%s5531_s2 + $0x34] ss:$12 sps:$4 sm:$0xff]   ;;  %v3687_v12 = vld [vmem:[%s5530_s1 + $0x4c] ss:$12 sps:$4 sm:$0xff]   ;;  %v4273_v13 = vld [vmem:[%s5531_s2 + $0x30] ss:$12 sps:$4 sm:$0xff]  }
  0x3c   :  { %v4279_v14 = vld [vmem:[%s5531_s2 + $0x4c] ss:$12 sps:$4 sm:$0xff]   ;;  %v3689_v15 = vld [vmem:[%s5530_s1 + $0x48] ss:$12 sps:$4 sm:$0xff]   ;;  %v3693_v16 = vld [vmem:[%s5530_s1 + $0x64] ss:$12 sps:$4 sm:$0xff]  }
  0x3d   :  { %v4291_v17 = vld [vmem:[%s5531_s2 + $0x48] ss:$12 sps:$4 sm:$0xff]   ;;  %v4297_v18 = vld [vmem:[%s5531_s2 + $0x64] ss:$12 sps:$4 sm:$0xff]   ;;  %v3695_v19 = vld [vmem:[%s5530_s1 + $0x60] ss:$12 sps:$4 sm:$0xff]  }
  0x3e   :  { %304 = vmatpush1.bf16.msra.mxu1 %v3677_v6  ;;  %577 = vmatpush1.bf16.msra.mxu0 %v4252_v8  ;;  %v3699_v20 = vld [vmem:[%s5530_s1 + $0x7c] ss:$12 sps:$4 sm:$0xff]   ;;  %v4309_v21 = vld [vmem:[%s5531_s2 + $0x60] ss:$12 sps:$4 sm:$0xff]   ;;  %v3701_v23 = vld [vmem:[%s5530_s1 + $0x78] ss:$12 sps:$4 sm:$0xff]  }
  0x3f   :  { %305 = vmatprep.subr.bf16.mxu1 %v3681_v9  ;;  %578 = vmatprep.subr.bf16.mxu0 %v4264_v11  ;;  %v4315_v22 = vld [vmem:[%s5531_s2 + $0x7c] ss:$12 sps:$4 sm:$0xff]   ;;  %v3705_v24 = vld [vmem:[%s5530_s1 + $0x94] ss:$12 sps:$4 sm:$0xff]   ;;  %v4327_v25 = vld [vmem:[%s5531_s2 + $0x78] ss:$12 sps:$4 sm:$0xff]  }
  0x40   :  { %v4333_v26 = vld [vmem:[%s5531_s2 + $0x94] ss:$12 sps:$4 sm:$0xff]   ;;  %v3707_v27 = vld [vmem:[%s5530_s1 + $0x90] ss:$12 sps:$4 sm:$0xff]   ;;  %v3711_v29 = vld [vmem:[%s5530_s1 + $0xac] ss:$12 sps:$4 sm:$0xff]  }
  0x41   :  { %v4341_v28 = vld [vmem:[%s5531_s2 + $0x90] ss:$12 sps:$4 sm:$0xff]   ;;  %v3713_v30 = vld [vmem:[%s5530_s1 + $0xa8] ss:$12 sps:$4 sm:$0xff]   ;;  %v4354_v31 = vld [vmem:[%s5531_s2 + $0xac] ss:$12 sps:$4 sm:$0xff]  }
  0x42   :  { %306 = vmatpush1.bf16.msra.mxu1 %v3683_v10  ;;  %579 = vmatpush1.bf16.msra.mxu0 %v4273_v13  ;;  %v80_v32 = vld [vmem:[%s5529_s0] sm:$0xff]  ;;  %v3717_v34 = vld [vmem:[%s5530_s1 + $0x8] ss:$12 sps:$4 sm:$0xff]   ;;  %v83_v39 = vld [vmem:[%s5529_s0 + $0x18] sm:$0xff]  ;;  %v5547_v54 = vmov 0.0   ;;  %vm4116_vm0 = vmmov 0  }
  0x43   :  { %307 = vmatprep.subr.bf16.mxu1 %v3687_v12  ;;  %580 = vmatprep.subr.bf16.mxu0 %v4279_v14  ;;  %v4369_v35 = vld [vmem:[%s5531_s2 + $0xa8] ss:$12 sps:$4 sm:$0xff]   ;;  %v152_v36 = vpack.c.bf16 %v81_v33, %v80_v32  ;;  %v3718_v37 = vld [vmem:[%s5530_s1 + $0x20] ss:$12 sps:$4 sm:$0xff]   ;;  %v3719_v40 = vld [vmem:[%s5530_s1 + $0x38] ss:$12 sps:$4 sm:$0xff]  }
  0x44   :  { %v82_v38 = vld [vmem:[%s5529_s0 + $0x10] sm:$0xff]  ;;  %v84_v43 = vld [vmem:[%s5529_s0 + $0x20] sm:$0xff]  ;;  %v85_v44 = vld [vmem:[%s5529_s0 + $0x28] sm:$0xff]  ;;  %v4512_v63 = vshrl.u32 %v158_v62, 7 }
  0x45   :  { %v153_v41 = vpack.c.bf16 %v83_v39, %v82_v38  ;;  %v3720_v42 = vld [vmem:[%s5530_s1 + $0x50] ss:$12 sps:$4 sm:$0xff]   ;;  %v3721_v45 = vld [vmem:[%s5530_s1 + $0x68] ss:$12 sps:$4 sm:$0xff]   ;;  %v154_v46 = vpack.c.bf16 %v85_v44, %v84_v43  ;;  %v3722_v47 = vld [vmem:[%s5530_s1 + $0x80] ss:$12 sps:$4 sm:$0xff]  }
  0x46   :  { %308 = vmatpush1.bf16.msra.mxu1 %v3689_v15  ;;  %581 = vmatpush1.bf16.msra.mxu0 %v4291_v17  ;;  %v86_v48 = vld [vmem:[%s5529_s0 + $0x30] sm:$0xff]  ;;  %v87_v49 = vld [vmem:[%s5529_s0 + $0x38] sm:$0xff]  ;;  %v4444_v55 = vld [vmem:[%s5531_s2 + $0x20] ss:$12 sps:$4 sm:$0xff]   ;;  %5551 = vst [vmem:[#allocation9_spill] sm:$0xff] %v4512_v63  ;;  %v5544_v1 = vsub.s32 0, %v4512_v63 }
  0x47   :  { %309 = vmatprep.subr.bf16.mxu1 %v3693_v16  ;;  %582 = vmatprep.subr.bf16.mxu0 %v4297_v18  ;;  %v3723_v50 = vld [vmem:[%s5530_s1 + $0x98] ss:$12 sps:$4 sm:$0xff]   ;;  %v155_v51 = vpack.c.bf16 %v87_v49, %v86_v48  ;;  %v3724_v52 = vld [vmem:[%s5530_s1 + $0xb0] ss:$12 sps:$4 sm:$0xff]   ;;  %v4433_v53 = vld [vmem:[%s5531_s2 + $0x8] ss:$12 sps:$4 sm:$0xff]  }
  0x48   :  { %v4451_v56 = vld [vmem:[%s5531_s2 + $0x38] ss:$12 sps:$4 sm:$0xff]   ;;  %v4458_v57 = vld [vmem:[%s5531_s2 + $0x50] ss:$12 sps:$4 sm:$0xff]   ;;  %v4467_v58 = vld [vmem:[%s5531_s2 + $0x68] ss:$12 sps:$4 sm:$0xff]  }
  0x49   :  { %v4474_v59 = vld [vmem:[%s5531_s2 + $0x80] ss:$12 sps:$4 sm:$0xff]   ;;  %v4481_v60 = vld [vmem:[%s5531_s2 + $0x98] ss:$12 sps:$4 sm:$0xff]   ;;  %v4488_v61 = vld [vmem:[%s5531_s2 + $0xb0] ss:$12 sps:$4 sm:$0xff]  }
  0x4a   :  { %310 = vmatpush1.bf16.msra.mxu1 %v3695_v19  ;;  %583 = vmatpush1.bf16.msra.mxu0 %v4309_v21  ;;  %v156_v2 = vld [vmem:[%s5532_s3] sm:$0x7]  ;;  %v5543_v5 = vsub.s32 1, %v4512_v63 }
  0x4b   :  { %311 = vmatprep.subr.bf16.mxu1 %v3699_v20  ;;  %584 = vmatprep.subr.bf16.mxu0 %v4315_v22  ;;  %v161_v6 = vrot.slane %v156_v2, %v5544_v1 }
  0x4c   :  { %v165_v9 = vrot.slane %v156_v2, %v5543_v5 }
  0x4e   :  { %312 = vmatpush1.bf16.msra.mxu1 %v3701_v23  ;;  %585 = vmatpush1.bf16.msra.mxu0 %v4327_v25 }
  0x4f   :  { %313 = vmatprep.subr.bf16.mxu1 %v3705_v24  ;;  %586 = vmatprep.subr.bf16.mxu0 %v4333_v26 }
  0x52   :  { %314 = vmatpush1.bf16.msra.mxu1 %v3707_v27  ;;  %587 = vmatpush1.bf16.msra.mxu0 %v4341_v28 }
  0x53   :  { %315 = vmatprep.subr.bf16.mxu1 %v3711_v29  ;;  %588 = vmatprep.subr.bf16.mxu0 %v4354_v31 }
  0x56   :  { %316 = vmatpush1.bf16.msra.mxu1 %v3713_v30  ;;  %589 = vmatpush1.bf16.msra.mxu0 %v4369_v35 }
  0x57   :  { %3267 = vmatprep.subr.bf16.mxu1 %v3717_v34  ;;  %677 = vmatprep.subr.bf16.mxu0 %v4229_v3 }
  0x59   :  { %334 = vmatmul.mubr.bf16.vlgmr.msra.gmra.mrb[0].mxu1 %v152_v36  ;;  %607 = vmatmul.mubr.bf16.vlgmr.msra.gmra.mrb[0].mxu0 %v5545_v0 }
  0x5a   :  { %3268 = vmatpush3.bf16.msra.mxu1 %v3717_v34  ;;  %343 = vmatprep.mubr.bf16.mxu1 %v5545_v0 }
  0x5b   :  { %3269 = vmatprep.subr.bf16.mxu1 %v3718_v37  ;;  %678 = vmatpush1.bf16.msra.mxu0 %v4234_v4 }
  0x5c   :  { %709 = vmatprep.mubr.bf16.mxu0 %v5545_v0  ;;  %679 = vmatprep.subr.bf16.mxu0 %v4246_v7 }
  0x5e   :  { %3270 = vmatpush3.bf16.msra.mxu1 %v3718_v37 }
  0x5f   :  { %3271 = vmatprep.subr.bf16.mxu1 %v3719_v40  ;;  %680 = vmatpush1.bf16.msra.mxu0 %v4252_v8 }
  0x60   :  { %681 = vmatprep.subr.bf16.mxu0 %v4264_v11 }
  0x61   :  { %344 = vmatmul.mubr.bf16.gmra.mrb[4].mxu1 %v153_v41 }
  0x62   :  { %3272 = vmatpush3.bf16.msra.mxu1 %v3719_v40  ;;  %353 = vmatprep.mubr.bf16.mxu1 %v5545_v0 }
  0x63   :  { %3273 = vmatprep.subr.bf16.mxu1 %v3720_v42  ;;  %682 = vmatpush1.bf16.msra.mxu0 %v4273_v13 }
  0x64   :  { %683 = vmatprep.subr.bf16.mxu0 %v4279_v14 }
  0x66   :  { %3274 = vmatpush3.bf16.msra.mxu1 %v3720_v42 }
  0x67   :  { %3275 = vmatprep.subr.bf16.mxu1 %v3721_v45  ;;  %684 = vmatpush1.bf16.msra.mxu0 %v4291_v17 }
  0x68   :  { %685 = vmatprep.subr.bf16.mxu0 %v4297_v18 }
  0x69   :  { %354 = vmatmul.mubr.bf16.gmra.mrb[8].mxu1 %v154_v46 }
  0x6a   :  { %3276 = vmatpush3.bf16.msra.mxu1 %v3721_v45  ;;  %363 = vmatprep.mubr.bf16.mxu1 %v5545_v0 }
  0x6b   :  { %3277 = vmatprep.subr.bf16.mxu1 %v3722_v47  ;;  %686 = vmatpush1.bf16.msra.mxu0 %v4309_v21 }
  0x6c   :  { %687 = vmatprep.subr.bf16.mxu0 %v4315_v22 }
  0x6e   :  { %3278 = vmatpush3.bf16.msra.mxu1 %v3722_v47 }
  0x6f   :  { %3279 = vmatprep.subr.bf16.mxu1 %v3723_v50  ;;  %688 = vmatpush1.bf16.msra.mxu0 %v4327_v25 }
  0x70   :  { %689 = vmatprep.subr.bf16.mxu0 %v4333_v26 }
  0x71   :  { %364 = vmatmul.mubr.bf16.gmra.mrb[12].mxu1 %v155_v51 }
  0x72   :  { %3280 = vmatpush3.bf16.msra.mxu1 %v3723_v50  ;;  %3283 = vmatprep.mubr.bf16.mxu1 %v152_v36 }
  0x73   :  { %3281 = vmatprep.subr.bf16.mxu1 %v3724_v52  ;;  %690 = vmatpush1.bf16.msra.mxu0 %v4341_v28 }
  0x74   :  { %691 = vmatprep.subr.bf16.mxu0 %v4354_v31 }
  0x76   :  { %3282 = vmatpush3.bf16.msra.mxu1 %v3724_v52 }
  0x77   :  { %3291 = vmatprep.subr.bf16.mxu1 %v5547_v54  ;;  %692 = vmatpush1.bf16.msra.mxu0 %v4369_v35 }
  0x78   :  { %780 = vmatprep.subr.bf16.mxu0 %v4229_v3 }
  0x79   :  { %3284 = vmatmul.mubr.bf16.vlgmr.msra.gmra.mrb[16].mxu1 %v153_v41 }
  0x7a   :  { %3292 = vmatpush3.bf16.msra.mxu1 %v4433_v53  ;;  %3287 = vmatprep.mubr.bf16.mxu1 %v154_v46 }
  0x7b   :  { %3293 = vmatprep.subr.bf16.mxu1 %v5547_v54 }
  0x7e   :  { %3294 = vmatpush3.bf16.msra.mxu1 %v4444_v55 }
  0x7f   :  { %3295 = vmatprep.subr.bf16.mxu1 %v5547_v54 }
  0x81   :  { %3288 = vmatmul.mubr.bf16.gmra.mrb[20].mxu1 %v155_v51 }
  0x82   :  { %3296 = vmatpush3.bf16.msra.mxu1 %v4451_v56  ;;  %3307 = vmatprep.mubr.msk.bf16.mxu1 %vm4116_vm0, %v5547_v54 }
  0x83   :  { %3297 = vmatprep.subr.bf16.mxu1 %v5547_v54 }
  0x86   :  { %3298 = vmatpush3.bf16.msra.mxu1 %v4458_v57 }
  0x87   :  { %3299 = vmatprep.subr.bf16.mxu1 %v5547_v54 }
  0x8a   :  { %3300 = vmatpush3.bf16.msra.mxu1 %v4467_v58 }
  0x8b   :  { %3301 = vmatprep.subr.bf16.mxu1 %v5547_v54 }
  0x8e   :  { %3302 = vmatpush3.bf16.msra.mxu1 %v4474_v59 }
  0x8f   :  { %3303 = vmatprep.subr.bf16.mxu1 %v5547_v54 }
  0x92   :  { %3304 = vmatpush3.bf16.msra.mxu1 %v4481_v60 }
  0x93   :  { %3305 = vmatprep.subr.bf16.mxu1 %v5547_v54 }
  0x96   :  { %3306 = vmatpush3.bf16.msra.mxu1 %v4488_v61 }
  0x97   :  { %3311 = vmatprep.subr.bf16.mxu1 %v5547_v54 }
  0x99   :  { %3308 = vmatmul.mubr.bf16.vlgmr.msra.gmra.mrb[24].mxu1 %v5545_v0 }
  0x9a   :  { %3312 = vmatpush3.bf16.msra.mxu1 %v4433_v53  ;;  %3327 = vmatprep.mubr.msk.bf16.mxu1 %vm4116_vm0, %v5547_v54 }
  0x9b   :  { %3313 = vmatprep.subr.bf16.mxu1 %v5547_v54 }
  0x9e   :  { %3314 = vmatpush3.bf16.msra.mxu1 %v4444_v55 }
  0x9f   :  { %3315 = vmatprep.subr.bf16.mxu1 %v5547_v54 }
  0xa2   :  { %3316 = vmatpush3.bf16.msra.mxu1 %v4451_v56 }
  0xa3   :  { %3317 = vmatprep.subr.bf16.mxu1 %v5547_v54 }
  0xa6   :  { %3318 = vmatpush3.bf16.msra.mxu1 %v4458_v57 }
  0xa7   :  { %3319 = vmatprep.subr.bf16.mxu1 %v5547_v54 }
  0xaa   :  { %3320 = vmatpush3.bf16.msra.mxu1 %v4467_v58 }
  0xab   :  { %3321 = vmatprep.subr.bf16.mxu1 %v5547_v54 }
  0xae   :  { %3322 = vmatpush3.bf16.msra.mxu1 %v4474_v59 }
  0xaf   :  { %3323 = vmatprep.subr.bf16.mxu1 %v5547_v54 }
  0xb2   :  { %3324 = vmatpush3.bf16.msra.mxu1 %v4481_v60 }
  0xb3   :  { %3325 = vmatprep.subr.bf16.mxu1 %v5547_v54 }
  0xb6   :  { %3326 = vmatpush3.bf16.msra.mxu1 %v4488_v61 }
  0xb7   :  { %3331 = vmatprep.subr.bf16.mxu1 %v5547_v54 }
 0x12c   :  { %v335_v10 = vpop.f32.mrb[0].mxu1  ;;  %v608_v20 = vpop.f32.mrb[0].mxu0 }
 0x12d   :  { %v336_v12 = vadd.f32 %v335_v10, %v161_v6  ;;  %v337_v15 = vpop.f32.mrb[1].mxu1  ;;  %v610_v29 = vpop.f32.mrb[1].mxu0 }
 0x12e   :  { %v338_v16 = vadd.f32 %v337_v15, %v165_v9  ;;  %v339_v19 = vpop.f32.mrb[2].mxu1  ;;  %v612_v33 = vpop.f32.mrb[2].mxu0 }
 0x12f   :  { %v4523_v23 = vadd.f32 %v339_v19, %v161_v6  ;;  %v655_v24 = vadd.f32 %v608_v20, %v336_v12  ;;  %v341_v27 = vpop.f32.mrb[3].mxu1  ;;  %v613_v34 = vpop.f32.mrb[3].mxu0  ;;  %v5542_v12 = vsub.s32 2, %v4512_v63 }
 0x130   :  { %v4525_v30 = vadd.f32 %v341_v27, %v165_v9  ;;  %v662_v32 = vadd.f32 %v610_v29, %v338_v16 }
 0x131   :  { %v169_v29 = vrot.slane %v156_v2, %v5542_v12 }
 0x134   :  { %v345_v36 = vpop.f32.mrb[4].mxu1 }
 0x135   :  { %v4527_v37 = vadd.f32 %v345_v36, %v161_v6  ;;  %v347_v38 = vpop.f32.mrb[5].mxu1 }
 0x136   :  { %v4529_v39 = vadd.f32 %v347_v38, %v165_v9  ;;  %v349_v40 = vpop.f32.mrb[6].mxu1 }
 0x137   :  { %v4531_v41 = vadd.f32 %v349_v40, %v161_v6  ;;  %v351_v42 = vpop.f32.mrb[7].mxu1  ;;  %v2996_v40 = vmul.f32 -1.442695, %v655_v24  ;;  %v2997_v24 = vmul.f32 -1.442695, %v662_v32 }
 0x138   :  { %v4533_v43 = vadd.f32 %v351_v42, %v165_v9 }
 0x139   :  { %3805 = vpow2.f32 %v2996_v40 }
 0x13a   :  { %3807 = vpow2.f32 %v2997_v24 }
 0x13c   :  { %v355_v44 = vpop.f32.mrb[8].mxu1 }
 0x13d   :  { %v4535_v45 = vadd.f32 %v355_v44, %v161_v6  ;;  %v357_v46 = vpop.f32.mrb[9].mxu1 }
 0x13e   :  { %v4537_v47 = vadd.f32 %v357_v46, %v165_v9  ;;  %v359_v48 = vpop.f32.mrb[10].mxu1 }
 0x13f   :  { %v4539_v49 = vadd.f32 %v359_v48, %v161_v6  ;;  %v361_v50 = vpop.f32.mrb[11].mxu1 }
 0x140   :  { %v4541_v51 = vadd.f32 %v361_v50, %v165_v9 }
 0x144   :  { %v365_v52 = vpop.f32.mrb[12].mxu1 }
 0x145   :  { %v4543_v62 = vadd.f32 %v365_v52, %v161_v6  ;;  %v367_v10 = vpop.f32.mrb[13].mxu1 }
 0x146   :  { %v4546_v15 = vadd.f32 %v367_v10, %v165_v9  ;;  %v369_v16 = vpop.f32.mrb[14].mxu1 }
 0x147   :  { %v4548_v19 = vadd.f32 %v369_v16, %v161_v6  ;;  %v371_v20 = vpop.f32.mrb[15].mxu1 }
 0x148   :  { %v4550_v27 = vadd.f32 %v371_v20, %v165_v9  ;;  %v3806_v20 = vpop.eup %3805 }
 0x14a   :  { %5552 = vst [vmem:[#allocation10_spill] sm:$0xff] %v4550_v27 }
 0x14c   :  { %v3285_v33 = vpop.f32.mrb[16].mxu1 }
 0x14d   :  { %v4554_v34 = vadd.f32 %v3285_v33, %v169_v29  ;;  %v408_v36 = vpop.f32.mrb[17].mxu1  ;;  %v659_v33 = vadd.f32 1.0, %v3806_v20 }
 0x14e   :  { %v3286_v38 = vpop.f32.mrb[18].mxu1  ;;  %v409_v5 = vadd.f32 %v408_v36, %v169_v29 }
 0x14f   :  { %v4556_v42 = vadd.f32 %v3286_v38, %v169_v29  ;;  %v411_v44 = vpop.f32.mrb[19].mxu1  ;;  %3809 = vrcp.f32 %v659_v33  ;;  %v4571_v38 = vld [vmem:[%s5533_s4] ss:$0 sm:$0xff] }
 0x150   :  { %v4558_v46 = vadd.f32 %v411_v44, %v169_v29  ;;  %v3808_v44 = vpop.eup %3807 }
 0x151   :  { %v666_v0 = vadd.f32 1.0, %v3808_v44 }
 0x154   :  { %v3289_v6 = vpop.f32.mrb[20].mxu1 }
 0x155   :  { %v4560_v48 = vadd.f32 %v3289_v6, %v169_v29  ;;  %v424_v9 = vpop.f32.mrb[21].mxu1 }
 0x156   :  { %v4562_v50 = vadd.f32 %v424_v9, %v169_v29  ;;  %v3290_v52 = vpop.f32.mrb[22].mxu1 }
 0x157   :  { %v4564_v2 = vadd.f32 %v3290_v52, %v169_v29  ;;  %v427_v10 = vpop.f32.mrb[23].mxu1 }
 0x158   :  { %v4566_v16 = vadd.f32 %v427_v10, %v169_v29 }
 0x159   :  { %5553 = vst [vmem:[#allocation11_spill] sm:$0xff] %v4564_v2  ;;  %v3810_v52 = vpop.eup %3809 }
 0x16c   :  { %v649_v40 = vpop.f32.mrb[24].mxu1 }
 0x16d   :  { %v669_v6 = vadd.f32 %v4571_v38, %v649_v40  ;;  %v3309_v9 = vpop.f32.mrb[25].mxu1 }
 0x16e   :  { %v652_v12 = vpop.f32.mrb[26].mxu1 }
 0x16f   :  { %v670_v10 = vmul.f32 %v3810_v52, %v669_v6  ;;  %v3310_v1 = vpop.f32.mrb[27].mxu1 }
 0x170   :  { %v5554_v1 = vmov 0.0  }
 0x171   :  { %v671_v32 = vadd.f32 %v670_v10, %v409_v5 }
 0x173   :  { %3811 = vtanh.f32 %v671_v32 }
 0x174   :  { %3813 = vrcp.f32 %v666_v0  ;;  %v5555_v0 = vmov 0  }
 0x17d   :  { %v3812_v20 = vpop.eup %3811 }
 0x17e   :  { %v673_v24 = vsub.f32 0.0, %v3812_v20  ;;  %v3814_v33 = vpop.eup %3813 }
 0x180   :  { %v674_v54 = vmul.f32 %v3814_v33, %v673_v24 }
 0x182   :  { %v4574_v63 = vadd.f32 %v3812_v20, %v674_v54 }
 0x184   :  { %v676_v2 = vpack.c.bf16 %v4574_v63, %v4574_v63 }
 0x186   :  { %710 = vmatmul.mubr.bf16.vlgmr.msra.gmra.mrb[4].mxu0 %v676_v2  ;;  %3328 = vmatmul.mubr.bf16.vlgmr.msra.gmra.mrb[28].mxu1 %v676_v2 }
 0x187   :  { %781 = vmatpush1.bf16.msra.mxu0 %v4234_v4  ;;  %3332 = vmatpush3.bf16.msra.mxu1 %v4433_v53 }
 0x188   :  { %782 = vmatprep.subr.bf16.mxu0 %v4246_v7  ;;  %3333 = vmatprep.subr.bf16.mxu1 %v5554_v1 }
 0x189   :  { %812 = vmatprep.mubr.bf16.mxu0 %v5555_v0  ;;  %3347 = vmatprep.mubr.msk.bf16.mxu1 %vm4116_vm0, %v5554_v1 }
 0x18b   :  { %783 = vmatpush1.bf16.msra.mxu0 %v4252_v8  ;;  %3334 = vmatpush3.bf16.msra.mxu1 %v4444_v55 }
 0x18c   :  { %784 = vmatprep.subr.bf16.mxu0 %v4264_v11  ;;  %3335 = vmatprep.subr.bf16.mxu1 %v5554_v1 }
 0x18f   :  { %785 = vmatpush1.bf16.msra.mxu0 %v4273_v13  ;;  %3336 = vmatpush3.bf16.msra.mxu1 %v4451_v56 }
 0x190   :  { %786 = vmatprep.subr.bf16.mxu0 %v4279_v14  ;;  %3337 = vmatprep.subr.bf16.mxu1 %v5554_v1 }
 0x193   :  { %787 = vmatpush1.bf16.msra.mxu0 %v4291_v17  ;;  %3338 = vmatpush3.bf16.msra.mxu1 %v4458_v57 }
 0x194   :  { %788 = vmatprep.subr.bf16.mxu0 %v4297_v18  ;;  %3339 = vmatprep.subr.bf16.mxu1 %v5554_v1 }
 0x197   :  { %789 = vmatpush1.bf16.msra.mxu0 %v4309_v21  ;;  %3340 = vmatpush3.bf16.msra.mxu1 %v4467_v58 }
 0x198   :  { %790 = vmatprep.subr.bf16.mxu0 %v4315_v22  ;;  %3341 = vmatprep.subr.bf16.mxu1 %v5554_v1 }
 0x19b   :  { %791 = vmatpush1.bf16.msra.mxu0 %v4327_v25  ;;  %3342 = vmatpush3.bf16.msra.mxu1 %v4474_v59 }
 0x19c   :  { %792 = vmatprep.subr.bf16.mxu0 %v4333_v26  ;;  %3343 = vmatprep.subr.bf16.mxu1 %v5554_v1 }
 0x19f   :  { %793 = vmatpush1.bf16.msra.mxu0 %v4341_v28  ;;  %3344 = vmatpush3.bf16.msra.mxu1 %v4481_v60 }
 0x1a0   :  { %794 = vmatprep.subr.bf16.mxu0 %v4354_v31  ;;  %3345 = vmatprep.subr.bf16.mxu1 %v5554_v1 }
 0x1a3   :  { %795 = vmatpush1.bf16.msra.mxu0 %v4369_v35  ;;  %3346 = vmatpush3.bf16.msra.mxu1 %v4488_v61 }
 0x1a4   :  { %883 = vmatprep.subr.bf16.mxu0 %v4229_v3  ;;  %3351 = vmatprep.subr.bf16.mxu1 %v5554_v1 }
 0x259   :  { %v711_v54 = vpop.f32.mrb[4].mxu0  ;;  %v752_v5 = vpop.f32.mrb[28].mxu1 }
 0x25a   :  { %v758_v12 = vadd.f32 %v711_v54, %v4523_v23  ;;  %v713_v29 = vpop.f32.mrb[5].mxu0  ;;  %v3329_v36 = vpop.f32.mrb[29].mxu1  ;;  %v772_v33 = vadd.f32 %v4571_v38, %v752_v5 }
 0x25b   :  { %v765_v2 = vadd.f32 %v713_v29, %v4525_v30  ;;  %v715_v40 = vpop.f32.mrb[6].mxu0  ;;  %v755_v44 = vpop.f32.mrb[30].mxu1 }
 0x25c   :  { %v2998_v6 = vmul.f32 -1.442695, %v758_v12  ;;  %v716_v9 = vpop.f32.mrb[7].mxu0  ;;  %v3330_v52 = vpop.f32.mrb[31].mxu1 }
 0x25d   :  { %v2999_v10 = vmul.f32 -1.442695, %v765_v2 }
 0x25e   :  { %3815 = vpow2.f32 %v2998_v6 }
 0x25f   :  { %3817 = vpow2.f32 %v2999_v10 }
 0x268   :  { %v3816_v32 = vpop.eup %3815 }
 0x269   :  { %v762_v20 = vadd.f32 1.0, %v3816_v32  ;;  %v3818_v24 = vpop.eup %3817 }
 0x26a   :  { %v769_v36 = vadd.f32 1.0, %v3818_v24 }
 0x26b   :  { %3819 = vrcp.f32 %v762_v20 }
 0x275   :  { %v3820_v27 = vpop.eup %3819 }
 0x276   :  { %v773_v23 = vmul.f32 %v3820_v27, %v772_v33 }
 0x278   :  { %v774_v54 = vadd.f32 %v773_v23, %v4558_v46 }
 0x27a   :  { %3821 = vtanh.f32 %v774_v54 }
 0x27b   :  { %3823 = vrcp.f32 %v769_v36 }
 0x284   :  { %v3822_v30 = vpop.eup %3821 }
 0x285   :  { %v776_v12 = vsub.f32 %v4574_v63, %v3822_v30  ;;  %v3824_v29 = vpop.eup %3823 }
 0x287   :  { %v777_v40 = vmul.f32 %v3824_v29, %v776_v12 }
 0x289   :  { %v4618_v2 = vadd.f32 %v3822_v30, %v777_v40  ;;  %v4669_v40 = vld [vmem:[%s5531_s2] ss:$12 sps:$4 sm:$0xff]  }
 0x28b   :  { %v779_v44 = vpack.c.bf16 %v4618_v2, %v4618_v2 }
 0x28d   :  { %813 = vmatmul.mubr.bf16.vlgmr.msra.gmra.mrb[8].mxu0 %v779_v44  ;;  %3348 = vmatmul.mubr.bf16.vlgmr.msra.gmra.mrb[32].mxu1 %v779_v44  ;;  %v4686_v44 = vld [vmem:[%s5531_s2 + $0x18] ss:$12 sps:$4 sm:$0xff]  }
 0x28e   :  { %884 = vmatpush1.bf16.msra.mxu0 %v4234_v4  ;;  %3352 = vmatpush3.bf16.msra.mxu1 %v4433_v53 }
 0x28f   :  { %885 = vmatprep.subr.bf16.mxu0 %v4246_v7  ;;  %3353 = vmatprep.subr.bf16.mxu1 %v5554_v1 }
 0x290   :  { %915 = vmatprep.mubr.bf16.mxu0 %v5555_v0  ;;  %3367 = vmatprep.mubr.msk.bf16.mxu1 %vm4116_vm0, %v5554_v1 }
 0x292   :  { %886 = vmatpush1.bf16.msra.mxu0 %v4252_v8  ;;  %3354 = vmatpush3.bf16.msra.mxu1 %v4444_v55 }
 0x293   :  { %887 = vmatprep.subr.bf16.mxu0 %v4264_v11  ;;  %3355 = vmatprep.subr.bf16.mxu1 %v5554_v1 }
 0x296   :  { %888 = vmatpush1.bf16.msra.mxu0 %v4273_v13  ;;  %3356 = vmatpush3.bf16.msra.mxu1 %v4451_v56 }
 0x297   :  { %889 = vmatprep.subr.bf16.mxu0 %v4279_v14  ;;  %3357 = vmatprep.subr.bf16.mxu1 %v5554_v1 }
 0x29a   :  { %890 = vmatpush1.bf16.msra.mxu0 %v4291_v17  ;;  %3358 = vmatpush3.bf16.msra.mxu1 %v4458_v57 }
 0x29b   :  { %891 = vmatprep.subr.bf16.mxu0 %v4297_v18  ;;  %3359 = vmatprep.subr.bf16.mxu1 %v5554_v1 }
 0x29e   :  { %892 = vmatpush1.bf16.msra.mxu0 %v4309_v21  ;;  %3360 = vmatpush3.bf16.msra.mxu1 %v4467_v58 }
 0x29f   :  { %893 = vmatprep.subr.bf16.mxu0 %v4315_v22  ;;  %3361 = vmatprep.subr.bf16.mxu1 %v5554_v1 }
 0x2a2   :  { %894 = vmatpush1.bf16.msra.mxu0 %v4327_v25  ;;  %3362 = vmatpush3.bf16.msra.mxu1 %v4474_v59 }
 0x2a3   :  { %895 = vmatprep.subr.bf16.mxu0 %v4333_v26  ;;  %3363 = vmatprep.subr.bf16.mxu1 %v5554_v1 }
 0x2a6   :  { %896 = vmatpush1.bf16.msra.mxu0 %v4341_v28  ;;  %3364 = vmatpush3.bf16.msra.mxu1 %v4481_v60 }
 0x2a7   :  { %897 = vmatprep.subr.bf16.mxu0 %v4354_v31  ;;  %3365 = vmatprep.subr.bf16.mxu1 %v5554_v1 }
 0x2aa   :  { %898 = vmatpush1.bf16.msra.mxu0 %v4369_v35  ;;  %3366 = vmatpush3.bf16.msra.mxu1 %v4488_v61 }
 0x2ab   :  { %986 = vmatprep.subr.bf16.mxu0 %v4229_v3  ;;  %3371 = vmatprep.subr.bf16.mxu1 %v5554_v1 }
 0x360   :  { %v814_v4 = vpop.f32.mrb[8].mxu0  ;;  %v855_v7 = vpop.f32.mrb[32].mxu1 }
 0x361   :  { %v861_v8 = vadd.f32 %v814_v4, %v4527_v37  ;;  %v816_v11 = vpop.f32.mrb[9].mxu0  ;;  %v3349_v13 = vpop.f32.mrb[33].mxu1  ;;  %v875_v20 = vadd.f32 %v4571_v38, %v855_v7  ;;  %v4693_v4 = vld [vmem:[%s5531_s2 + $0x34] ss:$12 sps:$4 sm:$0xff]   ;;  %v4700_v7 = vld [vmem:[%s5531_s2 + $0x30] ss:$12 sps:$4 sm:$0xff]  }
 0x362   :  { %v868_v14 = vadd.f32 %v816_v11, %v4529_v39  ;;  %v818_v27 = vpop.f32.mrb[10].mxu0  ;;  %v858_v46 = vpop.f32.mrb[34].mxu1 }
 0x363   :  { %v3000_v5 = vmul.f32 -1.442695, %v861_v8  ;;  %v819_v6 = vpop.f32.mrb[11].mxu0  ;;  %v3350_v9 = vpop.f32.mrb[35].mxu1  ;;  %v4707_v8 = vld [vmem:[%s5531_s2 + $0x4c] ss:$12 sps:$4 sm:$0xff]  }
 0x364   :  { %v3001_v52 = vmul.f32 -1.442695, %v868_v14 }
 0x365   :  { %3825 = vpow2.f32 %v3000_v5 }
 0x366   :  { %3827 = vpow2.f32 %v3001_v52 }
 0x36f   :  { %v3826_v10 = vpop.eup %3825 }
 0x370   :  { %v865_v32 = vadd.f32 1.0, %v3826_v10  ;;  %v3828_v3 = vpop.eup %3827 }
 0x371   :  { %v872_v23 = vadd.f32 1.0, %v3828_v3 }
 0x372   :  { %3829 = vrcp.f32 %v865_v32 }
 0x37c   :  { %v3830_v24 = vpop.eup %3829 }
 0x37d   :  { %v876_v37 = vmul.f32 %v3830_v24, %v875_v20 }
 0x37f   :  { %v877_v33 = vadd.f32 %v876_v37, %v4554_v34  ;;  %v4676_v34 = vld [vmem:[%s5531_s2 + $0x1c] ss:$12 sps:$4 sm:$0xff]  }
 0x381   :  { %3831 = vtanh.f32 %v877_v33 }
 0x382   :  { %3833 = vrcp.f32 %v872_v23  ;;  %v4770_v23 = vld [vmem:[%s5531_s2 + $0x64] ss:$12 sps:$4 sm:$0xff]  }
 0x38b   :  { %v3832_v39 = vpop.eup %3831 }
 0x38c   :  { %v879_v54 = vsub.f32 %v4618_v2, %v3832_v39  ;;  %v3834_v36 = vpop.eup %3833 }
 0x38e   :  { %v880_v30 = vmul.f32 %v3834_v36, %v879_v54  ;;  %v4784_v54 = vld [vmem:[%s5531_s2 + $0x7c] ss:$12 sps:$4 sm:$0xff]   ;;  %v4791_v36 = vld [vmem:[%s5531_s2 + $0x78] ss:$12 sps:$4 sm:$0xff]  }
 0x390   :  { %v4662_v12 = vadd.f32 %v3832_v39, %v880_v30  ;;  %v4777_v39 = vld [vmem:[%s5531_s2 + $0x60] ss:$12 sps:$4 sm:$0xff]  }
 0x391   :  { %v4798_v30 = vld [vmem:[%s5531_s2 + $0x94] ss:$12 sps:$4 sm:$0xff]  }
 0x392   :  { %v882_v29 = vpack.c.bf16 %v4662_v12, %v4662_v12 }
 0x394   :  { %916 = vmatmul.mubr.bf16.vlgmr.msra.gmra.mrb[12].mxu0 %v882_v29  ;;  %3368 = vmatmul.mubr.bf16.vlgmr.msra.gmra.mrb[36].mxu1 %v882_v29  ;;  %v4805_v29 = vld [vmem:[%s5531_s2 + $0x90] ss:$12 sps:$4 sm:$0xff]  }
 0x395   :  { %987 = vmatpush1.bf16.msra.mxu0 %v4669_v40  ;;  %3372 = vmatpush3.bf16.msra.mxu1 %v4433_v53 }
 0x396   :  { %988 = vmatprep.subr.bf16.mxu0 %v4676_v34  ;;  %3373 = vmatprep.subr.bf16.mxu1 %v5554_v1 }
 0x397   :  { %1018 = vmatprep.mubr.bf16.mxu0 %v5555_v0  ;;  %3387 = vmatprep.mubr.msk.bf16.mxu1 %vm4116_vm0, %v5554_v1 }
 0x399   :  { %989 = vmatpush1.bf16.msra.mxu0 %v4686_v44  ;;  %3374 = vmatpush3.bf16.msra.mxu1 %v4444_v55 }
 0x39a   :  { %990 = vmatprep.subr.bf16.mxu0 %v4693_v4  ;;  %3375 = vmatprep.subr.bf16.mxu1 %v5554_v1 }
 0x39d   :  { %991 = vmatpush1.bf16.msra.mxu0 %v4700_v7  ;;  %3376 = vmatpush3.bf16.msra.mxu1 %v4451_v56 }
 0x39e   :  { %992 = vmatprep.subr.bf16.mxu0 %v4707_v8  ;;  %3377 = vmatprep.subr.bf16.mxu1 %v5554_v1 }
 0x3a1   :  { %993 = vmatpush1.bf16.msra.mxu0 %v4291_v17  ;;  %3378 = vmatpush3.bf16.msra.mxu1 %v4458_v57  ;;  %v4732_v17 = vld [vmem:[%s5531_s2 + $0x4] ss:$12 sps:$4 sm:$0xff]  }
 0x3a2   :  { %994 = vmatprep.subr.bf16.mxu0 %v4297_v18  ;;  %3379 = vmatprep.subr.bf16.mxu1 %v5554_v1 }
 0x3a5   :  { %995 = vmatpush1.bf16.msra.mxu0 %v4309_v21  ;;  %3380 = vmatpush3.bf16.msra.mxu1 %v4467_v58 }
 0x3a6   :  { %996 = vmatprep.subr.bf16.mxu0 %v4315_v22  ;;  %3381 = vmatprep.subr.bf16.mxu1 %v5554_v1 }
 0x3a9   :  { %997 = vmatpush1.bf16.msra.mxu0 %v4327_v25  ;;  %3382 = vmatpush3.bf16.msra.mxu1 %v4474_v59 }
 0x3aa   :  { %998 = vmatprep.subr.bf16.mxu0 %v4333_v26  ;;  %3383 = vmatprep.subr.bf16.mxu1 %v5554_v1 }
 0x3ad   :  { %999 = vmatpush1.bf16.msra.mxu0 %v4341_v28  ;;  %3384 = vmatpush3.bf16.msra.mxu1 %v4481_v60 }
 0x3ae   :  { %1000 = vmatprep.subr.bf16.mxu0 %v4354_v31  ;;  %3385 = vmatprep.subr.bf16.mxu1 %v5554_v1 }
 0x3b1   :  { %1001 = vmatpush1.bf16.msra.mxu0 %v4369_v35  ;;  %3386 = vmatpush3.bf16.msra.mxu1 %v4488_v61 }
 0x3b2   :  { %1089 = vmatprep.subr.bf16.mxu0 %v4732_v17  ;;  %3391 = vmatprep.subr.bf16.mxu1 %v5554_v1 }
 0x467   :  { %v917_v18 = vpop.f32.mrb[12].mxu0  ;;  %v958_v21 = vpop.f32.mrb[36].mxu1 }
 0x468   :  { %v964_v22 = vadd.f32 %v917_v18, %v4531_v41  ;;  %v919_v25 = vpop.f32.mrb[13].mxu0  ;;  %v3369_v26 = vpop.f32.mrb[37].mxu1  ;;  %v978_v9 = vadd.f32 %v4571_v38, %v958_v21  ;;  %v4812_v18 = vld [vmem:[%s5531_s2 + $0xac] ss:$12 sps:$4 sm:$0xff]   ;;  %v4819_v21 = vld [vmem:[%s5531_s2 + $0xa8] ss:$12 sps:$4 sm:$0xff]  }
 0x469   :  { %v971_v28 = vadd.f32 %v919_v25, %v4533_v43  ;;  %v921_v31 = vpop.f32.mrb[14].mxu0  ;;  %v961_v35 = vpop.f32.mrb[38].mxu1 }
 0x46a   :  { %v3002_v11 = vmul.f32 -1.442695, %v964_v22  ;;  %v922_v13 = vpop.f32.mrb[15].mxu0  ;;  %v3370_v14 = vpop.f32.mrb[39].mxu1 }
 0x46b   :  { %v3003_v27 = vmul.f32 -1.442695, %v971_v28 }
 0x46c   :  { %3835 = vpow2.f32 %v3002_v11 }
 0x46d   :  { %3837 = vpow2.f32 %v3003_v27 }
 0x476   :  { %v3836_v46 = vpop.eup %3835 }
 0x477   :  { %v968_v5 = vadd.f32 1.0, %v3836_v46  ;;  %v3838_v6 = vpop.eup %3837 }
 0x478   :  { %v975_v32 = vadd.f32 1.0, %v3838_v6 }
 0x479   :  { %3839 = vrcp.f32 %v968_v5 }
 0x483   :  { %v3840_v52 = vpop.eup %3839 }
 0x484   :  { %v979_v41 = vmul.f32 %v3840_v52, %v978_v9 }
 0x486   :  { %v980_v10 = vadd.f32 %v979_v41, %v4556_v42  ;;  %v4763_v42 = vld [vmem:[%s5531_s2 + $0x48] ss:$12 sps:$4 sm:$0xff]  }
 0x488   :  { %3841 = vtanh.f32 %v980_v10 }
 0x489   :  { %3843 = vrcp.f32 %v975_v32 }
 0x492   :  { %v3842_v43 = vpop.eup %3841 }
 0x493   :  { %v982_v3 = vsub.f32 %v4662_v12, %v3842_v43  ;;  %v3844_v20 = vpop.eup %3843 }
 0x495   :  { %v983_v24 = vmul.f32 %v3844_v20, %v982_v3 }
 0x497   :  { %v4741_v37 = vadd.f32 %v3842_v43, %v983_v24 }
 0x499   :  { %v985_v33 = vpack.c.bf16 %v4741_v37, %v4741_v37 }
 0x49b   :  { %1019 = vmatmul.mubr.bf16.vlgmr.msra.gmra.mrb[16].mxu0 %v985_v33  ;;  %3388 = vmatmul.mubr.bf16.vlgmr.msra.gmra.mrb[40].mxu1 %v985_v33 }
 0x49c   :  { %1090 = vmatpush1.bf16.msra.mxu0 %v4669_v40  ;;  %3392 = vmatpush3.bf16.msra.mxu1 %v4433_v53 }
 0x49d   :  { %1091 = vmatprep.subr.bf16.mxu0 %v4676_v34  ;;  %3393 = vmatprep.subr.bf16.mxu1 %v5554_v1 }
 0x49e   :  { %1121 = vmatprep.mubr.bf16.mxu0 %v5555_v0  ;;  %3407 = vmatprep.mubr.msk.bf16.mxu1 %vm4116_vm0, %v5554_v1 }
 0x4a0   :  { %1092 = vmatpush1.bf16.msra.mxu0 %v4686_v44  ;;  %3394 = vmatpush3.bf16.msra.mxu1 %v4444_v55 }
 0x4a1   :  { %1093 = vmatprep.subr.bf16.mxu0 %v4693_v4  ;;  %3395 = vmatprep.subr.bf16.mxu1 %v5554_v1 }
 0x4a4   :  { %1094 = vmatpush1.bf16.msra.mxu0 %v4700_v7  ;;  %3396 = vmatpush3.bf16.msra.mxu1 %v4451_v56 }
 0x4a5   :  { %1095 = vmatprep.subr.bf16.mxu0 %v4707_v8  ;;  %3397 = vmatprep.subr.bf16.mxu1 %v5554_v1 }
 0x4a8   :  { %1096 = vmatpush1.bf16.msra.mxu0 %v4763_v42  ;;  %3398 = vmatpush3.bf16.msra.mxu1 %v4458_v57 }
 0x4a9   :  { %1097 = vmatprep.subr.bf16.mxu0 %v4770_v23  ;;  %3399 = vmatprep.subr.bf16.mxu1 %v5554_v1 }
 0x4ac   :  { %1098 = vmatpush1.bf16.msra.mxu0 %v4777_v39  ;;  %3400 = vmatpush3.bf16.msra.mxu1 %v4467_v58 }
 0x4ad   :  { %1099 = vmatprep.subr.bf16.mxu0 %v4784_v54  ;;  %3401 = vmatprep.subr.bf16.mxu1 %v5554_v1 }
 0x4b0   :  { %1100 = vmatpush1.bf16.msra.mxu0 %v4791_v36  ;;  %3402 = vmatpush3.bf16.msra.mxu1 %v4474_v59 }
 0x4b1   :  { %1101 = vmatprep.subr.bf16.mxu0 %v4798_v30  ;;  %3403 = vmatprep.subr.bf16.mxu1 %v5554_v1 }
 0x4b4   :  { %1102 = vmatpush1.bf16.msra.mxu0 %v4805_v29  ;;  %3404 = vmatpush3.bf16.msra.mxu1 %v4481_v60 }
 0x4b5   :  { %1103 = vmatprep.subr.bf16.mxu0 %v4812_v18  ;;  %3405 = vmatprep.subr.bf16.mxu1 %v5554_v1 }
 0x4b8   :  { %1104 = vmatpush1.bf16.msra.mxu0 %v4819_v21  ;;  %3406 = vmatpush3.bf16.msra.mxu1 %v4488_v61 }
 0x4b9   :  { %1192 = vmatprep.subr.bf16.mxu0 %v4732_v17  ;;  %3411 = vmatprep.subr.bf16.mxu1 %v5554_v1 }
 0x56e   :  { %v1020_v22 = vpop.f32.mrb[16].mxu0  ;;  %v1061_v25 = vpop.f32.mrb[40].mxu1 }
 0x56f   :  { %v1067_v26 = vadd.f32 %v1020_v22, %v4535_v45  ;;  %v1022_v28 = vpop.f32.mrb[17].mxu0  ;;  %v3389_v31 = vpop.f32.mrb[41].mxu1  ;;  %v1081_v41 = vadd.f32 %v4571_v38, %v1061_v25 }
 0x570   :  { %v1074_v35 = vadd.f32 %v1022_v28, %v4537_v47  ;;  %v1024_v11 = vpop.f32.mrb[18].mxu0  ;;  %v1064_v13 = vpop.f32.mrb[42].mxu1 }
 0x571   :  { %v3004_v14 = vmul.f32 -1.442695, %v1067_v26  ;;  %v1025_v27 = vpop.f32.mrb[19].mxu0  ;;  %v3390_v46 = vpop.f32.mrb[43].mxu1 }
 0x572   :  { %v3005_v5 = vmul.f32 -1.442695, %v1074_v35 }
 0x573   :  { %3845 = vpow2.f32 %v3004_v14 }
 0x574   :  { %3847 = vpow2.f32 %v3005_v5 }
 0x57d   :  { %v3846_v6 = vpop.eup %3845 }
 0x57e   :  { %v1071_v9 = vadd.f32 1.0, %v3846_v6  ;;  %v3848_v52 = vpop.eup %3847 }
 0x57f   :  { %v1078_v43 = vadd.f32 1.0, %v3848_v52 }
 0x580   :  { %3849 = vrcp.f32 %v1071_v9 }
 0x58a   :  { %v3850_v10 = vpop.eup %3849 }
 0x58b   :  { %v1082_v45 = vmul.f32 %v3850_v10, %v1081_v41 }
 0x58d   :  { %v1083_v32 = vadd.f32 %v1082_v45, %v4562_v50 }
 0x58f   :  { %3851 = vtanh.f32 %v1083_v32 }
 0x590   :  { %3853 = vrcp.f32 %v1078_v43 }
 0x599   :  { %v3852_v47 = vpop.eup %3851 }
 0x59a   :  { %v1085_v3 = vsub.f32 %v4741_v37, %v3852_v47  ;;  %v3854_v20 = vpop.eup %3853 }
 0x59c   :  { %v1086_v24 = vmul.f32 %v3854_v20, %v1085_v3 }
 0x59e   :  { %v4830_v33 = vadd.f32 %v3852_v47, %v1086_v24 }
 0x5a0   :  { %v1088_v22 = vpack.c.bf16 %v4830_v33, %v4830_v33 }
 0x5a2   :  { %1122 = vmatmul.mubr.bf16.vlgmr.msra.gmra.mrb[20].mxu0 %v1088_v22  ;;  %3408 = vmatmul.mubr.bf16.vlgmr.msra.gmra.mrb[44].mxu1 %v1088_v22  ;;  %v3733_v22 = vld [vmem:[%s5534_s5] ss:$12 sps:$4 sm:$0xff]  }
 0x5a3   :  { %1193 = vmatpush1.bf16.msra.mxu0 %v4669_v40  ;;  %3412 = vmatpush3.bf16.msra.mxu1 %v4433_v53 }
 0x5a4   :  { %1194 = vmatprep.subr.bf16.mxu0 %v4676_v34  ;;  %3413 = vmatprep.subr.bf16.mxu1 %v5554_v1 }
 0x5a5   :  { %1224 = vmatprep.mubr.bf16.mxu0 %v5555_v0  ;;  %3427 = vmatprep.mubr.msk.bf16.mxu1 %vm4116_vm0, %v5554_v1 }
 0x5a7   :  { %1195 = vmatpush1.bf16.msra.mxu0 %v4686_v44  ;;  %3414 = vmatpush3.bf16.msra.mxu1 %v4444_v55 }
 0x5a8   :  { %1196 = vmatprep.subr.bf16.mxu0 %v4693_v4  ;;  %3415 = vmatprep.subr.bf16.mxu1 %v5554_v1 }
 0x5ab   :  { %1197 = vmatpush1.bf16.msra.mxu0 %v4700_v7  ;;  %3416 = vmatpush3.bf16.msra.mxu1 %v4451_v56 }
 0x5ac   :  { %1198 = vmatprep.subr.bf16.mxu0 %v4707_v8  ;;  %3417 = vmatprep.subr.bf16.mxu1 %v5554_v1 }
 0x5af   :  { %1199 = vmatpush1.bf16.msra.mxu0 %v4763_v42  ;;  %3418 = vmatpush3.bf16.msra.mxu1 %v4458_v57 }
 0x5b0   :  { %1200 = vmatprep.subr.bf16.mxu0 %v4770_v23  ;;  %3419 = vmatprep.subr.bf16.mxu1 %v5554_v1 }
 0x5b3   :  { %1201 = vmatpush1.bf16.msra.mxu0 %v4777_v39  ;;  %3420 = vmatpush3.bf16.msra.mxu1 %v4467_v58 }
 0x5b4   :  { %1202 = vmatprep.subr.bf16.mxu0 %v4784_v54  ;;  %3421 = vmatprep.subr.bf16.mxu1 %v5554_v1 }
 0x5b7   :  { %1203 = vmatpush1.bf16.msra.mxu0 %v4791_v36  ;;  %3422 = vmatpush3.bf16.msra.mxu1 %v4474_v59 }
 0x5b8   :  { %1204 = vmatprep.subr.bf16.mxu0 %v4798_v30  ;;  %3423 = vmatprep.subr.bf16.mxu1 %v5554_v1 }
 0x5bb   :  { %1205 = vmatpush1.bf16.msra.mxu0 %v4805_v29  ;;  %3424 = vmatpush3.bf16.msra.mxu1 %v4481_v60 }
 0x5bc   :  { %1206 = vmatprep.subr.bf16.mxu0 %v4812_v18  ;;  %3425 = vmatprep.subr.bf16.mxu1 %v5554_v1 }
 0x5bf   :  { %1207 = vmatpush1.bf16.msra.mxu0 %v4819_v21  ;;  %3426 = vmatpush3.bf16.msra.mxu1 %v4488_v61 }
 0x5c0   :  { %1295 = vmatprep.subr.bf16.mxu0 %v4732_v17  ;;  %3431 = vmatprep.subr.bf16.mxu1 %v5554_v1 }
 0x675   :  { %v1123_v50 = vpop.f32.mrb[20].mxu0  ;;  %v1164_v25 = vpop.f32.mrb[44].mxu1 }
 0x676   :  { %v1170_v26 = vadd.f32 %v1123_v50, %v4539_v49  ;;  %v1125_v28 = vpop.f32.mrb[21].mxu0  ;;  %v3409_v31 = vpop.f32.mrb[45].mxu1  ;;  %v1184_v52 = vadd.f32 %v4571_v38, %v1164_v25  ;;  %v3740_v50 = vld [vmem:[%s5534_s5 + $0x20] ss:$12 sps:$4 sm:$0xff]   ;;  %v1462_v25 = vpack.c.bf16 %v4618_v2, %v4574_v63  ;;  %v3741_v63 = vld [vmem:[%s5534_s5 + $0x30] ss:$12 sps:$4 sm:$0xff]  }
 0x677   :  { %v1177_v35 = vadd.f32 %v1125_v28, %v4541_v51  ;;  %v1127_v11 = vpop.f32.mrb[22].mxu0  ;;  %v1167_v13 = vpop.f32.mrb[46].mxu1  ;;  %v3743_v28 = vld [vmem:[%s5534_s5 + $0x34] ss:$12 sps:$4 sm:$0xff]   ;;  %v3744_v31 = vld [vmem:[%s5534_s5 + $0x38] ss:$12 sps:$4 sm:$0xff]  }
 0x678   :  { %v3006_v14 = vmul.f32 -1.442695, %v1170_v26  ;;  %v1128_v27 = vpop.f32.mrb[23].mxu0  ;;  %v3410_v46 = vpop.f32.mrb[47].mxu1  ;;  %v3737_v26 = vld [vmem:[%s5534_s5 + $0x18] ss:$12 sps:$4 sm:$0xff]  }
 0x679   :  { %v3007_v5 = vmul.f32 -1.442695, %v1177_v35  ;;  %v3747_v2 = vld [vmem:[%s5534_s5 + $0x4c] ss:$12 sps:$4 sm:$0xff]   ;;  %v3748_v35 = vld [vmem:[%s5534_s5 + $0x50] ss:$12 sps:$4 sm:$0xff]  }
 0x67a   :  { %3855 = vpow2.f32 %v3006_v14  ;;  %v3745_v11 = vld [vmem:[%s5534_s5 + $0x48] ss:$12 sps:$4 sm:$0xff]   ;;  %v3751_v13 = vld [vmem:[%s5534_s5 + $0x64] ss:$12 sps:$4 sm:$0xff]   ;;  %v3749_v27 = vld [vmem:[%s5534_s5 + $0x60] ss:$12 sps:$4 sm:$0xff]  }
 0x67b   :  { %3857 = vpow2.f32 %v3007_v5  ;;  %v3752_v14 = vld [vmem:[%s5534_s5 + $0x68] ss:$12 sps:$4 sm:$0xff]   ;;  %v3756_v5 = vld [vmem:[%s5534_s5 + $0x80] ss:$12 sps:$4 sm:$0xff]  }
 0x67c   :  { %v3755_v46 = vld [vmem:[%s5534_s5 + $0x7c] ss:$12 sps:$4 sm:$0xff]  }
 0x684   :  { %v3856_v6 = vpop.eup %3855 }
 0x685   :  { %v1174_v9 = vadd.f32 1.0, %v3856_v6  ;;  %v3858_v17 = vpop.eup %3857  ;;  %v3753_v6 = vld [vmem:[%s5534_s5 + $0x78] ss:$12 sps:$4 sm:$0xff]  }
 0x686   :  { %v1181_v45 = vadd.f32 1.0, %v3858_v17  ;;  %v3760_v17 = vld [vmem:[%s5534_s5 + $0x98] ss:$12 sps:$4 sm:$0xff]  }
 0x687   :  { %3859 = vrcp.f32 %v1174_v9  ;;  %v3759_v9 = vld [vmem:[%s5534_s5 + $0x94] ss:$12 sps:$4 sm:$0xff]  }
 0x691   :  { %v3860_v41 = vpop.eup %3859 }
 0x692   :  { %v1185_v49 = vmul.f32 %v3860_v41, %v1184_v52  ;;  %v3757_v52 = vld [vmem:[%s5534_s5 + $0x90] ss:$12 sps:$4 sm:$0xff]   ;;  %v3763_v41 = vld [vmem:[%s5534_s5 + $0xac] ss:$12 sps:$4 sm:$0xff]  }
 0x694   :  { %v1186_v10 = vadd.f32 %v1185_v49, %v4566_v16  ;;  %v3764_v49 = vld [vmem:[%s5534_s5 + $0xb0] ss:$12 sps:$4 sm:$0xff]  }
 0x696   :  { %3861 = vtanh.f32 %v1186_v10  ;;  %v3761_v10 = vld [vmem:[%s5534_s5 + $0xa8] ss:$12 sps:$4 sm:$0xff]  }
 0x697   :  { %3863 = vrcp.f32 %v1181_v45  ;;  %v1463_v45 = vpack.c.bf16 %v4741_v37, %v4662_v12  ;;  %v5009_v12 = vld [vmem:[#allocation2 + $0x1c] ss:$12 sps:$4 sm:$0xff]   ;;  %v5011_v37 = vld [vmem:[#allocation2 + $0x18] ss:$12 sps:$4 sm:$0xff]  }
 0x6a0   :  { %v3862_v51 = vpop.eup %3861 }
 0x6a1   :  { %v1188_v32 = vsub.f32 %v4830_v33, %v3862_v51  ;;  %v3864_v43 = vpop.eup %3863 }
 0x6a3   :  { %v1189_v47 = vmul.f32 %v3864_v43, %v1188_v32  ;;  %v5003_v32 = vld [vmem:[#allocation2 + $0x4] ss:$12 sps:$4 sm:$0xff]   ;;  %v5005_v43 = vld [vmem:[#allocation2] ss:$12 sps:$4 sm:$0xff]  }
 0x6a5   :  { %v4874_v3 = vadd.f32 %v3862_v51, %v1189_v47  ;;  %v5017_v47 = vld [vmem:[#allocation2 + $0x30] ss:$12 sps:$4 sm:$0xff]  }
 0x6a7   :  { %v1191_v20 = vpack.c.bf16 %v4874_v3, %v4874_v3  ;;  %v1464_v51 = vpack.c.bf16 %v4874_v3, %v4830_v33  ;;  %v5015_v33 = vld [vmem:[#allocation2 + $0x34] ss:$12 sps:$4 sm:$0xff]  }
 0x6a9   :  { %1225 = vmatmul.mubr.bf16.vlgmr.msra.gmra.mrb[24].mxu0 %v1191_v20  ;;  %3428 = vmatmul.mubr.bf16.vlgmr.msra.gmra.mrb[48].mxu1 %v1191_v20  ;;  %v5023_v20 = vld [vmem:[#allocation2 + $0x48] ss:$12 sps:$4 sm:$0xff]  }
 0x6aa   :  { %1296 = vmatpush1.bf16.msra.mxu0 %v4669_v40  ;;  %3432 = vmatpush3.bf16.msra.mxu1 %v4433_v53  ;;  %v3735_v53 = vld [vmem:[%s5534_s5 + $0x4] ss:$12 sps:$4 sm:$0xff]  }
 0x6ab   :  { %1297 = vmatprep.subr.bf16.mxu0 %v4676_v34  ;;  %3433 = vmatprep.subr.bf16.mxu1 %v5554_v1 }
 0x6ac   :  { %1327 = vmatprep.mubr.bf16.mxu0 %v5555_v0  ;;  %3447 = vmatprep.mubr.msk.bf16.mxu1 %vm4116_vm0, %v5554_v1 }
 0x6ae   :  { %1298 = vmatpush1.bf16.msra.mxu0 %v4686_v44  ;;  %3434 = vmatpush3.bf16.msra.mxu1 %v4444_v55  ;;  %v3736_v55 = vld [vmem:[%s5534_s5 + $0x8] ss:$12 sps:$4 sm:$0xff]  }
 0x6af   :  { %1299 = vmatprep.subr.bf16.mxu0 %v4693_v4  ;;  %3435 = vmatprep.subr.bf16.mxu1 %v5554_v1 }
 0x6b2   :  { %1300 = vmatpush1.bf16.msra.mxu0 %v4700_v7  ;;  %3436 = vmatpush3.bf16.msra.mxu1 %v4451_v56 }
 0x6b3   :  { %1301 = vmatprep.subr.bf16.mxu0 %v4707_v8  ;;  %3437 = vmatprep.subr.bf16.mxu1 %v5554_v1 }
 0x6b6   :  { %1302 = vmatpush1.bf16.msra.mxu0 %v4763_v42  ;;  %3438 = vmatpush3.bf16.msra.mxu1 %v4458_v57 }
 0x6b7   :  { %1303 = vmatprep.subr.bf16.mxu0 %v4770_v23  ;;  %3439 = vmatprep.subr.bf16.mxu1 %v5554_v1 }
 0x6ba   :  { %1304 = vmatpush1.bf16.msra.mxu0 %v4777_v39  ;;  %3440 = vmatpush3.bf16.msra.mxu1 %v4467_v58 }
 0x6bb   :  { %1305 = vmatprep.subr.bf16.mxu0 %v4784_v54  ;;  %3441 = vmatprep.subr.bf16.mxu1 %v5554_v1 }
 0x6be   :  { %1306 = vmatpush1.bf16.msra.mxu0 %v4791_v36  ;;  %3442 = vmatpush3.bf16.msra.mxu1 %v4474_v59 }
 0x6bf   :  { %1307 = vmatprep.subr.bf16.mxu0 %v4798_v30  ;;  %3443 = vmatprep.subr.bf16.mxu1 %v5554_v1 }
 0x6c2   :  { %1308 = vmatpush1.bf16.msra.mxu0 %v4805_v29  ;;  %3444 = vmatpush3.bf16.msra.mxu1 %v4481_v60 }
 0x6c3   :  { %1309 = vmatprep.subr.bf16.mxu0 %v4812_v18  ;;  %3445 = vmatprep.subr.bf16.mxu1 %v5554_v1 }
 0x6c6   :  { %1310 = vmatpush1.bf16.msra.mxu0 %v4819_v21  ;;  %3446 = vmatpush3.bf16.msra.mxu1 %v4488_v61 }
 0x6c7   :  { %1611 = vmatprep.subr.bf16.mxu0 %v3735_v53  ;;  %3451 = vmatprep.subr.bf16.mxu1 %v3736_v55  ;;  %v5027_v53 = vld [vmem:[#allocation2 + $0x64] ss:$12 sps:$4 sm:$0xff]  }
 0x77c   :  { %v1226_v56 = vpop.f32.mrb[24].mxu0  ;;  %v1267_v57 = vpop.f32.mrb[48].mxu1 }
 0x77d   :  { %v1273_v58 = vadd.f32 %v1226_v56, %v4543_v62  ;;  %v1228_v59 = vpop.f32.mrb[25].mxu0  ;;  %v3429_v60 = vpop.f32.mrb[49].mxu1  ;;  %v1287_v39 = vadd.f32 %v4571_v38, %v1267_v57  ;;  %v5033_v56 = vld [vmem:[#allocation2 + $0x7c] ss:$12 sps:$4 sm:$0xff]   ;;  %v5035_v57 = vld [vmem:[#allocation2 + $0x78] ss:$12 sps:$4 sm:$0xff]  }
 0x77e   :  { %v1280_v16 = vadd.f32 %v1228_v59, %v4546_v15  ;;  %v1230_v40 = vpop.f32.mrb[26].mxu0  ;;  %v1270_v61 = vpop.f32.mrb[50].mxu1  ;;  %v5041_v59 = vld [vmem:[#allocation2 + $0x8] ss:$12 sps:$4 sm:$0xff]   ;;  %v5043_v60 = vld [vmem:[#allocation2 + $0x90] ss:$12 sps:$4 sm:$0xff]  }
 0x77f   :  { %v3008_v34 = vmul.f32 -1.442695, %v1273_v58  ;;  %v1231_v44 = vpop.f32.mrb[27].mxu0  ;;  %v3430_v4 = vpop.f32.mrb[51].mxu1  ;;  %v5039_v58 = vld [vmem:[#allocation2 + $0x94] ss:$12 sps:$4 sm:$0xff]  }
 0x780   :  { %v3009_v7 = vmul.f32 -1.442695, %v1280_v16  ;;  %v5045_v16 = vld [vmem:[#allocation2 + $0xac] ss:$12 sps:$4 sm:$0xff]   ;;  %v5053_v61 = vld [vmem:[#allocation2 + $0xa8] ss:$12 sps:$4 sm:$0xff]  }
 0x781   :  { %3865 = vpow2.f32 %v3008_v34  ;;  %v5049_v40 = vld [vmem:[#allocation2 + $0x20] ss:$12 sps:$4 sm:$0xff]   ;;  %v5059_v34 = vld [vmem:[#allocation2 + $0x38] ss:$12 sps:$4 sm:$0xff]   ;;  %v5063_v44 = vld [vmem:[#allocation2 + $0x50] ss:$12 sps:$4 sm:$0xff]  }
 0x782   :  { %3867 = vpow2.f32 %v3009_v7  ;;  %v5067_v4 = vld [vmem:[#allocation2 + $0x68] ss:$12 sps:$4 sm:$0xff]   ;;  %v5071_v7 = vld [vmem:[#allocation2 + $0x80] ss:$12 sps:$4 sm:$0xff]  }
 0x78b   :  { %v3866_v8 = vpop.eup %3865 }
 0x78c   :  { %v1277_v42 = vadd.f32 1.0, %v3866_v8  ;;  %v3868_v23 = vpop.eup %3867  ;;  %v5075_v8 = vld [vmem:[#allocation2 + $0x98] ss:$12 sps:$4 sm:$0xff]  }
 0x78d   :  { %v1284_v30 = vadd.f32 1.0, %v3868_v23 }
 0x78e   :  { %3869 = vrcp.f32 %v1277_v42  ;;  %v5079_v42 = vld [vmem:[#allocation2 + $0xb0] ss:$12 sps:$4 sm:$0xff]  }
 0x798   :  { %v3870_v54 = vpop.eup %3869 }
 0x799   :  { %v1288_v62 = vmul.f32 %v3870_v54, %v1287_v39 }
 0x79b   :  { %v1289_v36 = vadd.f32 %v1288_v62, %v4560_v48  ;;  %v3739_v48 = vld [vmem:[%s5534_s5 + $0x1c] ss:$12 sps:$4 sm:$0xff]  }
 0x79d   :  { %3871 = vtanh.f32 %v1289_v36 }
 0x79e   :  { %3873 = vrcp.f32 %v1284_v30  ;;  %v5556_v30 = vld [vmem:[#allocation10_spill] sm:$0xff] }
 0x7a7   :  { %v3872_v15 = vpop.eup %3871 }
 0x7a8   :  { %v1291_v29 = vsub.f32 %v4874_v3, %v3872_v15  ;;  %v3874_v18 = vpop.eup %3873  ;;  %v5021_v3 = vld [vmem:[#allocation2 + $0x4c] ss:$12 sps:$4 sm:$0xff]  }
 0x7aa   :  { %v1292_v21 = vmul.f32 %v3874_v18, %v1291_v29 }
 0x7ac   :  { %v4922_v24 = vadd.f32 %v3872_v15, %v1292_v21 }
 0x7ae   :  { %v1294_v38 = vpack.c.bf16 %v4922_v24, %v4922_v24 }
 0x7b0   :  { %1328 = vmatmul.mubr.bf16.vlgmr.msra.gmra.mrb[28].mxu0 %v1294_v38  ;;  %3448 = vmatmul.mubr.bf16.vlgmr.msra.gmra.mrb[52].mxu1 %v1294_v38 }
 0x7b1   :  { %1612 = vmatpush1.bf16.msra.mxu0 %v3733_v22  ;;  %3452 = vmatpush3.bf16.msra.mxu1 %v3736_v55  ;;  %v5029_v55 = vld [vmem:[#allocation2 + $0x60] ss:$12 sps:$4 sm:$0xff]  }
 0x7b2   :  { %3467 = vmatprep.mubr.bf16.mxu1 %v1462_v25  ;;  %1613 = vmatprep.subr.bf16.mxu0 %v3739_v48 }
 0x7b3   :  { %3453 = vmatprep.subr.bf16.mxu1 %v3740_v50  ;;  %1643 = vmatprep.mubr.bf16.mxu0 %v5555_v0 }
 0x7b5   :  { %1614 = vmatpush1.bf16.msra.mxu0 %v3737_v26  ;;  %3454 = vmatpush3.bf16.msra.mxu1 %v3740_v50 }
 0x7b6   :  { %1615 = vmatprep.subr.bf16.mxu0 %v3743_v28  ;;  %3455 = vmatprep.subr.bf16.mxu1 %v3744_v31 }
 0x7b9   :  { %1616 = vmatpush1.bf16.msra.mxu0 %v3741_v63  ;;  %3456 = vmatpush3.bf16.msra.mxu1 %v3744_v31 }
 0x7ba   :  { %1617 = vmatprep.subr.bf16.mxu0 %v3747_v2  ;;  %3457 = vmatprep.subr.bf16.mxu1 %v3748_v35  ;;  %v5557_v2 = vld [vmem:[#allocation11_spill] sm:$0xff] }
 0x7bd   :  { %1618 = vmatpush1.bf16.msra.mxu0 %v3745_v11  ;;  %3458 = vmatpush3.bf16.msra.mxu1 %v3748_v35 }
 0x7be   :  { %1619 = vmatprep.subr.bf16.mxu0 %v3751_v13  ;;  %3459 = vmatprep.subr.bf16.mxu1 %v3752_v14 }
 0x7c1   :  { %1620 = vmatpush1.bf16.msra.mxu0 %v3749_v27  ;;  %3460 = vmatpush3.bf16.msra.mxu1 %v3752_v14 }
 0x7c2   :  { %1621 = vmatprep.subr.bf16.mxu0 %v3755_v46  ;;  %3461 = vmatprep.subr.bf16.mxu1 %v3756_v5 }
 0x7c5   :  { %1622 = vmatpush1.bf16.msra.mxu0 %v3753_v6  ;;  %3462 = vmatpush3.bf16.msra.mxu1 %v3756_v5 }
 0x7c6   :  { %1623 = vmatprep.subr.bf16.mxu0 %v3759_v9  ;;  %3463 = vmatprep.subr.bf16.mxu1 %v3760_v17 }
 0x7c9   :  { %1624 = vmatpush1.bf16.msra.mxu0 %v3757_v52  ;;  %3464 = vmatpush3.bf16.msra.mxu1 %v3760_v17 }
 0x7ca   :  { %1625 = vmatprep.subr.bf16.mxu0 %v3763_v41  ;;  %3465 = vmatprep.subr.bf16.mxu1 %v3764_v49 }
 0x7cd   :  { %1626 = vmatpush1.bf16.msra.mxu0 %v3761_v10  ;;  %3466 = vmatpush3.bf16.msra.mxu1 %v3764_v49 }
 0x7ce   :  { %3475 = vmatprep.subr.bf16.mxu1 %v5554_v1  ;;  %1884 = vmatprep.subr.bf16.mxu0 %v5003_v32 }
 0x7d0   :  { %1644 = vmatmul.mubr.bf16.vlgmr.msra.gmra.mrb[32].mxu0 %v1462_v25  ;;  %3468 = vmatmul.mubr.bf16.vlgmr.msra.gmra.mrb[56].mxu1 %v1463_v45 }
 0x7d1   :  { %3471 = vmatprep.mubr.bf16.mxu1 %v1464_v51  ;;  %1653 = vmatprep.mubr.bf16.mxu0 %v5555_v0 }
 0x7d2   :  { %1885 = vmatpush1.bf16.msra.mxu0 %v5005_v43  ;;  %3476 = vmatpush3.bf16.msra.mxu1 %v5041_v59 }
 0x7d3   :  { %1886 = vmatprep.subr.bf16.mxu0 %v5009_v12  ;;  %3477 = vmatprep.subr.bf16.mxu1 %v5554_v1 }
 0x7d6   :  { %1887 = vmatpush1.bf16.msra.mxu0 %v5011_v37  ;;  %3478 = vmatpush3.bf16.msra.mxu1 %v5049_v40 }
 0x7d7   :  { %1888 = vmatprep.subr.bf16.mxu0 %v5015_v33  ;;  %3479 = vmatprep.subr.bf16.mxu1 %v5554_v1 }
 0x7d8   :  { %1654 = vmatmul.mubr.bf16.gmra.mrb[36].mxu0 %v1463_v45 }
 0x7d9   :  { %1663 = vmatprep.mubr.bf16.mxu0 %v5555_v0 }
 0x7da   :  { %1889 = vmatpush1.bf16.msra.mxu0 %v5017_v47  ;;  %3480 = vmatpush3.bf16.msra.mxu1 %v5059_v34 }
 0x7db   :  { %1890 = vmatprep.subr.bf16.mxu0 %v5021_v3  ;;  %3481 = vmatprep.subr.bf16.mxu1 %v5554_v1 }
 0x7de   :  { %1891 = vmatpush1.bf16.msra.mxu0 %v5023_v20  ;;  %3482 = vmatpush3.bf16.msra.mxu1 %v5063_v44 }
 0x7df   :  { %1892 = vmatprep.subr.bf16.mxu0 %v5027_v53  ;;  %3483 = vmatprep.subr.bf16.mxu1 %v5554_v1 }
 0x7e0   :  { %1664 = vmatmul.mubr.bf16.gmra.mrb[40].mxu0 %v1464_v51 }
 0x7e1   :  { %1673 = vmatprep.mubr.bf16.mxu0 %v5555_v0 }
 0x7e2   :  { %1893 = vmatpush1.bf16.msra.mxu0 %v5029_v55  ;;  %3484 = vmatpush3.bf16.msra.mxu1 %v5067_v4 }
 0x7e3   :  { %1894 = vmatprep.subr.bf16.mxu0 %v5033_v56  ;;  %3485 = vmatprep.subr.bf16.mxu1 %v5554_v1 }
 0x7e6   :  { %1895 = vmatpush1.bf16.msra.mxu0 %v5035_v57  ;;  %3486 = vmatpush3.bf16.msra.mxu1 %v5071_v7 }
 0x7e7   :  { %1896 = vmatprep.subr.bf16.mxu0 %v5039_v58  ;;  %3487 = vmatprep.subr.bf16.mxu1 %v5554_v1 }
 0x7ea   :  { %1897 = vmatpush1.bf16.msra.mxu0 %v5043_v60  ;;  %3488 = vmatpush3.bf16.msra.mxu1 %v5075_v8 }
 0x7eb   :  { %1898 = vmatprep.subr.bf16.mxu0 %v5045_v16  ;;  %3489 = vmatprep.subr.bf16.mxu1 %v5554_v1 }
 0x7ee   :  { %1899 = vmatpush1.bf16.msra.mxu0 %v5053_v61  ;;  %3490 = vmatpush3.bf16.msra.mxu1 %v5079_v42 }
 0x7ef   :  { %1987 = vmatprep.subr.bf16.mxu0 %v5003_v32  ;;  %3495 = vmatprep.subr.bf16.mxu1 %v5554_v1 }
 0x883   :  { %v1329_v23 = vpop.f32.mrb[28].mxu0  ;;  %v1370_v39 = vpop.f32.mrb[52].mxu1 }
 0x884   :  { %v1376_v54 = vadd.f32 %v1329_v23, %v4548_v19  ;;  %v1331_v62 = vpop.f32.mrb[29].mxu0  ;;  %v3449_v36 = vpop.f32.mrb[53].mxu1  ;;  %v4013_v19 = vld [vmem:[%s5533_s4] ss:$0 sm:$0xff] }
 0x885   :  { %v1383_v15 = vadd.f32 %v1331_v62, %v5556_v30  ;;  %v1333_v29 = vpop.f32.mrb[30].mxu0  ;;  %v1373_v18 = vpop.f32.mrb[54].mxu1  ;;  %v1390_v28 = vadd.f32 %v4013_v19, %v1370_v39 }
 0x886   :  { %v3010_v21 = vmul.f32 -1.442695, %v1376_v54  ;;  %v1334_v22 = vpop.f32.mrb[31].mxu0  ;;  %v3450_v38 = vpop.f32.mrb[55].mxu1 }
 0x887   :  { %v3011_v48 = vmul.f32 -1.442695, %v1383_v15 }
 0x888   :  { %3875 = vpow2.f32 %v3010_v21 }
 0x889   :  { %3877 = vpow2.f32 %v3011_v48 }
 0x892   :  { %v3876_v50 = vpop.eup %3875 }
 0x893   :  { %v1380_v25 = vadd.f32 1.0, %v3876_v50  ;;  %v3878_v26 = vpop.eup %3877 }
 0x894   :  { %v1387_v11 = vadd.f32 1.0, %v3878_v26 }
 0x895   :  { %3879 = vrcp.f32 %v1380_v25  ;;  %v5563_v25 = vld [vmem:[#allocation9_spill] sm:$0xff] }
 0x896   :  { %v5564_v26 = vsub.s32 0, %v5563_v25 }
 0x89f   :  { %v3880_v31 = vpop.eup %3879 }
 0x8a0   :  { %v1391_v63 = vmul.f32 %v3880_v31, %v1390_v28 }
 0x8a2   :  { %v1392_v35 = vadd.f32 %v1391_v63, %v5557_v2  ;;  %v5566_v63 = vsub.s32 1, %v5563_v25 }
 0x8a3   :  { %v5090_v13 = vpop.f32.mrb[32].mxu0  ;;  %v5092_v14 = vpop.f32.mrb[56].mxu1 }
 0x8a4   :  { %3881 = vtanh.f32 %v1392_v35  ;;  %v5094_v27 = vpop.f32.mrb[33].mxu0  ;;  %v5096_v46 = vpop.f32.mrb[57].mxu1 }
 0x8a5   :  { %v5098_v5 = vpop.f32.mrb[34].mxu0  ;;  %v5100_v6 = vpop.f32.mrb[58].mxu1  ;;  %3883 = vrcp.f32 %v1387_v11 }
 0x8a6   :  { %v5102_v9 = vpop.f32.mrb[35].mxu0  ;;  %v5104_v17 = vpop.f32.mrb[59].mxu1 }
 0x8ab   :  { %v5106_v52 = vpop.f32.mrb[36].mxu0 }
 0x8ac   :  { %v5108_v41 = vpop.f32.mrb[37].mxu0 }
 0x8ad   :  { %v5110_v49 = vpop.f32.mrb[38].mxu0 }
 0x8ae   :  { %v3882_v10 = vpop.eup %3881  ;;  %v5112_v45 = vpop.f32.mrb[39].mxu0 }
 0x8af   :  { %v1394_v51 = vsub.f32 %v4922_v24, %v3882_v10  ;;  %v3884_v23 = vpop.eup %3883 }
 0x8b1   :  { %v1395_v39 = vmul.f32 %v3884_v23, %v1394_v51 }
 0x8b3   :  { %v5115_v54 = vpop.f32.mrb[40].mxu0  ;;  %v1396_v62 = vadd.f32 %v3882_v10, %v1395_v39 }
 0x8b4   :  { %v5117_v36 = vpop.f32.mrb[41].mxu0 }
 0x8b5   :  { %v5119_v30 = vpop.f32.mrb[42].mxu0  ;;  %1397 = vst [vmem:[%s5541_s12] sm:$0xff] %v1396_v62  ;;  %v1465_v15 = vpack.c.bf16 %v1396_v62, %v4922_v24  ;;  %v1466_v24 = vld [vmem:[%s5536_s7] sm:$0x7] }
 0x8b6   :  { %v5125_v29 = vpop.f32.mrb[43].mxu0  ;;  %v5184_v19 = vrot.slane %v1466_v24, %v5564_v26  ;;  %v5192_v2 = vrot.slane %v1466_v24, %v5566_v63 }
 0x8b7   :  { %1674 = vmatmul.mubr.bf16.gmra.mrb[44].mxu0 %v1465_v15  ;;  %3472 = vmatmul.mubr.bf16.gmra.mrb[60].mxu1 %v1465_v15 }
 0x8b8   :  { %1916 = vmatprep.mubr.bf16.mxu0 %v5555_v0  ;;  %3491 = vmatprep.mubr.msk.bf16.mxu1 %vm4116_vm0, %v5554_v1  ;;  %v1646_v35 = vadd.f32 %v5090_v13, %v5184_v19  ;;  %v1648_v11 = vadd.f32 %v5094_v27, %v5192_v2  ;;  %v5201_v13 = vld [vmem:[%s5537_s8] ss:$0 sm:$0xff]  ;;  %v5567_v27 = vsub.s32 2, %v5563_v25  ;;  %v1652_v25 = vadd.f32 %v5102_v9, %v5192_v2 }
 0x8bf   :  { %1917 = vmatmul.mubr.bf16.vlgmr.msra.gmra.mrb[48].mxu0 %v5555_v0  ;;  %3492 = vmatmul.mubr.bf16.vlgmr.msra.gmra.mrb[64].mxu1 %v5555_v0 }
 0x8c0   :  { %1988 = vmatpush1.bf16.msra.mxu0 %v5005_v43  ;;  %3496 = vmatpush3.bf16.msra.mxu1 %v5041_v59 }
 0x8c1   :  { %1989 = vmatprep.subr.bf16.mxu0 %v5009_v12  ;;  %3497 = vmatprep.subr.bf16.mxu1 %v5554_v1 }
 0x8c2   :  { %2019 = vmatprep.mubr.bf16.mxu0 %v5555_v0  ;;  %3511 = vmatprep.mubr.msk.bf16.mxu1 %vm4116_vm0, %v5554_v1 }
 0x8c4   :  { %1990 = vmatpush1.bf16.msra.mxu0 %v5011_v37  ;;  %3498 = vmatpush3.bf16.msra.mxu1 %v5049_v40 }
 0x8c5   :  { %1991 = vmatprep.subr.bf16.mxu0 %v5015_v33  ;;  %3499 = vmatprep.subr.bf16.mxu1 %v5554_v1 }
 0x8c8   :  { %1992 = vmatpush1.bf16.msra.mxu0 %v5017_v47  ;;  %3500 = vmatpush3.bf16.msra.mxu1 %v5059_v34 }
 0x8c9   :  { %1993 = vmatprep.subr.bf16.mxu0 %v5021_v3  ;;  %3501 = vmatprep.subr.bf16.mxu1 %v5554_v1 }
 0x8cc   :  { %1994 = vmatpush1.bf16.msra.mxu0 %v5023_v20  ;;  %3502 = vmatpush3.bf16.msra.mxu1 %v5063_v44 }
 0x8cd   :  { %1995 = vmatprep.subr.bf16.mxu0 %v5027_v53  ;;  %3503 = vmatprep.subr.bf16.mxu1 %v5554_v1 }
 0x8d0   :  { %1996 = vmatpush1.bf16.msra.mxu0 %v5029_v55  ;;  %3504 = vmatpush3.bf16.msra.mxu1 %v5067_v4 }
 0x8d1   :  { %1997 = vmatprep.subr.bf16.mxu0 %v5033_v56  ;;  %3505 = vmatprep.subr.bf16.mxu1 %v5554_v1 }
 0x8d4   :  { %1998 = vmatpush1.bf16.msra.mxu0 %v5035_v57  ;;  %3506 = vmatpush3.bf16.msra.mxu1 %v5071_v7 }
 0x8d5   :  { %1999 = vmatprep.subr.bf16.mxu0 %v5039_v58  ;;  %3507 = vmatprep.subr.bf16.mxu1 %v5554_v1 }
 0x8d8   :  { %2000 = vmatpush1.bf16.msra.mxu0 %v5043_v60  ;;  %3508 = vmatpush3.bf16.msra.mxu1 %v5075_v8 }
 0x8d9   :  { %2001 = vmatprep.subr.bf16.mxu0 %v5045_v16  ;;  %3509 = vmatprep.subr.bf16.mxu1 %v5554_v1 }
 0x8dc   :  { %2002 = vmatpush1.bf16.msra.mxu0 %v5053_v61  ;;  %3510 = vmatpush3.bf16.msra.mxu1 %v5079_v42 }
 0x8dd   :  { %2090 = vmatprep.subr.bf16.mxu0 %v5003_v32  ;;  %3515 = vmatprep.subr.bf16.mxu1 %v5554_v1 }
 0x98a   :  { %v5170_v18 = vpop.f32.mrb[44].mxu0  ;;  %v5172_v21 = vpop.f32.mrb[60].mxu1 }
 0x98b   :  { %5558 = vst [vmem:[#allocation10_spill] sm:$0xff] %v5170_v18  ;;  %5559 = vst [vmem:[#allocation11_spill] sm:$0xff] %v5172_v21  ;;  %v5174_v22 = vpop.f32.mrb[45].mxu0  ;;  %v5176_v38 = vpop.f32.mrb[61].mxu1 }
 0x98c   :  { %5560 = vst [vmem:[#allocation12_spill] sm:$0xff] %v5174_v22  ;;  %v5178_v48 = vpop.f32.mrb[46].mxu0  ;;  %v5180_v50 = vpop.f32.mrb[62].mxu1 }
 0x98d   :  { %5561 = vst [vmem:[#allocation13_spill] sm:$0xff] %v5178_v48  ;;  %5562 = vst [vmem:[#allocation14_spill] sm:$0xff] %v5180_v50  ;;  %v5186_v28 = vpop.f32.mrb[47].mxu0  ;;  %v5188_v31 = vpop.f32.mrb[63].mxu1 }
 0x98e   :  { %5565 = vst [vmem:[#allocation9_spill] sm:$0xff] %v5186_v28 }
 0x992   :  { %v1918_v10 = vpop.f32.mrb[48].mxu0  ;;  %v1959_v51 = vpop.f32.mrb[64].mxu1 }
 0x993   :  { %v1965_v23 = vadd.f32 %v1918_v10, %v1646_v35  ;;  %v1920_v39 = vpop.f32.mrb[49].mxu0  ;;  %v3493_v62 = vpop.f32.mrb[65].mxu1  ;;  %v5205_v35 = vrot.slane %v1466_v24, %v5567_v27 }
 0x994   :  { %v1972_v15 = vadd.f32 %v1920_v39, %v1648_v11  ;;  %v1922_v26 = vpop.f32.mrb[50].mxu0  ;;  %v1962_v50 = vpop.f32.mrb[66].mxu1 }
 0x995   :  { %v3061_v28 = vmul.f32 -1.442695, %v1965_v23  ;;  %v1923_v48 = vpop.f32.mrb[51].mxu0  ;;  %v3494_v21 = vpop.f32.mrb[67].mxu1  ;;  %v1979_v50 = vadd.f32 %v5201_v13, %v1959_v51 }
 0x996   :  { %v3062_v63 = vmul.f32 -1.442695, %v1972_v15  ;;  %v1719_v21 = vadd.f32 %v5096_v46, %v5205_v35  ;;  %v1650_v46 = vadd.f32 %v5098_v5, %v5184_v19 }
 0x997   :  { %3885 = vpow2.f32 %v3061_v28 }
 0x998   :  { %3887 = vpow2.f32 %v3062_v63 }
 0x9a1   :  { %v3886_v22 = vpop.eup %3885 }
 0x9a2   :  { %v1969_v18 = vadd.f32 1.0, %v3886_v22  ;;  %v3888_v11 = vpop.eup %3887 }
 0x9a3   :  { %v1976_v22 = vadd.f32 1.0, %v3888_v11 }
 0x9a4   :  { %3889 = vrcp.f32 %v1969_v18 }
 0x9ae   :  { %v3890_v48 = vpop.eup %3889 }
 0x9af   :  { %v1980_v28 = vmul.f32 %v3890_v48, %v1979_v50 }
 0x9b1   :  { %v1981_v10 = vadd.f32 %v1980_v28, %v1719_v21 }
 0x9b3   :  { %3891 = vtanh.f32 %v1981_v10 }
 0x9b4   :  { %3893 = vrcp.f32 %v1976_v22 }
 0x9bd   :  { %v3892_v18 = vpop.eup %3891 }
 0x9be   :  { %v1983_v23 = vsub.f32 0.0, %v3892_v18  ;;  %v3894_v39 = vpop.eup %3893 }
 0x9c0   :  { %v1984_v62 = vmul.f32 %v3894_v39, %v1983_v23 }
 0x9c2   :  { %v5210_v15 = vadd.f32 %v3892_v18, %v1984_v62 }
 0x9c4   :  { %v1986_v24 = vpack.c.bf16 %v5210_v15, %v5210_v15 }
 0x9c6   :  { %2020 = vmatmul.mubr.bf16.vlgmr.msra.gmra.mrb[52].mxu0 %v1986_v24  ;;  %3512 = vmatmul.mubr.bf16.vlgmr.msra.gmra.mrb[68].mxu1 %v1986_v24  ;;  %v1722_v24 = vadd.f32 %v5104_v17, %v5205_v35  ;;  %v1656_v17 = vadd.f32 %v5106_v52, %v5184_v19 }
 0x9c7   :  { %2091 = vmatpush1.bf16.msra.mxu0 %v5005_v43  ;;  %3516 = vmatpush3.bf16.msra.mxu1 %v5041_v59 }
 0x9c8   :  { %2092 = vmatprep.subr.bf16.mxu0 %v5009_v12  ;;  %3517 = vmatprep.subr.bf16.mxu1 %v5554_v1 }
 0x9c9   :  { %2122 = vmatprep.mubr.bf16.mxu0 %v5555_v0  ;;  %3531 = vmatprep.mubr.msk.bf16.mxu1 %vm4116_vm0, %v5554_v1 }
 0x9cb   :  { %2093 = vmatpush1.bf16.msra.mxu0 %v5011_v37  ;;  %3518 = vmatpush3.bf16.msra.mxu1 %v5049_v40 }
 0x9cc   :  { %2094 = vmatprep.subr.bf16.mxu0 %v5015_v33  ;;  %3519 = vmatprep.subr.bf16.mxu1 %v5554_v1 }
 0x9cf   :  { %2095 = vmatpush1.bf16.msra.mxu0 %v5017_v47  ;;  %3520 = vmatpush3.bf16.msra.mxu1 %v5059_v34 }
 0x9d0   :  { %2096 = vmatprep.subr.bf16.mxu0 %v5021_v3  ;;  %3521 = vmatprep.subr.bf16.mxu1 %v5554_v1 }
 0x9d3   :  { %2097 = vmatpush1.bf16.msra.mxu0 %v5023_v20  ;;  %3522 = vmatpush3.bf16.msra.mxu1 %v5063_v44 }
 0x9d4   :  { %2098 = vmatprep.subr.bf16.mxu0 %v5027_v53  ;;  %3523 = vmatprep.subr.bf16.mxu1 %v5554_v1 }
 0x9d7   :  { %2099 = vmatpush1.bf16.msra.mxu0 %v5029_v55  ;;  %3524 = vmatpush3.bf16.msra.mxu1 %v5067_v4 }
 0x9d8   :  { %2100 = vmatprep.subr.bf16.mxu0 %v5033_v56  ;;  %3525 = vmatprep.subr.bf16.mxu1 %v5554_v1 }
 0x9db   :  { %2101 = vmatpush1.bf16.msra.mxu0 %v5035_v57  ;;  %3526 = vmatpush3.bf16.msra.mxu1 %v5071_v7 }
 0x9dc   :  { %2102 = vmatprep.subr.bf16.mxu0 %v5039_v58  ;;  %3527 = vmatprep.subr.bf16.mxu1 %v5554_v1 }
 0x9df   :  { %2103 = vmatpush1.bf16.msra.mxu0 %v5043_v60  ;;  %3528 = vmatpush3.bf16.msra.mxu1 %v5075_v8 }
 0x9e0   :  { %2104 = vmatprep.subr.bf16.mxu0 %v5045_v16  ;;  %3529 = vmatprep.subr.bf16.mxu1 %v5554_v1 }
 0x9e3   :  { %2105 = vmatpush1.bf16.msra.mxu0 %v5053_v61  ;;  %3530 = vmatpush3.bf16.msra.mxu1 %v5079_v42 }
 0x9e4   :  { %2193 = vmatprep.subr.bf16.mxu0 %v5003_v32  ;;  %3535 = vmatprep.subr.bf16.mxu1 %v5554_v1 }
 0xa99   :  { %v2021_v51 = vpop.f32.mrb[52].mxu0  ;;  %v2062_v26 = vpop.f32.mrb[68].mxu1 }
 0xa9a   :  { %v2068_v63 = vadd.f32 %v2021_v51, %v1650_v46  ;;  %v2023_v27 = vpop.f32.mrb[53].mxu0  ;;  %v3513_v50 = vpop.f32.mrb[69].mxu1  ;;  %v2082_v9 = vadd.f32 %v5201_v13, %v2062_v26  ;;  %v1658_v26 = vadd.f32 %v5108_v41, %v5192_v2 }
 0xa9b   :  { %v2075_v11 = vadd.f32 %v2023_v27, %v1652_v25  ;;  %v2025_v48 = vpop.f32.mrb[54].mxu0  ;;  %v2065_v21 = vpop.f32.mrb[70].mxu1 }
 0xa9c   :  { %v3063_v28 = vmul.f32 -1.442695, %v2068_v63  ;;  %v2026_v22 = vpop.f32.mrb[55].mxu0  ;;  %v3514_v10 = vpop.f32.mrb[71].mxu1 }
 0xa9d   :  { %v3064_v18 = vmul.f32 -1.442695, %v2075_v11 }
 0xa9e   :  { %3895 = vpow2.f32 %v3063_v28 }
 0xa9f   :  { %3897 = vpow2.f32 %v3064_v18 }
 0xaa8   :  { %v3896_v23 = vpop.eup %3895 }
 0xaa9   :  { %v2072_v39 = vadd.f32 1.0, %v3896_v23  ;;  %v3898_v5 = vpop.eup %3897 }
 0xaaa   :  { %v2079_v51 = vadd.f32 1.0, %v3898_v5 }
 0xaab   :  { %3899 = vrcp.f32 %v2072_v39 }
 0xab5   :  { %v3900_v62 = vpop.eup %3899 }
 0xab6   :  { %v2083_v46 = vmul.f32 %v3900_v62, %v2082_v9 }
 0xab8   :  { %v2084_v25 = vadd.f32 %v2083_v46, %v1722_v24 }
 0xaba   :  { %3901 = vtanh.f32 %v2084_v25 }
 0xabb   :  { %3903 = vrcp.f32 %v2079_v51 }
 0xac4   :  { %v3902_v63 = vpop.eup %3901 }
 0xac5   :  { %v2086_v27 = vsub.f32 %v5210_v15, %v3902_v63  ;;  %v3904_v50 = vpop.eup %3903 }
 0xac7   :  { %v2087_v11 = vmul.f32 %v3904_v50, %v2086_v27  ;;  %v1727_v50 = vadd.f32 %v5092_v14, %v5205_v35  ;;  %v1660_v14 = vadd.f32 %v5110_v49, %v5184_v19 }
 0xac9   :  { %v5257_v48 = vadd.f32 %v3902_v63, %v2087_v11 }
 0xacb   :  { %v2089_v21 = vpack.c.bf16 %v5257_v48, %v5257_v48 }
 0xacd   :  { %2123 = vmatmul.mubr.bf16.vlgmr.msra.gmra.mrb[56].mxu0 %v2089_v21  ;;  %3532 = vmatmul.mubr.bf16.vlgmr.msra.gmra.mrb[72].mxu1 %v2089_v21 }
 0xace   :  { %2194 = vmatpush1.bf16.msra.mxu0 %v5005_v43  ;;  %3536 = vmatpush3.bf16.msra.mxu1 %v5041_v59 }
 0xacf   :  { %2195 = vmatprep.subr.bf16.mxu0 %v5009_v12  ;;  %3537 = vmatprep.subr.bf16.mxu1 %v5554_v1 }
 0xad0   :  { %2225 = vmatprep.mubr.bf16.mxu0 %v5555_v0  ;;  %3551 = vmatprep.mubr.msk.bf16.mxu1 %vm4116_vm0, %v5554_v1 }
 0xad2   :  { %2196 = vmatpush1.bf16.msra.mxu0 %v5011_v37  ;;  %3538 = vmatpush3.bf16.msra.mxu1 %v5049_v40 }
 0xad3   :  { %2197 = vmatprep.subr.bf16.mxu0 %v5015_v33  ;;  %3539 = vmatprep.subr.bf16.mxu1 %v5554_v1 }
 0xad6   :  { %2198 = vmatpush1.bf16.msra.mxu0 %v5017_v47  ;;  %3540 = vmatpush3.bf16.msra.mxu1 %v5059_v34 }
 0xad7   :  { %2199 = vmatprep.subr.bf16.mxu0 %v5021_v3  ;;  %3541 = vmatprep.subr.bf16.mxu1 %v5554_v1 }
 0xada   :  { %2200 = vmatpush1.bf16.msra.mxu0 %v5023_v20  ;;  %3542 = vmatpush3.bf16.msra.mxu1 %v5063_v44 }
 0xadb   :  { %2201 = vmatprep.subr.bf16.mxu0 %v5027_v53  ;;  %3543 = vmatprep.subr.bf16.mxu1 %v5554_v1 }
 0xade   :  { %2202 = vmatpush1.bf16.msra.mxu0 %v5029_v55  ;;  %3544 = vmatpush3.bf16.msra.mxu1 %v5067_v4 }
 0xadf   :  { %2203 = vmatprep.subr.bf16.mxu0 %v5033_v56  ;;  %3545 = vmatprep.subr.bf16.mxu1 %v5554_v1 }
 0xae2   :  { %2204 = vmatpush1.bf16.msra.mxu0 %v5035_v57  ;;  %3546 = vmatpush3.bf16.msra.mxu1 %v5071_v7 }
 0xae3   :  { %2205 = vmatprep.subr.bf16.mxu0 %v5039_v58  ;;  %3547 = vmatprep.subr.bf16.mxu1 %v5554_v1 }
 0xae6   :  { %2206 = vmatpush1.bf16.msra.mxu0 %v5043_v60  ;;  %3548 = vmatpush3.bf16.msra.mxu1 %v5075_v8 }
 0xae7   :  { %2207 = vmatprep.subr.bf16.mxu0 %v5045_v16  ;;  %3549 = vmatprep.subr.bf16.mxu1 %v5554_v1 }
 0xaea   :  { %2208 = vmatpush1.bf16.msra.mxu0 %v5053_v61  ;;  %3550 = vmatpush3.bf16.msra.mxu1 %v5079_v42 }
 0xaeb   :  { %2296 = vmatprep.subr.bf16.mxu0 %v5003_v32  ;;  %3555 = vmatprep.subr.bf16.mxu1 %v5554_v1 }
 0xba0   :  { %v2124_v28 = vpop.f32.mrb[56].mxu0  ;;  %v2165_v22 = vpop.f32.mrb[72].mxu1 }
 0xba1   :  { %v2171_v10 = vadd.f32 %v2124_v28, %v1656_v17  ;;  %v2126_v18 = vpop.f32.mrb[57].mxu0  ;;  %v3533_v23 = vpop.f32.mrb[73].mxu1  ;;  %v2185_v41 = vadd.f32 %v5201_v13, %v2165_v22  ;;  %v1662_v22 = vadd.f32 %v5112_v45, %v5192_v2 }
 0xba2   :  { %v2178_v39 = vadd.f32 %v2126_v18, %v1658_v26  ;;  %v2128_v5 = vpop.f32.mrb[58].mxu0  ;;  %v2168_v9 = vpop.f32.mrb[74].mxu1 }
 0xba3   :  { %v3065_v62 = vmul.f32 -1.442695, %v2171_v10  ;;  %v2129_v24 = vpop.f32.mrb[59].mxu0  ;;  %v3534_v46 = vpop.f32.mrb[75].mxu1 }
 0xba4   :  { %v3066_v25 = vmul.f32 -1.442695, %v2178_v39 }
 0xba5   :  { %3905 = vpow2.f32 %v3065_v62 }
 0xba6   :  { %3907 = vpow2.f32 %v3066_v25 }
 0xbaf   :  { %v3906_v51 = vpop.eup %3905 }
 0xbb0   :  { %v2175_v63 = vadd.f32 1.0, %v3906_v51  ;;  %v3908_v52 = vpop.eup %3907 }
 0xbb1   :  { %v2182_v17 = vadd.f32 1.0, %v3908_v52 }
 0xbb2   :  { %3909 = vrcp.f32 %v2175_v63 }
 0xbbc   :  { %v3910_v27 = vpop.eup %3909 }
 0xbbd   :  { %v2186_v11 = vmul.f32 %v3910_v27, %v2185_v41 }
 0xbbf   :  { %v2187_v21 = vadd.f32 %v2186_v11, %v1727_v50 }
 0xbc1   :  { %3911 = vtanh.f32 %v2187_v21 }
 0xbc2   :  { %3913 = vrcp.f32 %v2182_v17 }
 0xbcb   :  { %v3912_v26 = vpop.eup %3911 }
 0xbcc   :  { %v2189_v28 = vsub.f32 %v5257_v48, %v3912_v26  ;;  %v3914_v10 = vpop.eup %3913 }
 0xbce   :  { %v2190_v18 = vmul.f32 %v3914_v10, %v2189_v28 }
 0xbd0   :  { %v5304_v23 = vadd.f32 %v3912_v26, %v2190_v18  ;;  %v1730_v26 = vadd.f32 %v5100_v6, %v5205_v35  ;;  %v1666_v6 = vadd.f32 %v5115_v54, %v5184_v19 }
 0xbd2   :  { %v2192_v39 = vpack.c.bf16 %v5304_v23, %v5304_v23 }
 0xbd4   :  { %2226 = vmatmul.mubr.bf16.vlgmr.msra.gmra.mrb[60].mxu0 %v2192_v39  ;;  %3552 = vmatmul.mubr.bf16.vlgmr.msra.gmra.mrb[76].mxu1 %v2192_v39 }
 0xbd5   :  { %2297 = vmatpush1.bf16.msra.mxu0 %v5005_v43  ;;  %3556 = vmatpush3.bf16.msra.mxu1 %v5041_v59 }
 0xbd6   :  { %2298 = vmatprep.subr.bf16.mxu0 %v5009_v12  ;;  %3557 = vmatprep.subr.bf16.mxu1 %v5554_v1 }
 0xbd7   :  { %2328 = vmatprep.mubr.bf16.mxu0 %v5555_v0  ;;  %3571 = vmatprep.mubr.msk.bf16.mxu1 %vm4116_vm0, %v5554_v1 }
 0xbd9   :  { %2299 = vmatpush1.bf16.msra.mxu0 %v5011_v37  ;;  %3558 = vmatpush3.bf16.msra.mxu1 %v5049_v40 }
 0xbda   :  { %2300 = vmatprep.subr.bf16.mxu0 %v5015_v33  ;;  %3559 = vmatprep.subr.bf16.mxu1 %v5554_v1 }
 0xbdd   :  { %2301 = vmatpush1.bf16.msra.mxu0 %v5017_v47  ;;  %3560 = vmatpush3.bf16.msra.mxu1 %v5059_v34 }
 0xbde   :  { %2302 = vmatprep.subr.bf16.mxu0 %v5021_v3  ;;  %3561 = vmatprep.subr.bf16.mxu1 %v5554_v1 }
 0xbe1   :  { %2303 = vmatpush1.bf16.msra.mxu0 %v5023_v20  ;;  %3562 = vmatpush3.bf16.msra.mxu1 %v5063_v44 }
 0xbe2   :  { %2304 = vmatprep.subr.bf16.mxu0 %v5027_v53  ;;  %3563 = vmatprep.subr.bf16.mxu1 %v5554_v1 }
 0xbe5   :  { %2305 = vmatpush1.bf16.msra.mxu0 %v5029_v55  ;;  %3564 = vmatpush3.bf16.msra.mxu1 %v5067_v4 }
 0xbe6   :  { %2306 = vmatprep.subr.bf16.mxu0 %v5033_v56  ;;  %3565 = vmatprep.subr.bf16.mxu1 %v5554_v1 }
 0xbe9   :  { %2307 = vmatpush1.bf16.msra.mxu0 %v5035_v57  ;;  %3566 = vmatpush3.bf16.msra.mxu1 %v5071_v7 }
 0xbea   :  { %2308 = vmatprep.subr.bf16.mxu0 %v5039_v58  ;;  %3567 = vmatprep.subr.bf16.mxu1 %v5554_v1 }
 0xbed   :  { %2309 = vmatpush1.bf16.msra.mxu0 %v5043_v60  ;;  %3568 = vmatpush3.bf16.msra.mxu1 %v5075_v8 }
 0xbee   :  { %2310 = vmatprep.subr.bf16.mxu0 %v5045_v16  ;;  %3569 = vmatprep.subr.bf16.mxu1 %v5554_v1 }
 0xbf1   :  { %2311 = vmatpush1.bf16.msra.mxu0 %v5053_v61  ;;  %3570 = vmatpush3.bf16.msra.mxu1 %v5079_v42 }
 0xbf2   :  { %2399 = vmatprep.subr.bf16.mxu0 %v5003_v32  ;;  %3575 = vmatprep.subr.bf16.mxu1 %v5554_v1 }
 0xca7   :  { %v2227_v5 = vpop.f32.mrb[60].mxu0  ;;  %v2268_v9 = vpop.f32.mrb[76].mxu1 }
 0xca8   :  { %v2274_v62 = vadd.f32 %v2227_v5, %v1660_v14  ;;  %v2229_v24 = vpop.f32.mrb[61].mxu0  ;;  %v3553_v46 = vpop.f32.mrb[77].mxu1  ;;  %v2288_v45 = vadd.f32 %v5201_v13, %v2268_v9  ;;  %v1668_v9 = vadd.f32 %v5117_v36, %v5192_v2 }
 0xca9   :  { %v2281_v25 = vadd.f32 %v2229_v24, %v1662_v22  ;;  %v2231_v51 = vpop.f32.mrb[62].mxu0  ;;  %v2271_v63 = vpop.f32.mrb[78].mxu1 }
 0xcaa   :  { %v3067_v52 = vmul.f32 -1.442695, %v2274_v62  ;;  %v2232_v41 = vpop.f32.mrb[63].mxu0  ;;  %v3554_v27 = vpop.f32.mrb[79].mxu1 }
 0xcab   :  { %v3068_v50 = vmul.f32 -1.442695, %v2281_v25 }
 0xcac   :  { %3915 = vpow2.f32 %v3067_v52 }
 0xcad   :  { %3917 = vpow2.f32 %v3068_v50 }
 0xcb6   :  { %v3916_v11 = vpop.eup %3915 }
 0xcb7   :  { %v2278_v21 = vadd.f32 1.0, %v3916_v11  ;;  %v3918_v49 = vpop.eup %3917 }
 0xcb8   :  { %v2285_v18 = vadd.f32 1.0, %v3918_v49 }
 0xcb9   :  { %3919 = vrcp.f32 %v2278_v21 }
 0xcc3   :  { %v3920_v17 = vpop.eup %3919 }
 0xcc4   :  { %v2289_v28 = vmul.f32 %v3920_v17, %v2288_v45 }
 0xcc6   :  { %v2290_v10 = vadd.f32 %v2289_v28, %v1730_v26 }
 0xcc8   :  { %3921 = vtanh.f32 %v2290_v10  ;;  %v1735_v10 = vadd.f32 %v5176_v38, %v5205_v35 }
 0xcc9   :  { %3923 = vrcp.f32 %v2285_v18 }
 0xcd2   :  { %v3922_v39 = vpop.eup %3921 }
 0xcd3   :  { %v2292_v14 = vsub.f32 %v5304_v23, %v3922_v39  ;;  %v3924_v22 = vpop.eup %3923 }
 0xcd5   :  { %v2293_v5 = vmul.f32 %v3924_v22, %v2292_v14 }
 0xcd7   :  { %v5351_v62 = vadd.f32 %v3922_v39, %v2293_v5 }
 0xcd9   :  { %v2295_v24 = vpack.c.bf16 %v5351_v62, %v5351_v62 }
 0xcdb   :  { %2329 = vmatmul.mubr.bf16.vlgmr.msra.gmra.mrb[64].mxu0 %v2295_v24  ;;  %3572 = vmatmul.mubr.bf16.vlgmr.msra.gmra.mrb[80].mxu1 %v2295_v24 }
 0xcdc   :  { %2400 = vmatpush1.bf16.msra.mxu0 %v5005_v43  ;;  %3576 = vmatpush3.bf16.msra.mxu1 %v5041_v59 }
 0xcdd   :  { %2401 = vmatprep.subr.bf16.mxu0 %v5009_v12  ;;  %3577 = vmatprep.subr.bf16.mxu1 %v5554_v1 }
 0xcde   :  { %2431 = vmatprep.mubr.bf16.mxu0 %v5555_v0  ;;  %3591 = vmatprep.mubr.msk.bf16.mxu1 %vm4116_vm0, %v5554_v1 }
 0xce0   :  { %2402 = vmatpush1.bf16.msra.mxu0 %v5011_v37  ;;  %3578 = vmatpush3.bf16.msra.mxu1 %v5049_v40 }
 0xce1   :  { %2403 = vmatprep.subr.bf16.mxu0 %v5015_v33  ;;  %3579 = vmatprep.subr.bf16.mxu1 %v5554_v1 }
 0xce4   :  { %2404 = vmatpush1.bf16.msra.mxu0 %v5017_v47  ;;  %3580 = vmatpush3.bf16.msra.mxu1 %v5059_v34 }
 0xce5   :  { %2405 = vmatprep.subr.bf16.mxu0 %v5021_v3  ;;  %3581 = vmatprep.subr.bf16.mxu1 %v5554_v1 }
 0xce8   :  { %2406 = vmatpush1.bf16.msra.mxu0 %v5023_v20  ;;  %3582 = vmatpush3.bf16.msra.mxu1 %v5063_v44 }
 0xce9   :  { %2407 = vmatprep.subr.bf16.mxu0 %v5027_v53  ;;  %3583 = vmatprep.subr.bf16.mxu1 %v5554_v1 }
 0xcec   :  { %2408 = vmatpush1.bf16.msra.mxu0 %v5029_v55  ;;  %3584 = vmatpush3.bf16.msra.mxu1 %v5067_v4 }
 0xced   :  { %2409 = vmatprep.subr.bf16.mxu0 %v5033_v56  ;;  %3585 = vmatprep.subr.bf16.mxu1 %v5554_v1 }
 0xcf0   :  { %2410 = vmatpush1.bf16.msra.mxu0 %v5035_v57  ;;  %3586 = vmatpush3.bf16.msra.mxu1 %v5071_v7 }
 0xcf1   :  { %2411 = vmatprep.subr.bf16.mxu0 %v5039_v58  ;;  %3587 = vmatprep.subr.bf16.mxu1 %v5554_v1 }
 0xcf4   :  { %2412 = vmatpush1.bf16.msra.mxu0 %v5043_v60  ;;  %3588 = vmatpush3.bf16.msra.mxu1 %v5075_v8 }
 0xcf5   :  { %2413 = vmatprep.subr.bf16.mxu0 %v5045_v16  ;;  %3589 = vmatprep.subr.bf16.mxu1 %v5554_v1 }
 0xcf8   :  { %2414 = vmatpush1.bf16.msra.mxu0 %v5053_v61  ;;  %3590 = vmatpush3.bf16.msra.mxu1 %v5079_v42 }
 0xcf9   :  { %2502 = vmatprep.subr.bf16.mxu0 %v5003_v32  ;;  %3595 = vmatprep.subr.bf16.mxu1 %v5554_v1 }
 0xdae   :  { %v2330_v46 = vpop.f32.mrb[64].mxu0  ;;  %v2371_v25 = vpop.f32.mrb[80].mxu1 }
 0xdaf   :  { %v2377_v51 = vadd.f32 %v2330_v46, %v1666_v6  ;;  %v2332_v63 = vpop.f32.mrb[65].mxu0  ;;  %v3573_v52 = vpop.f32.mrb[81].mxu1  ;;  %v2391_v36 = vadd.f32 %v5201_v13, %v2371_v25 }
 0xdb0   :  { %v2384_v41 = vadd.f32 %v2332_v63, %v1668_v9  ;;  %v2334_v27 = vpop.f32.mrb[66].mxu0  ;;  %v2374_v50 = vpop.f32.mrb[82].mxu1  ;;  %v4014_v63 = vld [vmem:[#allocation2] ss:$12 sps:$4 sm:$0xff]   ;;  %v4016_v52 = vld [vmem:[#allocation2 + $0x1c] ss:$12 sps:$4 sm:$0xff]  }
 0xdb1   :  { %v3069_v11 = vmul.f32 -1.442695, %v2377_v51  ;;  %v2335_v21 = vpop.f32.mrb[67].mxu0  ;;  %v3574_v49 = vpop.f32.mrb[83].mxu1  ;;  %v4018_v27 = vld [vmem:[#allocation2 + $0x20] ss:$12 sps:$4 sm:$0xff]  }
 0xdb2   :  { %v3070_v45 = vmul.f32 -1.442695, %v2384_v41  ;;  %v4017_v41 = vld [vmem:[#allocation2 + $0x18] ss:$12 sps:$4 sm:$0xff]   ;;  %v4019_v50 = vld [vmem:[#allocation2 + $0x34] ss:$12 sps:$4 sm:$0xff]  }
 0xdb3   :  { %3925 = vpow2.f32 %v3069_v11  ;;  %v4020_v11 = vld [vmem:[#allocation2 + $0x30] ss:$12 sps:$4 sm:$0xff]   ;;  %v4021_v21 = vld [vmem:[#allocation2 + $0x38] ss:$12 sps:$4 sm:$0xff]  }
 0xdb4   :  { %3927 = vpow2.f32 %v3070_v45  ;;  %v4022_v49 = vld [vmem:[#allocation2 + $0x4c] ss:$12 sps:$4 sm:$0xff]   ;;  %v4024_v45 = vld [vmem:[#allocation2 + $0x50] ss:$12 sps:$4 sm:$0xff]  }
 0xdbd   :  { %v3926_v17 = vpop.eup %3925 }
 0xdbe   :  { %v2381_v26 = vadd.f32 1.0, %v3926_v17  ;;  %v3928_v54 = vpop.eup %3927  ;;  %v4025_v17 = vld [vmem:[#allocation2 + $0x64] ss:$12 sps:$4 sm:$0xff]  }
 0xdbf   :  { %v2388_v14 = vadd.f32 1.0, %v3928_v54  ;;  %v4027_v54 = vld [vmem:[#allocation2 + $0x68] ss:$12 sps:$4 sm:$0xff]  }
 0xdc0   :  { %3929 = vrcp.f32 %v2381_v26  ;;  %v4026_v26 = vld [vmem:[#allocation2 + $0x60] ss:$12 sps:$4 sm:$0xff]  }
 0xdca   :  { %v3930_v28 = vpop.eup %3929 }
 0xdcb   :  { %v2392_v18 = vmul.f32 %v3930_v28, %v2391_v36  ;;  %v4028_v36 = vld [vmem:[#allocation2 + $0x7c] ss:$12 sps:$4 sm:$0xff]   ;;  %v4029_v28 = vld [vmem:[#allocation2 + $0x78] ss:$12 sps:$4 sm:$0xff]  }
 0xdcd   :  { %v2393_v39 = vadd.f32 %v2392_v18, %v1735_v10  ;;  %v4030_v10 = vld [vmem:[#allocation2 + $0x80] ss:$12 sps:$4 sm:$0xff]  }
 0xdce   :  { %v4031_v18 = vld [vmem:[#allocation2 + $0x94] ss:$12 sps:$4 sm:$0xff]  }
 0xdcf   :  { %3931 = vtanh.f32 %v2393_v39  ;;  %v4032_v39 = vld [vmem:[#allocation2 + $0x90] ss:$12 sps:$4 sm:$0xff]  }
 0xdd0   :  { %3933 = vrcp.f32 %v2388_v14  ;;  %v4033_v14 = vld [vmem:[#allocation2 + $0x98] ss:$12 sps:$4 sm:$0xff]  }
 0xdd9   :  { %v3932_v22 = vpop.eup %3931 }
 0xdda   :  { %v2395_v5 = vsub.f32 %v5351_v62, %v3932_v22  ;;  %v3934_v24 = vpop.eup %3933 }
 0xddc   :  { %v2396_v6 = vmul.f32 %v3934_v24, %v2395_v5  ;;  %v4035_v5 = vld [vmem:[#allocation2 + $0xa8] ss:$12 sps:$4 sm:$0xff]   ;;  %v4036_v24 = vld [vmem:[#allocation2 + $0xb0] ss:$12 sps:$4 sm:$0xff]  }
 0xdde   :  { %v5398_v9 = vadd.f32 %v3932_v22, %v2396_v6  ;;  %v4034_v22 = vld [vmem:[#allocation2 + $0xac] ss:$12 sps:$4 sm:$0xff]   ;;  %v3797_v6 = vld [vmem:[#allocation4] sm:$0xff]  }
 0xde0   :  { %v2398_v46 = vpack.c.bf16 %v5398_v9, %v5398_v9 }
 0xde2   :  { %2432 = vmatmul.mubr.bf16.vlgmr.msra.gmra.mrb[68].mxu0 %v2398_v46  ;;  %3592 = vmatmul.mubr.bf16.vlgmr.msra.gmra.mrb[84].mxu1 %v2398_v46  ;;  %v5568_v46 = vld [vmem:[#allocation10_spill] sm:$0xff] }
 0xde3   :  { %2503 = vmatpush1.bf16.msra.mxu0 %v5005_v43  ;;  %3596 = vmatpush3.bf16.msra.mxu1 %v5041_v59  ;;  %v1670_v43 = vadd.f32 %v5119_v30, %v5184_v19 }
 0xde4   :  { %2504 = vmatprep.subr.bf16.mxu0 %v5009_v12  ;;  %3597 = vmatprep.subr.bf16.mxu1 %v5554_v1  ;;  %v1672_v12 = vadd.f32 %v5125_v29, %v5192_v2 }
 0xde5   :  { %2534 = vmatprep.mubr.bf16.mxu0 %v5555_v0  ;;  %3611 = vmatprep.mubr.msk.bf16.mxu1 %vm4116_vm0, %v5554_v1 }
 0xde7   :  { %2505 = vmatpush1.bf16.msra.mxu0 %v5011_v37  ;;  %3598 = vmatpush3.bf16.msra.mxu1 %v5049_v40 }
 0xde8   :  { %2506 = vmatprep.subr.bf16.mxu0 %v5015_v33  ;;  %3599 = vmatprep.subr.bf16.mxu1 %v5554_v1 }
 0xdeb   :  { %2507 = vmatpush1.bf16.msra.mxu0 %v5017_v47  ;;  %3600 = vmatpush3.bf16.msra.mxu1 %v5059_v34 }
 0xdec   :  { %2508 = vmatprep.subr.bf16.mxu0 %v5021_v3  ;;  %3601 = vmatprep.subr.bf16.mxu1 %v5554_v1 }
 0xdef   :  { %2509 = vmatpush1.bf16.msra.mxu0 %v5023_v20  ;;  %3602 = vmatpush3.bf16.msra.mxu1 %v5063_v44  ;;  %v1738_v44 = vadd.f32 %v5188_v31, %v5205_v35  ;;  %v4015_v31 = vld [vmem:[#allocation2 + $0x8] ss:$12 sps:$4 sm:$0xff]  }
 0xdf0   :  { %2510 = vmatprep.subr.bf16.mxu0 %v5027_v53  ;;  %3603 = vmatprep.subr.bf16.mxu1 %v5554_v1 }
 0xdf3   :  { %2511 = vmatpush1.bf16.msra.mxu0 %v5029_v55  ;;  %3604 = vmatpush3.bf16.msra.mxu1 %v5067_v4 }
 0xdf4   :  { %2512 = vmatprep.subr.bf16.mxu0 %v5033_v56  ;;  %3605 = vmatprep.subr.bf16.mxu1 %v5554_v1 }
 0xdf7   :  { %2513 = vmatpush1.bf16.msra.mxu0 %v5035_v57  ;;  %3606 = vmatpush3.bf16.msra.mxu1 %v5071_v7 }
 0xdf8   :  { %2514 = vmatprep.subr.bf16.mxu0 %v5039_v58  ;;  %3607 = vmatprep.subr.bf16.mxu1 %v5554_v1 }
 0xdfb   :  { %2515 = vmatpush1.bf16.msra.mxu0 %v5043_v60  ;;  %3608 = vmatpush3.bf16.msra.mxu1 %v5075_v8 }
 0xdfc   :  { %2516 = vmatprep.subr.bf16.mxu0 %v5045_v16  ;;  %3609 = vmatprep.subr.bf16.mxu1 %v5554_v1 }
 0xdff   :  { %2517 = vmatpush1.bf16.msra.mxu0 %v5053_v61  ;;  %3610 = vmatpush3.bf16.msra.mxu1 %v5079_v42 }
 0xe00   :  { %2605 = vmatprep.subr.bf16.mxu0 %v5003_v32  ;;  %3615 = vmatprep.subr.bf16.mxu1 %v5554_v1 }
 0xeb5   :  { %v2433_v37 = vpop.f32.mrb[68].mxu0  ;;  %v2474_v33 = vpop.f32.mrb[84].mxu1 }
 0xeb6   :  { %v2480_v47 = vadd.f32 %v2433_v37, %v1670_v43  ;;  %v2435_v3 = vpop.f32.mrb[69].mxu0  ;;  %v3593_v20 = vpop.f32.mrb[85].mxu1  ;;  %v2494_v61 = vadd.f32 %v5201_v13, %v2474_v33  ;;  %v1676_v43 = vadd.f32 %v5568_v46, %v5184_v19 }
 0xeb7   :  { %v2487_v53 = vadd.f32 %v2435_v3, %v1672_v12  ;;  %v2437_v55 = vpop.f32.mrb[70].mxu0  ;;  %v2477_v56 = vpop.f32.mrb[86].mxu1  ;;  %v5569_v12 = vld [vmem:[#allocation12_spill] sm:$0xff] }
 0xeb8   :  { %v3071_v57 = vmul.f32 -1.442695, %v2480_v47  ;;  %v2438_v58 = vpop.f32.mrb[71].mxu0  ;;  %v3594_v59 = vpop.f32.mrb[87].mxu1  ;;  %v1678_v37 = vadd.f32 %v5569_v12, %v5192_v2 }
 0xeb9   :  { %v3072_v32 = vmul.f32 -1.442695, %v2487_v53 }
 0xeba   :  { %3935 = vpow2.f32 %v3071_v57 }
 0xebb   :  { %3937 = vpow2.f32 %v3072_v32 }
 0xec4   :  { %v3936_v60 = vpop.eup %3935 }
 0xec5   :  { %v2484_v16 = vadd.f32 1.0, %v3936_v60  ;;  %v3938_v40 = vpop.eup %3937 }
 0xec6   :  { %v2491_v8 = vadd.f32 1.0, %v3938_v40 }
 0xec7   :  { %3939 = vrcp.f32 %v2484_v16 }
 0xed1   :  { %v3940_v34 = vpop.eup %3939 }
 0xed2   :  { %v2495_v4 = vmul.f32 %v3940_v34, %v2494_v61 }
 0xed4   :  { %v2496_v7 = vadd.f32 %v2495_v4, %v1738_v44  ;;  %v5570_v44 = vld [vmem:[#allocation11_spill] sm:$0xff] }
 0xed5   :  { %v1743_v4 = vadd.f32 %v5570_v44, %v5205_v35 }
 0xed6   :  { %3941 = vtanh.f32 %v2496_v7 }
 0xed7   :  { %3943 = vrcp.f32 %v2491_v8 }
 0xee0   :  { %v3942_v42 = vpop.eup %3941 }
 0xee1   :  { %v2498_v30 = vsub.f32 %v5398_v9, %v3942_v42  ;;  %v3944_v29 = vpop.eup %3943 }
 0xee3   :  { %v2499_v38 = vmul.f32 %v3944_v29, %v2498_v30 }
 0xee5   :  { %v5445_v25 = vadd.f32 %v3942_v42, %v2499_v38 }
 0xee7   :  { %v2501_v51 = vpack.c.bf16 %v5445_v25, %v5445_v25 }
 0xee9   :  { %2535 = vmatmul.mubr.bf16.vlgmr.msra.gmra.mrb[72].mxu0 %v2501_v51  ;;  %3612 = vmatmul.mubr.bf16.vlgmr.msra.gmra.mrb[88].mxu1 %v2501_v51 }
 0xeea   :  { %2606 = vmatpush1.bf16.msra.mxu0 %v4014_v63  ;;  %3616 = vmatpush3.bf16.msra.mxu1 %v4015_v31 }
 0xeeb   :  { %2607 = vmatprep.subr.bf16.mxu0 %v4016_v52  ;;  %3617 = vmatprep.subr.bf16.mxu1 %v5554_v1  ;;  %v3798_v52 = vld [vmem:[#allocation4 + $0x8] sm:$0xff]  }
 0xeec   :  { %2637 = vmatprep.mubr.bf16.mxu0 %v5555_v0  ;;  %3631 = vmatprep.mubr.msk.bf16.mxu1 %vm4116_vm0, %v5554_v1  ;;  %v4023_v0 = vld [vmem:[#allocation2 + $0x48] ss:$12 sps:$4 sm:$0xff]  }
 0xeee   :  { %2608 = vmatpush1.bf16.msra.mxu0 %v4017_v41  ;;  %3618 = vmatpush3.bf16.msra.mxu1 %v4018_v27  ;;  %v2709_v41 = vpack.c.bf16 %v5257_v48, %v5210_v15  ;;  %v3799_v27 = vld [vmem:[#allocation4 + $0x10] sm:$0xff]   ;;  %v3804_v15 = vld [vmem:[#allocation4 + $0x38] sm:$0xff]   ;;  %v2710_v48 = vpack.c.bf16 %v5351_v62, %v5304_v23 }
 0xeef   :  { %2609 = vmatprep.subr.bf16.mxu0 %v4019_v50  ;;  %3619 = vmatprep.subr.bf16.mxu1 %v5554_v1  ;;  %v3800_v50 = vld [vmem:[#allocation4 + $0x18] sm:$0xff]  }
 0xef2   :  { %2610 = vmatpush1.bf16.msra.mxu0 %v4020_v11  ;;  %3620 = vmatpush3.bf16.msra.mxu1 %v4021_v21  ;;  %v3801_v11 = vld [vmem:[#allocation4 + $0x20] sm:$0xff]   ;;  %v3802_v21 = vld [vmem:[#allocation4 + $0x28] sm:$0xff]  }
 0xef3   :  { %2611 = vmatprep.subr.bf16.mxu0 %v4022_v49  ;;  %3621 = vmatprep.subr.bf16.mxu1 %v5554_v1  ;;  %v3803_v49 = vld [vmem:[#allocation4 + $0x30] sm:$0xff]  }
 0xef6   :  { %2612 = vmatpush1.bf16.msra.mxu0 %v4023_v0  ;;  %3622 = vmatpush3.bf16.msra.mxu1 %v4024_v45  ;;  %v2711_v0 = vpack.c.bf16 %v5445_v25, %v5398_v9  ;;  %v5571_v45 = vld [vmem:[#allocation13_spill] sm:$0xff] }
 0xef7   :  { %2613 = vmatprep.subr.bf16.mxu0 %v4025_v17  ;;  %3623 = vmatprep.subr.bf16.mxu1 %v5554_v1  ;;  %v1680_v17 = vadd.f32 %v5571_v45, %v5184_v19 }
 0xefa   :  { %2614 = vmatpush1.bf16.msra.mxu0 %v4026_v26  ;;  %3624 = vmatpush3.bf16.msra.mxu1 %v4027_v54  ;;  %v5572_v26 = vld [vmem:[#allocation9_spill] sm:$0xff] }
 0xefb   :  { %2615 = vmatprep.subr.bf16.mxu0 %v4028_v36  ;;  %3625 = vmatprep.subr.bf16.mxu1 %v5554_v1  ;;  %v1682_v54 = vadd.f32 %v5572_v26, %v5192_v2 }
 0xefe   :  { %2616 = vmatpush1.bf16.msra.mxu0 %v4029_v28  ;;  %3626 = vmatpush3.bf16.msra.mxu1 %v4030_v10 }
 0xeff   :  { %2617 = vmatprep.subr.bf16.mxu0 %v4031_v18  ;;  %3627 = vmatprep.subr.bf16.mxu1 %v5554_v1 }
 0xf02   :  { %2618 = vmatpush1.bf16.msra.mxu0 %v4032_v39  ;;  %3628 = vmatpush3.bf16.msra.mxu1 %v4033_v14 }
 0xf03   :  { %2619 = vmatprep.subr.bf16.mxu0 %v4034_v22  ;;  %3629 = vmatprep.subr.bf16.mxu1 %v5554_v1 }
 0xf06   :  { %2620 = vmatpush1.bf16.msra.mxu0 %v4035_v5  ;;  %3630 = vmatpush3.bf16.msra.mxu1 %v4036_v24 }
 0xf07   :  { %3635 = vmatprep.subr.bf16.mxu0 %v3797_v6 }
 0xfbc   :  { %v2536_v33 = vpop.f32.mrb[72].mxu0  ;;  %v2577_v47 = vpop.f32.mrb[88].mxu1 }
 0xfbd   :  { %v2583_v3 = vadd.f32 %v2536_v33, %v1676_v43  ;;  %v2538_v20 = vpop.f32.mrb[73].mxu0  ;;  %v3613_v53 = vpop.f32.mrb[89].mxu1  ;;  %v2597_v61 = vadd.f32 %v5201_v13, %v2577_v47  ;;  %v5573_v43 = vld [vmem:[#allocation14_spill] sm:$0xff]  ;;  %v3078_v33 = vld [vmem:[#allocation6] ss:$0 sm:$0xff] }
 0xfbe   :  { %v2590_v55 = vadd.f32 %v2538_v20, %v1678_v37  ;;  %v2540_v56 = vpop.f32.mrb[74].mxu0  ;;  %v2580_v1 = vpop.f32.mrb[90].mxu1  ;;  %v1746_v12 = vadd.f32 %v5573_v43, %v5205_v35 }
 0xfbf   :  { %v3073_v57 = vmul.f32 -1.442695, %v2583_v3  ;;  %v2541_v58 = vpop.f32.mrb[75].mxu0  ;;  %v3614_v59 = vpop.f32.mrb[91].mxu1 }
 0xfc0   :  { %v3074_v32 = vmul.f32 -1.442695, %v2590_v55 }
 0xfc1   :  { %3945 = vpow2.f32 %v3073_v57 }
 0xfc2   :  { %3947 = vpow2.f32 %v3074_v32 }
 0xfcb   :  { %v3946_v60 = vpop.eup %3945 }
 0xfcc   :  { %v2587_v16 = vadd.f32 1.0, %v3946_v60  ;;  %v3948_v40 = vpop.eup %3947 }
 0xfcd   :  { %v2594_v42 = vadd.f32 1.0, %v3948_v40 }
 0xfce   :  { %3949 = vrcp.f32 %v2587_v16 }
 0xfd8   :  { %v3950_v34 = vpop.eup %3949 }
 0xfd9   :  { %v2598_v7 = vmul.f32 %v3950_v34, %v2597_v61 }
 0xfdb   :  { %v2599_v8 = vadd.f32 %v2598_v7, %v1743_v4 }
 0xfdd   :  { %3951 = vtanh.f32 %v2599_v8 }
 0xfde   :  { %3953 = vrcp.f32 %v2594_v42 }
 0xfe7   :  { %v3952_v30 = vpop.eup %3951 }
 0xfe8   :  { %v2601_v29 = vsub.f32 %v5445_v25, %v3952_v30  ;;  %v3954_v38 = vpop.eup %3953 }
 0xfea   :  { %v2602_v51 = vmul.f32 %v3954_v38, %v2601_v29 }
 0xfec   :  { %v5467_v63 = vadd.f32 %v3952_v30, %v2602_v51 }
 0xfee   :  { %v2604_v31 = vpack.c.bf16 %v5467_v63, %v5467_v63 }
 0xff0   :  { %2638 = vmatmul.mubr.bf16.vlgmr.msra.gmra.mrb[76].mxu0 %v2604_v31  ;;  %3632 = vmatmul.mubr.bf16.vlgmr.msra.gmra.mrb[92].mxu1 %v2604_v31 }
 0xff1   :  { %3636 = vmatpush3.bf16.msra.mxu0 %v3797_v6  ;;  %3651 = vmatprep.mubr.bf16.mxu0 %v2709_v41 }
 0xff2   :  { %3637 = vmatprep.subr.bf16.mxu0 %v3798_v52 }
 0xff5   :  { %3638 = vmatpush3.bf16.msra.mxu0 %v3798_v52 }
 0xff6   :  { %3639 = vmatprep.subr.bf16.mxu0 %v3799_v27 }
 0xff9   :  { %3640 = vmatpush3.bf16.msra.mxu0 %v3799_v27 }
 0xffa   :  { %3641 = vmatprep.subr.bf16.mxu0 %v3800_v50 }
 0xffd   :  { %3642 = vmatpush3.bf16.msra.mxu0 %v3800_v50 }
 0xffe   :  { %3643 = vmatprep.subr.bf16.mxu0 %v3801_v11 }
0x1001   :  { %3644 = vmatpush3.bf16.msra.mxu0 %v3801_v11 }
0x1002   :  { %3645 = vmatprep.subr.bf16.mxu0 %v3802_v21 }
0x1005   :  { %3646 = vmatpush3.bf16.msra.mxu0 %v3802_v21 }
0x1006   :  { %3647 = vmatprep.subr.bf16.mxu0 %v3803_v49 }
0x1009   :  { %3648 = vmatpush3.bf16.msra.mxu0 %v3803_v49 }
0x100a   :  { %3649 = vmatprep.subr.bf16.mxu0 %v3804_v15 }
0x100d   :  { %3650 = vmatpush3.bf16.msra.mxu0 %v3804_v15 }
0x1010   :  { %3652 = vmatmul.mubr.bf16.vlgmr.msra.gmra.mrb[80].mxu0 %v2710_v48 }
0x1011   :  { %3655 = vmatprep.mubr.bf16.mxu0 %v2711_v0 }
0x10c3   :  { %v2639_v36 = vpop.f32.mrb[76].mxu0  ;;  %v2680_v28 = vpop.f32.mrb[92].mxu1 }
0x10c4   :  { %v2686_v10 = vadd.f32 %v2639_v36, %v1680_v17  ;;  %v2641_v18 = vpop.f32.mrb[77].mxu0  ;;  %v3633_v39 = vpop.f32.mrb[93].mxu1  ;;  %v2700_v2 = vadd.f32 %v5201_v13, %v2680_v28 }
0x10c5   :  { %v2693_v14 = vadd.f32 %v2641_v18, %v1682_v54  ;;  %v2643_v22 = vpop.f32.mrb[78].mxu0  ;;  %v2683_v5 = vpop.f32.mrb[94].mxu1 }
0x10c6   :  { %v3075_v23 = vmul.f32 -1.442695, %v2686_v10  ;;  %v2644_v62 = vpop.f32.mrb[79].mxu0  ;;  %v3634_v24 = vpop.f32.mrb[95].mxu1 }
0x10c7   :  { %v3076_v9 = vmul.f32 -1.442695, %v2693_v14 }
0x10c8   :  { %3955 = vpow2.f32 %v3075_v23 }
0x10c9   :  { %3957 = vpow2.f32 %v3076_v9 }
0x10d2   :  { %v3956_v25 = vpop.eup %3955 }
0x10d3   :  { %v2690_v6 = vadd.f32 1.0, %v3956_v25  ;;  %v3958_v19 = vpop.eup %3957 }
0x10d4   :  { %v2697_v3 = vadd.f32 1.0, %v3958_v19 }
0x10d5   :  { %3959 = vrcp.f32 %v2690_v6 }
0x10df   :  { %v3960_v46 = vpop.eup %3959 }
0x10e0   :  { %v2701_v37 = vmul.f32 %v3960_v46, %v2700_v2 }
0x10e2   :  { %v2702_v47 = vadd.f32 %v2701_v37, %v1746_v12 }
0x10e3   :  { %v3653_v20 = vpop.f32.mrb[80].mxu0 }
0x10e4   :  { %3961 = vtanh.f32 %v2702_v47  ;;  %v2827_v53 = vadd.f32 %v3653_v20, %v3078_v33  ;;  %v2818_v55 = vpop.f32.mrb[81].mxu0 }
0x10e5   :  { %v2819_v56 = vadd.f32 %v3078_v33, %v2818_v55  ;;  %v3654_v1 = vpop.f32.mrb[82].mxu0  ;;  %3963 = vrcp.f32 %v2697_v3 }
0x10e6   :  { %2853 = vmax.xlane.f32.xlu1 %v2827_v53  ;;  %v2821_v57 = vpop.f32.mrb[83].mxu0  ;;  %v2830_v58 = vadd.f32 %v3654_v1, %v3078_v33 }
0x10e7   :  { %2849 = vmax.xlane.f32.xlu0 %v2819_v56  ;;  %v2822_v13 = vadd.f32 %v3078_v33, %v2821_v57 }
0x10ea   :  { %2855 = vmax.xlane.f32.xlu1 %v2830_v58 }
0x10eb   :  { %2851 = vmax.xlane.f32.xlu0 %v2822_v13 }
0x10ee   :  { %v3962_v59 = vpop.eup %3961 }
0x10ef   :  { %v2704_v35 = vsub.f32 %v5467_v63, %v3962_v59  ;;  %v3964_v32 = vpop.eup %3963 }
0x10f1   :  { %v2705_v60 = vmul.f32 %v3964_v32, %v2704_v35 }
0x10f3   :  { %v2706_v16 = vadd.f32 %v3962_v59, %v2705_v60 }
0x10f5   :  { %3077 = vst [vmem:[%s5541_s12 + $0x8] sm:$0xff] %v2706_v16  ;;  %v2712_v40 = vpack.c.bf16 %v2706_v16, %v5467_v63 }
0x10f7   :  { %3656 = vmatmul.mubr.bf16.gmra.mrb[84].mxu0 %v2712_v40 }
0x1173   :  { %v2854_v34 = vpop.xlane.xlu1 %2853 }
0x1174   :  { %v2850_v61 = vpop.xlane.xlu0 %2849  ;;  %v5493_v42 = vsub.f32 %v2827_v53, %v2854_v34 }
0x1175   :  { %v5489_v4 = vsub.f32 %v2819_v56, %v2850_v61 }
0x1176   :  { %v2877_v63 = vmul.f32 1.442695, %v5493_v42 }
0x1177   :  { %v2856_v8 = vpop.xlane.xlu1 %2855  ;;  %v2873_v30 = vmul.f32 1.442695, %v5489_v4 }
0x1178   :  { %v2852_v44 = vpop.xlane.xlu0 %2851  ;;  %v5496_v29 = vsub.f32 %v2830_v58, %v2856_v8 }
0x1179   :  { %v5491_v7 = vsub.f32 %v2822_v13, %v2852_v44  ;;  %3965 = vpow2.f32 %v2873_v30 }
0x117a   :  { %v2879_v27 = vmul.f32 1.442695, %v5496_v29 }
0x117b   :  { %v2875_v38 = vmul.f32 1.442695, %v5491_v7 }
0x117d   :  { %3967 = vpow2.f32 %v2875_v38 }
0x117e   :  { %3969 = vpow2.f32 %v2877_v63 }
0x117f   :  { %3971 = vpow2.f32 %v2879_v27 }
0x1183   :  { %v3966_v15 = vpop.eup %3965 }
0x1187   :  { %v3968_v48 = vpop.eup %3967 }
0x1188   :  { %v3970_v0 = vpop.eup %3969 }
0x1189   :  { %v3972_v45 = vpop.eup %3971 }
0x11ca   :  { %v3657_v51 = vpop.f32.mrb[84].mxu0 }
0x11cb   :  { %v2834_v31 = vpop.f32.mrb[85].mxu0  ;;  %v2843_v21 = vadd.f32 %v3657_v51, %v3078_v33 }
0x11cc   :  { %v2835_v52 = vadd.f32 %v3078_v33, %v2834_v31  ;;  %v3658_v41 = vpop.f32.mrb[86].mxu0 }
0x11cd   :  { %v2837_v50 = vpop.f32.mrb[87].mxu0  ;;  %v2846_v49 = vadd.f32 %v3658_v41, %v3078_v33 }
0x11ce   :  { %v2838_v11 = vadd.f32 %v3078_v33, %v2837_v50  ;;  %2857 = vmax.xlane.f32.xlu0 %v2835_v52 }
0x11d0   :  { %2859 = vmax.xlane.f32.xlu1 %v2838_v11 }
0x11d2   :  { %2861 = vmax.xlane.f32.xlu0 %v2843_v21 }
0x11d4   :  { %2863 = vmax.xlane.f32.xlu1 %v2846_v49 }
0x11d6   :  { %2889 = vadd.xlane.f32.xlu0 %v3966_v15 }
0x11d8   :  { %2891 = vadd.xlane.f32.xlu1 %v3968_v48 }
0x11da   :  { %2893 = vadd.xlane.f32.xlu0 %v3970_v0 }
0x11dc   :  { %2895 = vadd.xlane.f32.xlu1 %v3972_v45 }
0x125b   :  { %v2858_v17 = vpop.xlane.xlu0 %2857 }
0x125c   :  { %v2869_v26 = vsub.f32 %v2835_v52, %v2858_v17 }
0x125d   :  { %v2860_v54 = vpop.xlane.xlu1 %2859 }
0x125e   :  { %v2881_v36 = vmul.f32 1.442695, %v2869_v26  ;;  %v2870_v28 = vsub.f32 %v2838_v11, %v2860_v54 }
0x125f   :  { %v2862_v10 = vpop.xlane.xlu0 %2861 }
0x1260   :  { %3973 = vpow2.f32 %v2881_v36  ;;  %v2883_v18 = vmul.f32 1.442695, %v2870_v28  ;;  %v2871_v39 = vsub.f32 %v2843_v21, %v2862_v10 }
0x1261   :  { %v2864_v14 = vpop.xlane.xlu1 %2863 }
0x1262   :  { %3975 = vpow2.f32 %v2883_v18  ;;  %v2885_v22 = vmul.f32 1.442695, %v2871_v39  ;;  %v2872_v5 = vsub.f32 %v2846_v49, %v2864_v14 }
0x1263   :  { %v2890_v23 = vpop.xlane.xlu0 %2889 }
0x1264   :  { %3977 = vpow2.f32 %v2885_v22  ;;  %v2887_v62 = vmul.f32 1.442695, %v2872_v5 }
0x1265   :  { %3979 = vlog2.f32 %v2890_v23  ;;  %v2892_v24 = vpop.xlane.xlu1 %2891 }
0x1266   :  { %3981 = vpow2.f32 %v2887_v62 }
0x1267   :  { %3983 = vlog2.f32 %v2892_v24  ;;  %v2894_v9 = vpop.xlane.xlu0 %2893 }
0x1268   :  { %3985 = vlog2.f32 %v2894_v9 }
0x1269   :  { %v2896_v25 = vpop.xlane.xlu1 %2895 }
0x126a   :  { %v3974_v6 = vpop.eup %3973  ;;  %3987 = vlog2.f32 %v2896_v25 }
0x126b   :  { %2897 = vadd.xlane.f32.xlu0 %v3974_v6 }
0x126c   :  { %v3976_v19 = vpop.eup %3975 }
0x126d   :  { %2899 = vadd.xlane.f32.xlu1 %v3976_v19 }
0x126e   :  { %v3978_v2 = vpop.eup %3977 }
0x126f   :  { %v3980_v46 = vpop.eup %3979  ;;  %2901 = vadd.xlane.f32.xlu0 %v3978_v2 }
0x1270   :  { %v3982_v43 = vpop.eup %3981  ;;  %v2906_v12 = vmul.f32 0.6931472, %v3980_v46 }
0x1271   :  { %v3984_v37 = vpop.eup %3983  ;;  %2903 = vadd.xlane.f32.xlu1 %v3982_v43 }
0x1272   :  { %v3986_v33 = vpop.eup %3985  ;;  %v2921_v47 = vsub.f32 %v5489_v4, %v2906_v12  ;;  %v2908_v3 = vmul.f32 0.6931472, %v3984_v37 }
0x1273   :  { %v2910_v20 = vmul.f32 0.6931472, %v3986_v33 }
0x1274   :  { %v3988_v53 = vpop.eup %3987  ;;  %2929 = vst [vmem:[%s5540_s11] sm:$0xff] %v2921_v47  ;;  %v2922_v55 = vsub.f32 %v5491_v7, %v2908_v3 }
0x1275   :  { %v2923_v56 = vsub.f32 %v5493_v42, %v2910_v20  ;;  %v2912_v1 = vmul.f32 0.6931472, %v3988_v53 }
0x1276   :  { %2930 = vst [vmem:[%s5540_s11 + $0x8] sm:$0xff] %v2922_v55 }
0x1277   :  { %2931 = vst [vmem:[%s5540_s11 + $0x10] sm:$0xff] %v2923_v56  ;;  %v2924_v57 = vsub.f32 %v5496_v29, %v2912_v1 }
0x1279   :  { %2932 = vst [vmem:[%s5540_s11 + $0x18] sm:$0xff] %v2924_v57 }
0x12f8   :  { %v2898_v58 = vpop.xlane.xlu0 %2897 }
0x12f9   :  { %3989 = vlog2.f32 %v2898_v58 }
0x12fa   :  { %v2900_v13 = vpop.xlane.xlu1 %2899 }
0x12fb   :  { %3991 = vlog2.f32 %v2900_v13 }
0x12fc   :  { %v2902_v59 = vpop.xlane.xlu0 %2901 }
0x12fd   :  { %3993 = vlog2.f32 %v2902_v59 }
0x12fe   :  { %v2904_v35 = vpop.xlane.xlu1 %2903 }
0x12ff   :  { %3995 = vlog2.f32 %v2904_v35 }
0x1303   :  { %v3990_v32 = vpop.eup %3989 }
0x1304   :  { %v2914_v60 = vmul.f32 0.6931472, %v3990_v32 }
0x1305   :  { %v3992_v16 = vpop.eup %3991 }
0x1306   :  { %v2925_v40 = vsub.f32 %v2869_v26, %v2914_v60  ;;  %v2916_v61 = vmul.f32 0.6931472, %v3992_v16 }
0x1307   :  { %v3994_v34 = vpop.eup %3993 }
0x1308   :  { %2933 = vst [vmem:[%s5540_s11 + $0x20] sm:$0xff] %v2925_v40  ;;  %v2926_v44 = vsub.f32 %v2870_v28, %v2916_v61  ;;  %v2918_v4 = vmul.f32 0.6931472, %v3994_v34 }
0x1309   :  { %v3996_v7 = vpop.eup %3995 }
0x130a   :  { %2934 = vst [vmem:[%s5540_s11 + $0x28] sm:$0xff] %v2926_v44  ;;  %v2927_v8 = vsub.f32 %v2871_v39, %v2918_v4  ;;  %v2920_v42 = vmul.f32 0.6931472, %v3996_v7 }
0x130c   :  { %2935 = vst [vmem:[%s5540_s11 + $0x30] sm:$0xff] %v2927_v8  ;;  %v2928_v30 = vsub.f32 %v2872_v5, %v2920_v42 }
0x130e   :  { %2936 = vst [vmem:[%s5540_s11 + $0x38] sm:$0xff] %v2928_v30 }
0x130f   :  { %2945 = vsyncpa [#allocation3], 1 }
0x1310   :  { %2946 = vsyncpa [#allocation5], 1 }

</bundles_post_ra>
